<compile_context>
chip_gen: v7x
topology: tpu7x:2x2x1
jax: 0.10.0
libtpu: 0.0.40
codegen_flags: <defaults>
</compile_context>

<pallas_src>
import functools

import jax
import jax.numpy as jnp
from jax.experimental import pallas as pl
from jax.experimental.pallas import tpu as pltpu


def wesad_lstm_kernel(x_ref, wih_ref, whh_ref, b_ref, fcw_ref, fcb_ref,
                      out_ref, *, num_layers, hidden):
    """Multi-layer LSTM (wavefront schedule) + fused FC head, all in VMEM.

    x_ref   : (N, H)        input sequence (batch=1 squeezed)
    wih_ref : (L, H, 4H)    input->gates weights, pre-transposed, g-cols *2
    whh_ref : (L, H, 4H)    hidden->gates weights, pre-transposed, g-cols *2
    b_ref   : (L, 1, 4H)    b_ih + b_hh per layer, g-entries *2
    fcw_ref : (H, 128)      fc weight, pre-transposed, zero-padded lanes
    fcb_ref : (1, 128)      fc bias, zero-padded lanes
    out_ref : (N, 128)      logits (lanes >= n_classes are zero)
    """
    H = hidden
    L = num_layers
    N = x_ref.shape[0]

    # Hoisted layer-0 input projection: one (N,H)@(H,4H) matmul + bias.
    gx0 = jnp.dot(x_ref[...], wih_ref[0],
                  preferred_element_type=jnp.float32) + b_ref[0]

    # Per-layer recurrent state carried as register values (no VMEM round trips).
    h = [jnp.zeros((1, H), jnp.float32) for _ in range(L)]
    c = [jnp.zeros((1, H), jnp.float32) for _ in range(L)]

    # Wavefront over (layer, time): cell (l, t) executes at step s = l + t.
    # Statically unrolled so the LLO scheduler sees the whole dependence chain.
    for s in range(L + N - 1):
        h_prev = list(h)                      # snapshot: step s reads step s-1 state
        lo = max(0, s - N + 1)
        hi = min(L - 1, s)
        for l in range(lo, hi + 1):           # independent cells within a step
            t = s - l
            if l == 0:
                gates = gx0[t:t + 1, :] + jnp.dot(
                    h_prev[0], whh_ref[0], preferred_element_type=jnp.float32)
            else:
                gates = (jnp.dot(h_prev[l - 1], wih_ref[l],
                                 preferred_element_type=jnp.float32)
                         + jnp.dot(h_prev[l], whh_ref[l],
                                   preferred_element_type=jnp.float32)
                         + b_ref[l])
            # Single full-width sigmoid over (1, 4H); g-gate pre-activations were
            # pre-scaled by 2, so tanh(z) = 2*sigmoid(2z) - 1 exactly.
            sig = jax.nn.sigmoid(gates)
            i_g = sig[:, 0:H]
            f_g = sig[:, H:2 * H]
            g_g = 2.0 * sig[:, 2 * H:3 * H] - 1.0
            o_g = sig[:, 3 * H:4 * H]
            c_new = f_g * c[l] + i_g * g_g
            h_new = o_g * jnp.tanh(c_new)
            c[l] = c_new
            h[l] = h_new
            if l == L - 1:
                # Fused FC head: tiny (1,H)@(H,128) matmul, off the recurrence
                # critical path; lane-dense unmasked store of the output row.
                out_ref[pl.ds(t, 1), :] = (
                    jnp.dot(h_new, fcw_ref[...],
                            preferred_element_type=jnp.float32) + fcb_ref[...])


def prepare_kernel_params(params, out_lanes=128):
    """One-time weight prep: g-gate *2 pre-scaling + lane-dense padded FC head."""
    H = params["w_ih"].shape[1]
    scale = jnp.ones((4 * H,), jnp.float32).at[2 * H:3 * H].set(2.0)
    C = params["fc_w"].shape[1]
    fc_w = jnp.zeros((H, out_lanes), jnp.float32).at[:, :C].set(params["fc_w"])
    fc_b = jnp.zeros((1, out_lanes), jnp.float32).at[:, :C].set(params["fc_b"])
    return {
        "w_ih": params["w_ih"] * scale,        # (L, H, 4H)
        "w_hh": params["w_hh"] * scale,        # (L, H, 4H)
        "b": params["b"] * scale,              # (L, 1, 4H)
        "fc_w": fc_w,                          # (H, 128)
        "fc_b": fc_b,                          # (1, 128)
    }


def wesad_lstm_forward(x, kparams, *, num_layers, hidden, n_classes,
                       out_lanes=128):
    N = x.shape[0]
    L, H = num_layers, hidden

    # Advisory cost estimate (latency-bound kernel; numbers are tiny).
    flops = (2 * N * H * 4 * H                       # hoisted layer-0 x @ W_ih
             + N * 2 * H * 4 * H                     # layer-0 h @ W_hh
             + (L - 1) * N * 2 * 2 * H * 4 * H       # layers >=1: two matmuls/cell
             + N * 2 * H * out_lanes)                # fused FC head
    transcendentals = L * N * (4 * H + H)            # sigmoid(4H) + tanh(H) per cell
    bytes_accessed = 4 * (N * H
                          + L * (2 * H * 4 * H + 4 * H)
                          + H * out_lanes + out_lanes
                          + N * out_lanes)

    kernel = functools.partial(wesad_lstm_kernel,
                               num_layers=num_layers, hidden=hidden)
    vmem = pl.BlockSpec(memory_space=pltpu.MemorySpace.VMEM)
    out_padded = pl.pallas_call(
        kernel,
        out_shape=jax.ShapeDtypeStruct((N, out_lanes), jnp.float32),
        in_specs=[vmem] * 6,
        out_specs=vmem,
        cost_estimate=pl.CostEstimate(flops=flops,
                                      transcendentals=transcendentals,
                                      bytes_accessed=bytes_accessed),
        compiler_params=pltpu.CompilerParams(vmem_limit_bytes=2 * 1024 * 1024),
    )(x, kparams["w_ih"], kparams["w_hh"], kparams["b"],
      kparams["fc_w"], kparams["fc_b"])
    return out_padded[:, :n_classes]


def init_params(key, input_dim, hidden_dim, output_dim, lstm_layers):
    """Deterministic init mirroring PyTorch shapes (uniform +-1/sqrt(H))."""
    H = input_dim  # nn.LSTM(hidden_size=input_dim)
    k = 1.0 / float(jnp.sqrt(jnp.float32(H)))
    keys = jax.random.split(key, 4 * lstm_layers + 2)
    w_ih, w_hh, b = [], [], []
    for l in range(lstm_layers):
        wi = jax.random.uniform(keys[4 * l + 0], (4 * H, H), jnp.float32, -k, k)
        wh = jax.random.uniform(keys[4 * l + 1], (4 * H, H), jnp.float32, -k, k)
        bi = jax.random.uniform(keys[4 * l + 2], (4 * H,), jnp.float32, -k, k)
        bh = jax.random.uniform(keys[4 * l + 3], (4 * H,), jnp.float32, -k, k)
        w_ih.append(wi.T)                      # (H, 4H)
        w_hh.append(wh.T)                      # (H, 4H)
        b.append((bi + bh)[None, :])           # (1, 4H)
    kf = 1.0 / float(jnp.sqrt(jnp.float32(hidden_dim)))
    fc_w = jax.random.uniform(keys[-2], (output_dim, hidden_dim), jnp.float32, -kf, kf)
    fc_b = jax.random.uniform(keys[-1], (output_dim,), jnp.float32, -kf, kf)
    return {
        "w_ih": jnp.stack(w_ih),               # (L, H, 4H)
        "w_hh": jnp.stack(w_hh),               # (L, H, 4H)
        "b": jnp.stack(b),                     # (L, 1, 4H)
        "fc_w": fc_w.T,                        # (H, C)
        "fc_b": fc_b[None, :],                 # (1, C)
    }


def reference_forward(x, params):
    """Pure-JAX reference of the same forward pass (for correctness check)."""
    L, H, _ = params["w_ih"].shape
    seq = x
    for l in range(L):
        wih, whh, b = params["w_ih"][l], params["w_hh"][l], params["b"][l]
        h = jnp.zeros((1, H), jnp.float32)
        c = jnp.zeros((1, H), jnp.float32)
        outs = []
        for t in range(seq.shape[0]):
            gates = seq[t:t + 1] @ wih + h @ whh + b
            i_g = jax.nn.sigmoid(gates[:, 0:H])
            f_g = jax.nn.sigmoid(gates[:, H:2 * H])
            g_g = jnp.tanh(gates[:, 2 * H:3 * H])
            o_g = jax.nn.sigmoid(gates[:, 3 * H:4 * H])
            c = f_g * c + i_g * g_g
            h = o_g * jnp.tanh(c)
            outs.append(h)
        seq = jnp.concatenate(outs, axis=0)
    return seq @ params["fc_w"] + params["fc_b"]


if __name__ == "__main__":
    INPUT_DIM = 32          # number of feature columns
    HIDDEN_DIM = 32         # must equal INPUT_DIM for the PyTorch forward to work
    OUTPUT_DIM = 3
    LSTM_LAYERS = 5
    SEQ = 8                 # N rows -> sequence length after view(-1, 1, input_dim)

    root = jax.random.PRNGKey(0)
    kx, kp = jax.random.split(root)
    x = jax.random.normal(kx, (SEQ, INPUT_DIM), jnp.float32)
    params = init_params(kp, INPUT_DIM, HIDDEN_DIM, OUTPUT_DIM, LSTM_LAYERS)
    kparams = prepare_kernel_params(params)

    out = wesad_lstm_forward(x, kparams, num_layers=LSTM_LAYERS,
                             hidden=INPUT_DIM, n_classes=OUTPUT_DIM)
    out = jax.block_until_ready(out)

    ref = reference_forward(x, params)
    assert out.shape == (SEQ, OUTPUT_DIM)
    assert jnp.allclose(out, ref, rtol=1e-4, atol=1e-4), (out, ref)
    print("KERNEL_OK")
</pallas_src>

<mosaic_0001>
module attributes {stable_mosaic.version = 11 : i64} {
  func.func @wesad_lstm_kernel(%arg0: memref<8x32xf32, #tpu.memory_space<vmem>>, %arg1: memref<5x32x128xf32, #tpu.memory_space<vmem>>, %arg2: memref<5x32x128xf32, #tpu.memory_space<vmem>>, %arg3: memref<5x1x128xf32, #tpu.memory_space<vmem>>, %arg4: memref<32x128xf32, #tpu.memory_space<vmem>>, %arg5: memref<1x128xf32, #tpu.memory_space<vmem>>, %arg6: memref<8x128xf32, #tpu.memory_space<vmem>>) attributes {dimension_semantics = [], scalar_prefetch = 0 : i64, scratch_operands = 0 : i64, tpu.core_type = #tpu.core_type<tc>} {
    %c0 = arith.constant 0 : index
    %c0_0 = arith.constant 0 : index
    %0 = vector.load %arg0[%c0, %c0_0] : memref<8x32xf32, #tpu.memory_space<vmem>>, vector<8x32xf32>
    %c0_1 = arith.constant 0 : index
    %c0_2 = arith.constant 0 : index
    %c0_3 = arith.constant 0 : index
    %1 = vector.load %arg1[%c0_1, %c0_2, %c0_3] : memref<5x32x128xf32, #tpu.memory_space<vmem>>, vector<1x32x128xf32>
    %2 = vector.shape_cast %1 : vector<1x32x128xf32> to vector<32x128xf32>
    %cst = arith.constant dense<0.000000e+00> : vector<8x128xf32>
    %3 = tpu.matmul %0, %2, %cst {dimension_numbers = #tpu.dot_dimension_numbers<[1], [0], [0], [1], [0, 0, 1, 1], [], []>} : vector<8x32xf32>, vector<32x128xf32>, vector<8x128xf32> -> vector<8x128xf32>
    %c0_4 = arith.constant 0 : index
    %c0_5 = arith.constant 0 : index
    %c0_6 = arith.constant 0 : index
    %4 = vector.load %arg3[%c0_4, %c0_5, %c0_6] : memref<5x1x128xf32, #tpu.memory_space<vmem>>, vector<1x1x128xf32>
    %5 = vector.shape_cast %4 : vector<1x1x128xf32> to vector<1x128xf32>
    %6 = vector.broadcast %5 : vector<1x128xf32> to vector<8x128xf32>
    %7 = arith.addf %3, %6 : vector<8x128xf32>
    %cst_7 = arith.constant 0.000000e+00 : f32
    %8 = vector.broadcast %cst_7 : f32 to vector<1x32xf32>
    %cst_8 = arith.constant 0.000000e+00 : f32
    %9 = vector.broadcast %cst_8 : f32 to vector<1x32xf32>
    %cst_9 = arith.constant 0.000000e+00 : f32
    %10 = vector.broadcast %cst_9 : f32 to vector<1x32xf32>
    %cst_10 = arith.constant 0.000000e+00 : f32
    %11 = vector.broadcast %cst_10 : f32 to vector<1x32xf32>
    %cst_11 = arith.constant 0.000000e+00 : f32
    %12 = vector.broadcast %cst_11 : f32 to vector<1x32xf32>
    %cst_12 = arith.constant 0.000000e+00 : f32
    %13 = vector.broadcast %cst_12 : f32 to vector<1x32xf32>
    %cst_13 = arith.constant 0.000000e+00 : f32
    %14 = vector.broadcast %cst_13 : f32 to vector<1x32xf32>
    %cst_14 = arith.constant 0.000000e+00 : f32
    %15 = vector.broadcast %cst_14 : f32 to vector<1x32xf32>
    %cst_15 = arith.constant 0.000000e+00 : f32
    %16 = vector.broadcast %cst_15 : f32 to vector<1x32xf32>
    %cst_16 = arith.constant 0.000000e+00 : f32
    %17 = vector.broadcast %cst_16 : f32 to vector<1x32xf32>
    %18 = vector.extract_strided_slice %7 {offsets = [0, 0], sizes = [1, 128], strides = [1, 1]} : vector<8x128xf32> to vector<1x128xf32>
    %c0_17 = arith.constant 0 : index
    %c0_18 = arith.constant 0 : index
    %c0_19 = arith.constant 0 : index
    %19 = vector.load %arg2[%c0_17, %c0_18, %c0_19] : memref<5x32x128xf32, #tpu.memory_space<vmem>>, vector<1x32x128xf32>
    %20 = vector.shape_cast %19 : vector<1x32x128xf32> to vector<32x128xf32>
    %cst_20 = arith.constant dense<0.000000e+00> : vector<1x128xf32>
    %21 = tpu.matmul %8, %20, %cst_20 {dimension_numbers = #tpu.dot_dimension_numbers<[1], [0], [0], [1], [0, 0, 1, 1], [], []>} : vector<1x32xf32>, vector<32x128xf32>, vector<1x128xf32> -> vector<1x128xf32>
    %22 = arith.addf %18, %21 : vector<1x128xf32>
    %23 = arith.negf %22 : vector<1x128xf32>
    %24 = math.exp %23 : vector<1x128xf32>
    %cst_21 = arith.constant 1.000000e+00 : f32
    %25 = vector.broadcast %cst_21 : f32 to vector<1x128xf32>
    %26 = arith.addf %25, %24 : vector<1x128xf32>
    %27 = arith.divf %25, %26 : vector<1x128xf32>
    %28 = vector.extract_strided_slice %27 {offsets = [0, 0], sizes = [1, 32], strides = [1, 1]} : vector<1x128xf32> to vector<1x32xf32>
    %29 = vector.extract_strided_slice %27 {offsets = [0, 32], sizes = [1, 32], strides = [1, 1]} : vector<1x128xf32> to vector<1x32xf32>
    %30 = vector.extract_strided_slice %27 {offsets = [0, 64], sizes = [1, 32], strides = [1, 1]} : vector<1x128xf32> to vector<1x32xf32>
    %cst_22 = arith.constant 2.000000e+00 : f32
    %31 = vector.broadcast %cst_22 : f32 to vector<1x32xf32>
    %32 = arith.mulf %31, %30 : vector<1x32xf32>
    %cst_23 = arith.constant 1.000000e+00 : f32
    %33 = vector.broadcast %cst_23 : f32 to vector<1x32xf32>
    %34 = arith.subf %32, %33 : vector<1x32xf32>
    %35 = vector.extract_strided_slice %27 {offsets = [0, 96], sizes = [1, 32], strides = [1, 1]} : vector<1x128xf32> to vector<1x32xf32>
    %36 = arith.mulf %29, %13 : vector<1x32xf32>
    %37 = arith.mulf %28, %34 : vector<1x32xf32>
    %38 = arith.addf %36, %37 : vector<1x32xf32>
    %39 = math.tanh %38 : vector<1x32xf32>
    %40 = arith.mulf %35, %39 : vector<1x32xf32>
    %41 = vector.extract_strided_slice %7 {offsets = [1, 0], sizes = [1, 128], strides = [1, 1]} : vector<8x128xf32> to vector<1x128xf32>
    %c0_24 = arith.constant 0 : index
    %c0_25 = arith.constant 0 : index
    %c0_26 = arith.constant 0 : index
    %42 = vector.load %arg2[%c0_24, %c0_25, %c0_26] : memref<5x32x128xf32, #tpu.memory_space<vmem>>, vector<1x32x128xf32>
    %43 = vector.shape_cast %42 : vector<1x32x128xf32> to vector<32x128xf32>
    %cst_27 = arith.constant dense<0.000000e+00> : vector<1x128xf32>
    %44 = tpu.matmul %40, %43, %cst_27 {dimension_numbers = #tpu.dot_dimension_numbers<[1], [0], [0], [1], [0, 0, 1, 1], [], []>} : vector<1x32xf32>, vector<32x128xf32>, vector<1x128xf32> -> vector<1x128xf32>
    %45 = arith.addf %41, %44 : vector<1x128xf32>
    %46 = arith.negf %45 : vector<1x128xf32>
    %47 = math.exp %46 : vector<1x128xf32>
    %cst_28 = arith.constant 1.000000e+00 : f32
    %48 = vector.broadcast %cst_28 : f32 to vector<1x128xf32>
    %49 = arith.addf %48, %47 : vector<1x128xf32>
    %50 = arith.divf %48, %49 : vector<1x128xf32>
    %51 = vector.extract_strided_slice %50 {offsets = [0, 0], sizes = [1, 32], strides = [1, 1]} : vector<1x128xf32> to vector<1x32xf32>
    %52 = vector.extract_strided_slice %50 {offsets = [0, 32], sizes = [1, 32], strides = [1, 1]} : vector<1x128xf32> to vector<1x32xf32>
    %53 = vector.extract_strided_slice %50 {offsets = [0, 64], sizes = [1, 32], strides = [1, 1]} : vector<1x128xf32> to vector<1x32xf32>
    %cst_29 = arith.constant 2.000000e+00 : f32
    %54 = vector.broadcast %cst_29 : f32 to vector<1x32xf32>
    %55 = arith.mulf %54, %53 : vector<1x32xf32>
    %cst_30 = arith.constant 1.000000e+00 : f32
    %56 = vector.broadcast %cst_30 : f32 to vector<1x32xf32>
    %57 = arith.subf %55, %56 : vector<1x32xf32>
    %58 = vector.extract_strided_slice %50 {offsets = [0, 96], sizes = [1, 32], strides = [1, 1]} : vector<1x128xf32> to vector<1x32xf32>
    %59 = arith.mulf %52, %38 : vector<1x32xf32>
    %60 = arith.mulf %51, %57 : vector<1x32xf32>
    %61 = arith.addf %59, %60 : vector<1x32xf32>
    %62 = math.tanh %61 : vector<1x32xf32>
    %63 = arith.mulf %58, %62 : vector<1x32xf32>
    %c1 = arith.constant 1 : index
    %c0_31 = arith.constant 0 : index
    %c0_32 = arith.constant 0 : index
    %64 = vector.load %arg1[%c1, %c0_31, %c0_32] : memref<5x32x128xf32, #tpu.memory_space<vmem>>, vector<1x32x128xf32>
    %65 = vector.shape_cast %64 : vector<1x32x128xf32> to vector<32x128xf32>
    %cst_33 = arith.constant dense<0.000000e+00> : vector<1x128xf32>
    %66 = tpu.matmul %40, %65, %cst_33 {dimension_numbers = #tpu.dot_dimension_numbers<[1], [0], [0], [1], [0, 0, 1, 1], [], []>} : vector<1x32xf32>, vector<32x128xf32>, vector<1x128xf32> -> vector<1x128xf32>
    %c1_34 = arith.constant 1 : index
    %c0_35 = arith.constant 0 : index
    %c0_36 = arith.constant 0 : index
    %67 = vector.load %arg2[%c1_34, %c0_35, %c0_36] : memref<5x32x128xf32, #tpu.memory_space<vmem>>, vector<1x32x128xf32>
    %68 = vector.shape_cast %67 : vector<1x32x128xf32> to vector<32x128xf32>
    %cst_37 = arith.constant dense<0.000000e+00> : vector<1x128xf32>
    %69 = tpu.matmul %9, %68, %cst_37 {dimension_numbers = #tpu.dot_dimension_numbers<[1], [0], [0], [1], [0, 0, 1, 1], [], []>} : vector<1x32xf32>, vector<32x128xf32>, vector<1x128xf32> -> vector<1x128xf32>
    %70 = arith.addf %66, %69 : vector<1x128xf32>
    %c1_38 = arith.constant 1 : index
    %c0_39 = arith.constant 0 : index
    %c0_40 = arith.constant 0 : index
    %71 = vector.load %arg3[%c1_38, %c0_39, %c0_40] : memref<5x1x128xf32, #tpu.memory_space<vmem>>, vector<1x1x128xf32>
    %72 = vector.shape_cast %71 : vector<1x1x128xf32> to vector<1x128xf32>
    %73 = arith.addf %70, %72 : vector<1x128xf32>
    %74 = arith.negf %73 : vector<1x128xf32>
    %75 = math.exp %74 : vector<1x128xf32>
    %cst_41 = arith.constant 1.000000e+00 : f32
    %76 = vector.broadcast %cst_41 : f32 to vector<1x128xf32>
    %77 = arith.addf %76, %75 : vector<1x128xf32>
    %78 = arith.divf %76, %77 : vector<1x128xf32>
    %79 = vector.extract_strided_slice %78 {offsets = [0, 0], sizes = [1, 32], strides = [1, 1]} : vector<1x128xf32> to vector<1x32xf32>
    %80 = vector.extract_strided_slice %78 {offsets = [0, 32], sizes = [1, 32], strides = [1, 1]} : vector<1x128xf32> to vector<1x32xf32>
    %81 = vector.extract_strided_slice %78 {offsets = [0, 64], sizes = [1, 32], strides = [1, 1]} : vector<1x128xf32> to vector<1x32xf32>
    %cst_42 = arith.constant 2.000000e+00 : f32
    %82 = vector.broadcast %cst_42 : f32 to vector<1x32xf32>
    %83 = arith.mulf %82, %81 : vector<1x32xf32>
    %cst_43 = arith.constant 1.000000e+00 : f32
    %84 = vector.broadcast %cst_43 : f32 to vector<1x32xf32>
    %85 = arith.subf %83, %84 : vector<1x32xf32>
    %86 = vector.extract_strided_slice %78 {offsets = [0, 96], sizes = [1, 32], strides = [1, 1]} : vector<1x128xf32> to vector<1x32xf32>
    %87 = arith.mulf %80, %14 : vector<1x32xf32>
    %88 = arith.mulf %79, %85 : vector<1x32xf32>
    %89 = arith.addf %87, %88 : vector<1x32xf32>
    %90 = math.tanh %89 : vector<1x32xf32>
    %91 = arith.mulf %86, %90 : vector<1x32xf32>
    %92 = vector.extract_strided_slice %7 {offsets = [2, 0], sizes = [1, 128], strides = [1, 1]} : vector<8x128xf32> to vector<1x128xf32>
    %c0_44 = arith.constant 0 : index
    %c0_45 = arith.constant 0 : index
    %c0_46 = arith.constant 0 : index
    %93 = vector.load %arg2[%c0_44, %c0_45, %c0_46] : memref<5x32x128xf32, #tpu.memory_space<vmem>>, vector<1x32x128xf32>
    %94 = vector.shape_cast %93 : vector<1x32x128xf32> to vector<32x128xf32>
    %cst_47 = arith.constant dense<0.000000e+00> : vector<1x128xf32>
    %95 = tpu.matmul %63, %94, %cst_47 {dimension_numbers = #tpu.dot_dimension_numbers<[1], [0], [0], [1], [0, 0, 1, 1], [], []>} : vector<1x32xf32>, vector<32x128xf32>, vector<1x128xf32> -> vector<1x128xf32>
    %96 = arith.addf %92, %95 : vector<1x128xf32>
    %97 = arith.negf %96 : vector<1x128xf32>
    %98 = math.exp %97 : vector<1x128xf32>
    %cst_48 = arith.constant 1.000000e+00 : f32
    %99 = vector.broadcast %cst_48 : f32 to vector<1x128xf32>
    %100 = arith.addf %99, %98 : vector<1x128xf32>
    %101 = arith.divf %99, %100 : vector<1x128xf32>
    %102 = vector.extract_strided_slice %101 {offsets = [0, 0], sizes = [1, 32], strides = [1, 1]} : vector<1x128xf32> to vector<1x32xf32>
    %103 = vector.extract_strided_slice %101 {offsets = [0, 32], sizes = [1, 32], strides = [1, 1]} : vector<1x128xf32> to vector<1x32xf32>
    %104 = vector.extract_strided_slice %101 {offsets = [0, 64], sizes = [1, 32], strides = [1, 1]} : vector<1x128xf32> to vector<1x32xf32>
    %cst_49 = arith.constant 2.000000e+00 : f32
    %105 = vector.broadcast %cst_49 : f32 to vector<1x32xf32>
    %106 = arith.mulf %105, %104 : vector<1x32xf32>
    %cst_50 = arith.constant 1.000000e+00 : f32
    %107 = vector.broadcast %cst_50 : f32 to vector<1x32xf32>
    %108 = arith.subf %106, %107 : vector<1x32xf32>
    %109 = vector.extract_strided_slice %101 {offsets = [0, 96], sizes = [1, 32], strides = [1, 1]} : vector<1x128xf32> to vector<1x32xf32>
    %110 = arith.mulf %103, %61 : vector<1x32xf32>
    %111 = arith.mulf %102, %108 : vector<1x32xf32>
    %112 = arith.addf %110, %111 : vector<1x32xf32>
    %113 = math.tanh %112 : vector<1x32xf32>
    %114 = arith.mulf %109, %113 : vector<1x32xf32>
    %c1_51 = arith.constant 1 : index
    %c0_52 = arith.constant 0 : index
    %c0_53 = arith.constant 0 : index
    %115 = vector.load %arg1[%c1_51, %c0_52, %c0_53] : memref<5x32x128xf32, #tpu.memory_space<vmem>>, vector<1x32x128xf32>
    %116 = vector.shape_cast %115 : vector<1x32x128xf32> to vector<32x128xf32>
    %cst_54 = arith.constant dense<0.000000e+00> : vector<1x128xf32>
    %117 = tpu.matmul %63, %116, %cst_54 {dimension_numbers = #tpu.dot_dimension_numbers<[1], [0], [0], [1], [0, 0, 1, 1], [], []>} : vector<1x32xf32>, vector<32x128xf32>, vector<1x128xf32> -> vector<1x128xf32>
    %c1_55 = arith.constant 1 : index
    %c0_56 = arith.constant 0 : index
    %c0_57 = arith.constant 0 : index
    %118 = vector.load %arg2[%c1_55, %c0_56, %c0_57] : memref<5x32x128xf32, #tpu.memory_space<vmem>>, vector<1x32x128xf32>
    %119 = vector.shape_cast %118 : vector<1x32x128xf32> to vector<32x128xf32>
    %cst_58 = arith.constant dense<0.000000e+00> : vector<1x128xf32>
    %120 = tpu.matmul %91, %119, %cst_58 {dimension_numbers = #tpu.dot_dimension_numbers<[1], [0], [0], [1], [0, 0, 1, 1], [], []>} : vector<1x32xf32>, vector<32x128xf32>, vector<1x128xf32> -> vector<1x128xf32>
    %121 = arith.addf %117, %120 : vector<1x128xf32>
    %c1_59 = arith.constant 1 : index
    %c0_60 = arith.constant 0 : index
    %c0_61 = arith.constant 0 : index
    %122 = vector.load %arg3[%c1_59, %c0_60, %c0_61] : memref<5x1x128xf32, #tpu.memory_space<vmem>>, vector<1x1x128xf32>
    %123 = vector.shape_cast %122 : vector<1x1x128xf32> to vector<1x128xf32>
    %124 = arith.addf %121, %123 : vector<1x128xf32>
    %125 = arith.negf %124 : vector<1x128xf32>
    %126 = math.exp %125 : vector<1x128xf32>
    %cst_62 = arith.constant 1.000000e+00 : f32
    %127 = vector.broadcast %cst_62 : f32 to vector<1x128xf32>
    %128 = arith.addf %127, %126 : vector<1x128xf32>
    %129 = arith.divf %127, %128 : vector<1x128xf32>
    %130 = vector.extract_strided_slice %129 {offsets = [0, 0], sizes = [1, 32], strides = [1, 1]} : vector<1x128xf32> to vector<1x32xf32>
    %131 = vector.extract_strided_slice %129 {offsets = [0, 32], sizes = [1, 32], strides = [1, 1]} : vector<1x128xf32> to vector<1x32xf32>
    %132 = vector.extract_strided_slice %129 {offsets = [0, 64], sizes = [1, 32], strides = [1, 1]} : vector<1x128xf32> to vector<1x32xf32>
    %cst_63 = arith.constant 2.000000e+00 : f32
    %133 = vector.broadcast %cst_63 : f32 to vector<1x32xf32>
    %134 = arith.mulf %133, %132 : vector<1x32xf32>
    %cst_64 = arith.constant 1.000000e+00 : f32
    %135 = vector.broadcast %cst_64 : f32 to vector<1x32xf32>
    %136 = arith.subf %134, %135 : vector<1x32xf32>
    %137 = vector.extract_strided_slice %129 {offsets = [0, 96], sizes = [1, 32], strides = [1, 1]} : vector<1x128xf32> to vector<1x32xf32>
    %138 = arith.mulf %131, %89 : vector<1x32xf32>
    %139 = arith.mulf %130, %136 : vector<1x32xf32>
    %140 = arith.addf %138, %139 : vector<1x32xf32>
    %141 = math.tanh %140 : vector<1x32xf32>
    %142 = arith.mulf %137, %141 : vector<1x32xf32>
    %c2 = arith.constant 2 : index
    %c0_65 = arith.constant 0 : index
    %c0_66 = arith.constant 0 : index
    %143 = vector.load %arg1[%c2, %c0_65, %c0_66] : memref<5x32x128xf32, #tpu.memory_space<vmem>>, vector<1x32x128xf32>
    %144 = vector.shape_cast %143 : vector<1x32x128xf32> to vector<32x128xf32>
    %cst_67 = arith.constant dense<0.000000e+00> : vector<1x128xf32>
    %145 = tpu.matmul %91, %144, %cst_67 {dimension_numbers = #tpu.dot_dimension_numbers<[1], [0], [0], [1], [0, 0, 1, 1], [], []>} : vector<1x32xf32>, vector<32x128xf32>, vector<1x128xf32> -> vector<1x128xf32>
    %c2_68 = arith.constant 2 : index
    %c0_69 = arith.constant 0 : index
    %c0_70 = arith.constant 0 : index
    %146 = vector.load %arg2[%c2_68, %c0_69, %c0_70] : memref<5x32x128xf32, #tpu.memory_space<vmem>>, vector<1x32x128xf32>
    %147 = vector.shape_cast %146 : vector<1x32x128xf32> to vector<32x128xf32>
    %cst_71 = arith.constant dense<0.000000e+00> : vector<1x128xf32>
    %148 = tpu.matmul %10, %147, %cst_71 {dimension_numbers = #tpu.dot_dimension_numbers<[1], [0], [0], [1], [0, 0, 1, 1], [], []>} : vector<1x32xf32>, vector<32x128xf32>, vector<1x128xf32> -> vector<1x128xf32>
    %149 = arith.addf %145, %148 : vector<1x128xf32>
    %c2_72 = arith.constant 2 : index
    %c0_73 = arith.constant 0 : index
    %c0_74 = arith.constant 0 : index
    %150 = vector.load %arg3[%c2_72, %c0_73, %c0_74] : memref<5x1x128xf32, #tpu.memory_space<vmem>>, vector<1x1x128xf32>
    %151 = vector.shape_cast %150 : vector<1x1x128xf32> to vector<1x128xf32>
    %152 = arith.addf %149, %151 : vector<1x128xf32>
    %153 = arith.negf %152 : vector<1x128xf32>
    %154 = math.exp %153 : vector<1x128xf32>
    %cst_75 = arith.constant 1.000000e+00 : f32
    %155 = vector.broadcast %cst_75 : f32 to vector<1x128xf32>
    %156 = arith.addf %155, %154 : vector<1x128xf32>
    %157 = arith.divf %155, %156 : vector<1x128xf32>
    %158 = vector.extract_strided_slice %157 {offsets = [0, 0], sizes = [1, 32], strides = [1, 1]} : vector<1x128xf32> to vector<1x32xf32>
    %159 = vector.extract_strided_slice %157 {offsets = [0, 32], sizes = [1, 32], strides = [1, 1]} : vector<1x128xf32> to vector<1x32xf32>
    %160 = vector.extract_strided_slice %157 {offsets = [0, 64], sizes = [1, 32], strides = [1, 1]} : vector<1x128xf32> to vector<1x32xf32>
    %cst_76 = arith.constant 2.000000e+00 : f32
    %161 = vector.broadcast %cst_76 : f32 to vector<1x32xf32>
    %162 = arith.mulf %161, %160 : vector<1x32xf32>
    %cst_77 = arith.constant 1.000000e+00 : f32
    %163 = vector.broadcast %cst_77 : f32 to vector<1x32xf32>
    %164 = arith.subf %162, %163 : vector<1x32xf32>
    %165 = vector.extract_strided_slice %157 {offsets = [0, 96], sizes = [1, 32], strides = [1, 1]} : vector<1x128xf32> to vector<1x32xf32>
    %166 = arith.mulf %159, %15 : vector<1x32xf32>
    %167 = arith.mulf %158, %164 : vector<1x32xf32>
    %168 = arith.addf %166, %167 : vector<1x32xf32>
    %169 = math.tanh %168 : vector<1x32xf32>
    %170 = arith.mulf %165, %169 : vector<1x32xf32>
    %171 = vector.extract_strided_slice %7 {offsets = [3, 0], sizes = [1, 128], strides = [1, 1]} : vector<8x128xf32> to vector<1x128xf32>
    %c0_78 = arith.constant 0 : index
    %c0_79 = arith.constant 0 : index
    %c0_80 = arith.constant 0 : index
    %172 = vector.load %arg2[%c0_78, %c0_79, %c0_80] : memref<5x32x128xf32, #tpu.memory_space<vmem>>, vector<1x32x128xf32>
    %173 = vector.shape_cast %172 : vector<1x32x128xf32> to vector<32x128xf32>
    %cst_81 = arith.constant dense<0.000000e+00> : vector<1x128xf32>
    %174 = tpu.matmul %114, %173, %cst_81 {dimension_numbers = #tpu.dot_dimension_numbers<[1], [0], [0], [1], [0, 0, 1, 1], [], []>} : vector<1x32xf32>, vector<32x128xf32>, vector<1x128xf32> -> vector<1x128xf32>
    %175 = arith.addf %171, %174 : vector<1x128xf32>
    %176 = arith.negf %175 : vector<1x128xf32>
    %177 = math.exp %176 : vector<1x128xf32>
    %cst_82 = arith.constant 1.000000e+00 : f32
    %178 = vector.broadcast %cst_82 : f32 to vector<1x128xf32>
    %179 = arith.addf %178, %177 : vector<1x128xf32>
    %180 = arith.divf %178, %179 : vector<1x128xf32>
    %181 = vector.extract_strided_slice %180 {offsets = [0, 0], sizes = [1, 32], strides = [1, 1]} : vector<1x128xf32> to vector<1x32xf32>
    %182 = vector.extract_strided_slice %180 {offsets = [0, 32], sizes = [1, 32], strides = [1, 1]} : vector<1x128xf32> to vector<1x32xf32>
    %183 = vector.extract_strided_slice %180 {offsets = [0, 64], sizes = [1, 32], strides = [1, 1]} : vector<1x128xf32> to vector<1x32xf32>
    %cst_83 = arith.constant 2.000000e+00 : f32
    %184 = vector.broadcast %cst_83 : f32 to vector<1x32xf32>
    %185 = arith.mulf %184, %183 : vector<1x32xf32>
    %cst_84 = arith.constant 1.000000e+00 : f32
    %186 = vector.broadcast %cst_84 : f32 to vector<1x32xf32>
    %187 = arith.subf %185, %186 : vector<1x32xf32>
    %188 = vector.extract_strided_slice %180 {offsets = [0, 96], sizes = [1, 32], strides = [1, 1]} : vector<1x128xf32> to vector<1x32xf32>
    %189 = arith.mulf %182, %112 : vector<1x32xf32>
    %190 = arith.mulf %181, %187 : vector<1x32xf32>
    %191 = arith.addf %189, %190 : vector<1x32xf32>
    %192 = math.tanh %191 : vector<1x32xf32>
    %193 = arith.mulf %188, %192 : vector<1x32xf32>
    %c1_85 = arith.constant 1 : index
    %c0_86 = arith.constant 0 : index
    %c0_87 = arith.constant 0 : index
    %194 = vector.load %arg1[%c1_85, %c0_86, %c0_87] : memref<5x32x128xf32, #tpu.memory_space<vmem>>, vector<1x32x128xf32>
    %195 = vector.shape_cast %194 : vector<1x32x128xf32> to vector<32x128xf32>
    %cst_88 = arith.constant dense<0.000000e+00> : vector<1x128xf32>
    %196 = tpu.matmul %114, %195, %cst_88 {dimension_numbers = #tpu.dot_dimension_numbers<[1], [0], [0], [1], [0, 0, 1, 1], [], []>} : vector<1x32xf32>, vector<32x128xf32>, vector<1x128xf32> -> vector<1x128xf32>
    %c1_89 = arith.constant 1 : index
    %c0_90 = arith.constant 0 : index
    %c0_91 = arith.constant 0 : index
    %197 = vector.load %arg2[%c1_89, %c0_90, %c0_91] : memref<5x32x128xf32, #tpu.memory_space<vmem>>, vector<1x32x128xf32>
    %198 = vector.shape_cast %197 : vector<1x32x128xf32> to vector<32x128xf32>
    %cst_92 = arith.constant dense<0.000000e+00> : vector<1x128xf32>
    %199 = tpu.matmul %142, %198, %cst_92 {dimension_numbers = #tpu.dot_dimension_numbers<[1], [0], [0], [1], [0, 0, 1, 1], [], []>} : vector<1x32xf32>, vector<32x128xf32>, vector<1x128xf32> -> vector<1x128xf32>
    %200 = arith.addf %196, %199 : vector<1x128xf32>
    %c1_93 = arith.constant 1 : index
    %c0_94 = arith.constant 0 : index
    %c0_95 = arith.constant 0 : index
    %201 = vector.load %arg3[%c1_93, %c0_94, %c0_95] : memref<5x1x128xf32, #tpu.memory_space<vmem>>, vector<1x1x128xf32>
    %202 = vector.shape_cast %201 : vector<1x1x128xf32> to vector<1x128xf32>
    %203 = arith.addf %200, %202 : vector<1x128xf32>
    %204 = arith.negf %203 : vector<1x128xf32>
    %205 = math.exp %204 : vector<1x128xf32>
    %cst_96 = arith.constant 1.000000e+00 : f32
    %206 = vector.broadcast %cst_96 : f32 to vector<1x128xf32>
    %207 = arith.addf %206, %205 : vector<1x128xf32>
    %208 = arith.divf %206, %207 : vector<1x128xf32>
    %209 = vector.extract_strided_slice %208 {offsets = [0, 0], sizes = [1, 32], strides = [1, 1]} : vector<1x128xf32> to vector<1x32xf32>
    %210 = vector.extract_strided_slice %208 {offsets = [0, 32], sizes = [1, 32], strides = [1, 1]} : vector<1x128xf32> to vector<1x32xf32>
    %211 = vector.extract_strided_slice %208 {offsets = [0, 64], sizes = [1, 32], strides = [1, 1]} : vector<1x128xf32> to vector<1x32xf32>
    %cst_97 = arith.constant 2.000000e+00 : f32
    %212 = vector.broadcast %cst_97 : f32 to vector<1x32xf32>
    %213 = arith.mulf %212, %211 : vector<1x32xf32>
    %cst_98 = arith.constant 1.000000e+00 : f32
    %214 = vector.broadcast %cst_98 : f32 to vector<1x32xf32>
    %215 = arith.subf %213, %214 : vector<1x32xf32>
    %216 = vector.extract_strided_slice %208 {offsets = [0, 96], sizes = [1, 32], strides = [1, 1]} : vector<1x128xf32> to vector<1x32xf32>
    %217 = arith.mulf %210, %140 : vector<1x32xf32>
    %218 = arith.mulf %209, %215 : vector<1x32xf32>
    %219 = arith.addf %217, %218 : vector<1x32xf32>
    %220 = math.tanh %219 : vector<1x32xf32>
    %221 = arith.mulf %216, %220 : vector<1x32xf32>
    %c2_99 = arith.constant 2 : index
    %c0_100 = arith.constant 0 : index
    %c0_101 = arith.constant 0 : index
    %222 = vector.load %arg1[%c2_99, %c0_100, %c0_101] : memref<5x32x128xf32, #tpu.memory_space<vmem>>, vector<1x32x128xf32>
    %223 = vector.shape_cast %222 : vector<1x32x128xf32> to vector<32x128xf32>
    %cst_102 = arith.constant dense<0.000000e+00> : vector<1x128xf32>
    %224 = tpu.matmul %142, %223, %cst_102 {dimension_numbers = #tpu.dot_dimension_numbers<[1], [0], [0], [1], [0, 0, 1, 1], [], []>} : vector<1x32xf32>, vector<32x128xf32>, vector<1x128xf32> -> vector<1x128xf32>
    %c2_103 = arith.constant 2 : index
    %c0_104 = arith.constant 0 : index
    %c0_105 = arith.constant 0 : index
    %225 = vector.load %arg2[%c2_103, %c0_104, %c0_105] : memref<5x32x128xf32, #tpu.memory_space<vmem>>, vector<1x32x128xf32>
    %226 = vector.shape_cast %225 : vector<1x32x128xf32> to vector<32x128xf32>
    %cst_106 = arith.constant dense<0.000000e+00> : vector<1x128xf32>
    %227 = tpu.matmul %170, %226, %cst_106 {dimension_numbers = #tpu.dot_dimension_numbers<[1], [0], [0], [1], [0, 0, 1, 1], [], []>} : vector<1x32xf32>, vector<32x128xf32>, vector<1x128xf32> -> vector<1x128xf32>
    %228 = arith.addf %224, %227 : vector<1x128xf32>
    %c2_107 = arith.constant 2 : index
    %c0_108 = arith.constant 0 : index
    %c0_109 = arith.constant 0 : index
    %229 = vector.load %arg3[%c2_107, %c0_108, %c0_109] : memref<5x1x128xf32, #tpu.memory_space<vmem>>, vector<1x1x128xf32>
    %230 = vector.shape_cast %229 : vector<1x1x128xf32> to vector<1x128xf32>
    %231 = arith.addf %228, %230 : vector<1x128xf32>
    %232 = arith.negf %231 : vector<1x128xf32>
    %233 = math.exp %232 : vector<1x128xf32>
    %cst_110 = arith.constant 1.000000e+00 : f32
    %234 = vector.broadcast %cst_110 : f32 to vector<1x128xf32>
    %235 = arith.addf %234, %233 : vector<1x128xf32>
    %236 = arith.divf %234, %235 : vector<1x128xf32>
    %237 = vector.extract_strided_slice %236 {offsets = [0, 0], sizes = [1, 32], strides = [1, 1]} : vector<1x128xf32> to vector<1x32xf32>
    %238 = vector.extract_strided_slice %236 {offsets = [0, 32], sizes = [1, 32], strides = [1, 1]} : vector<1x128xf32> to vector<1x32xf32>
    %239 = vector.extract_strided_slice %236 {offsets = [0, 64], sizes = [1, 32], strides = [1, 1]} : vector<1x128xf32> to vector<1x32xf32>
    %cst_111 = arith.constant 2.000000e+00 : f32
    %240 = vector.broadcast %cst_111 : f32 to vector<1x32xf32>
    %241 = arith.mulf %240, %239 : vector<1x32xf32>
    %cst_112 = arith.constant 1.000000e+00 : f32
    %242 = vector.broadcast %cst_112 : f32 to vector<1x32xf32>
    %243 = arith.subf %241, %242 : vector<1x32xf32>
    %244 = vector.extract_strided_slice %236 {offsets = [0, 96], sizes = [1, 32], strides = [1, 1]} : vector<1x128xf32> to vector<1x32xf32>
    %245 = arith.mulf %238, %168 : vector<1x32xf32>
    %246 = arith.mulf %237, %243 : vector<1x32xf32>
    %247 = arith.addf %245, %246 : vector<1x32xf32>
    %248 = math.tanh %247 : vector<1x32xf32>
    %249 = arith.mulf %244, %248 : vector<1x32xf32>
    %c3 = arith.constant 3 : index
    %c0_113 = arith.constant 0 : index
    %c0_114 = arith.constant 0 : index
    %250 = vector.load %arg1[%c3, %c0_113, %c0_114] : memref<5x32x128xf32, #tpu.memory_space<vmem>>, vector<1x32x128xf32>
    %251 = vector.shape_cast %250 : vector<1x32x128xf32> to vector<32x128xf32>
    %cst_115 = arith.constant dense<0.000000e+00> : vector<1x128xf32>
    %252 = tpu.matmul %170, %251, %cst_115 {dimension_numbers = #tpu.dot_dimension_numbers<[1], [0], [0], [1], [0, 0, 1, 1], [], []>} : vector<1x32xf32>, vector<32x128xf32>, vector<1x128xf32> -> vector<1x128xf32>
    %c3_116 = arith.constant 3 : index
    %c0_117 = arith.constant 0 : index
    %c0_118 = arith.constant 0 : index
    %253 = vector.load %arg2[%c3_116, %c0_117, %c0_118] : memref<5x32x128xf32, #tpu.memory_space<vmem>>, vector<1x32x128xf32>
    %254 = vector.shape_cast %253 : vector<1x32x128xf32> to vector<32x128xf32>
    %cst_119 = arith.constant dense<0.000000e+00> : vector<1x128xf32>
    %255 = tpu.matmul %11, %254, %cst_119 {dimension_numbers = #tpu.dot_dimension_numbers<[1], [0], [0], [1], [0, 0, 1, 1], [], []>} : vector<1x32xf32>, vector<32x128xf32>, vector<1x128xf32> -> vector<1x128xf32>
    %256 = arith.addf %252, %255 : vector<1x128xf32>
    %c3_120 = arith.constant 3 : index
    %c0_121 = arith.constant 0 : index
    %c0_122 = arith.constant 0 : index
    %257 = vector.load %arg3[%c3_120, %c0_121, %c0_122] : memref<5x1x128xf32, #tpu.memory_space<vmem>>, vector<1x1x128xf32>
    %258 = vector.shape_cast %257 : vector<1x1x128xf32> to vector<1x128xf32>
    %259 = arith.addf %256, %258 : vector<1x128xf32>
    %260 = arith.negf %259 : vector<1x128xf32>
    %261 = math.exp %260 : vector<1x128xf32>
    %cst_123 = arith.constant 1.000000e+00 : f32
    %262 = vector.broadcast %cst_123 : f32 to vector<1x128xf32>
    %263 = arith.addf %262, %261 : vector<1x128xf32>
    %264 = arith.divf %262, %263 : vector<1x128xf32>
    %265 = vector.extract_strided_slice %264 {offsets = [0, 0], sizes = [1, 32], strides = [1, 1]} : vector<1x128xf32> to vector<1x32xf32>
    %266 = vector.extract_strided_slice %264 {offsets = [0, 32], sizes = [1, 32], strides = [1, 1]} : vector<1x128xf32> to vector<1x32xf32>
    %267 = vector.extract_strided_slice %264 {offsets = [0, 64], sizes = [1, 32], strides = [1, 1]} : vector<1x128xf32> to vector<1x32xf32>
    %cst_124 = arith.constant 2.000000e+00 : f32
    %268 = vector.broadcast %cst_124 : f32 to vector<1x32xf32>
    %269 = arith.mulf %268, %267 : vector<1x32xf32>
    %cst_125 = arith.constant 1.000000e+00 : f32
    %270 = vector.broadcast %cst_125 : f32 to vector<1x32xf32>
    %271 = arith.subf %269, %270 : vector<1x32xf32>
    %272 = vector.extract_strided_slice %264 {offsets = [0, 96], sizes = [1, 32], strides = [1, 1]} : vector<1x128xf32> to vector<1x32xf32>
    %273 = arith.mulf %266, %16 : vector<1x32xf32>
    %274 = arith.mulf %265, %271 : vector<1x32xf32>
    %275 = arith.addf %273, %274 : vector<1x32xf32>
    %276 = math.tanh %275 : vector<1x32xf32>
    %277 = arith.mulf %272, %276 : vector<1x32xf32>
    %278 = vector.extract_strided_slice %7 {offsets = [4, 0], sizes = [1, 128], strides = [1, 1]} : vector<8x128xf32> to vector<1x128xf32>
    %c0_126 = arith.constant 0 : index
    %c0_127 = arith.constant 0 : index
    %c0_128 = arith.constant 0 : index
    %279 = vector.load %arg2[%c0_126, %c0_127, %c0_128] : memref<5x32x128xf32, #tpu.memory_space<vmem>>, vector<1x32x128xf32>
    %280 = vector.shape_cast %279 : vector<1x32x128xf32> to vector<32x128xf32>
    %cst_129 = arith.constant dense<0.000000e+00> : vector<1x128xf32>
    %281 = tpu.matmul %193, %280, %cst_129 {dimension_numbers = #tpu.dot_dimension_numbers<[1], [0], [0], [1], [0, 0, 1, 1], [], []>} : vector<1x32xf32>, vector<32x128xf32>, vector<1x128xf32> -> vector<1x128xf32>
    %282 = arith.addf %278, %281 : vector<1x128xf32>
    %283 = arith.negf %282 : vector<1x128xf32>
    %284 = math.exp %283 : vector<1x128xf32>
    %cst_130 = arith.constant 1.000000e+00 : f32
    %285 = vector.broadcast %cst_130 : f32 to vector<1x128xf32>
    %286 = arith.addf %285, %284 : vector<1x128xf32>
    %287 = arith.divf %285, %286 : vector<1x128xf32>
    %288 = vector.extract_strided_slice %287 {offsets = [0, 0], sizes = [1, 32], strides = [1, 1]} : vector<1x128xf32> to vector<1x32xf32>
    %289 = vector.extract_strided_slice %287 {offsets = [0, 32], sizes = [1, 32], strides = [1, 1]} : vector<1x128xf32> to vector<1x32xf32>
    %290 = vector.extract_strided_slice %287 {offsets = [0, 64], sizes = [1, 32], strides = [1, 1]} : vector<1x128xf32> to vector<1x32xf32>
    %cst_131 = arith.constant 2.000000e+00 : f32
    %291 = vector.broadcast %cst_131 : f32 to vector<1x32xf32>
    %292 = arith.mulf %291, %290 : vector<1x32xf32>
    %cst_132 = arith.constant 1.000000e+00 : f32
    %293 = vector.broadcast %cst_132 : f32 to vector<1x32xf32>
    %294 = arith.subf %292, %293 : vector<1x32xf32>
    %295 = vector.extract_strided_slice %287 {offsets = [0, 96], sizes = [1, 32], strides = [1, 1]} : vector<1x128xf32> to vector<1x32xf32>
    %296 = arith.mulf %289, %191 : vector<1x32xf32>
    %297 = arith.mulf %288, %294 : vector<1x32xf32>
    %298 = arith.addf %296, %297 : vector<1x32xf32>
    %299 = math.tanh %298 : vector<1x32xf32>
    %300 = arith.mulf %295, %299 : vector<1x32xf32>
    %c1_133 = arith.constant 1 : index
    %c0_134 = arith.constant 0 : index
    %c0_135 = arith.constant 0 : index
    %301 = vector.load %arg1[%c1_133, %c0_134, %c0_135] : memref<5x32x128xf32, #tpu.memory_space<vmem>>, vector<1x32x128xf32>
    %302 = vector.shape_cast %301 : vector<1x32x128xf32> to vector<32x128xf32>
    %cst_136 = arith.constant dense<0.000000e+00> : vector<1x128xf32>
    %303 = tpu.matmul %193, %302, %cst_136 {dimension_numbers = #tpu.dot_dimension_numbers<[1], [0], [0], [1], [0, 0, 1, 1], [], []>} : vector<1x32xf32>, vector<32x128xf32>, vector<1x128xf32> -> vector<1x128xf32>
    %c1_137 = arith.constant 1 : index
    %c0_138 = arith.constant 0 : index
    %c0_139 = arith.constant 0 : index
    %304 = vector.load %arg2[%c1_137, %c0_138, %c0_139] : memref<5x32x128xf32, #tpu.memory_space<vmem>>, vector<1x32x128xf32>
    %305 = vector.shape_cast %304 : vector<1x32x128xf32> to vector<32x128xf32>
    %cst_140 = arith.constant dense<0.000000e+00> : vector<1x128xf32>
    %306 = tpu.matmul %221, %305, %cst_140 {dimension_numbers = #tpu.dot_dimension_numbers<[1], [0], [0], [1], [0, 0, 1, 1], [], []>} : vector<1x32xf32>, vector<32x128xf32>, vector<1x128xf32> -> vector<1x128xf32>
    %307 = arith.addf %303, %306 : vector<1x128xf32>
    %c1_141 = arith.constant 1 : index
    %c0_142 = arith.constant 0 : index
    %c0_143 = arith.constant 0 : index
    %308 = vector.load %arg3[%c1_141, %c0_142, %c0_143] : memref<5x1x128xf32, #tpu.memory_space<vmem>>, vector<1x1x128xf32>
    %309 = vector.shape_cast %308 : vector<1x1x128xf32> to vector<1x128xf32>
    %310 = arith.addf %307, %309 : vector<1x128xf32>
    %311 = arith.negf %310 : vector<1x128xf32>
    %312 = math.exp %311 : vector<1x128xf32>
    %cst_144 = arith.constant 1.000000e+00 : f32
    %313 = vector.broadcast %cst_144 : f32 to vector<1x128xf32>
    %314 = arith.addf %313, %312 : vector<1x128xf32>
    %315 = arith.divf %313, %314 : vector<1x128xf32>
    %316 = vector.extract_strided_slice %315 {offsets = [0, 0], sizes = [1, 32], strides = [1, 1]} : vector<1x128xf32> to vector<1x32xf32>
    %317 = vector.extract_strided_slice %315 {offsets = [0, 32], sizes = [1, 32], strides = [1, 1]} : vector<1x128xf32> to vector<1x32xf32>
    %318 = vector.extract_strided_slice %315 {offsets = [0, 64], sizes = [1, 32], strides = [1, 1]} : vector<1x128xf32> to vector<1x32xf32>
    %cst_145 = arith.constant 2.000000e+00 : f32
    %319 = vector.broadcast %cst_145 : f32 to vector<1x32xf32>
    %320 = arith.mulf %319, %318 : vector<1x32xf32>
    %cst_146 = arith.constant 1.000000e+00 : f32
    %321 = vector.broadcast %cst_146 : f32 to vector<1x32xf32>
    %322 = arith.subf %320, %321 : vector<1x32xf32>
    %323 = vector.extract_strided_slice %315 {offsets = [0, 96], sizes = [1, 32], strides = [1, 1]} : vector<1x128xf32> to vector<1x32xf32>
    %324 = arith.mulf %317, %219 : vector<1x32xf32>
    %325 = arith.mulf %316, %322 : vector<1x32xf32>
    %326 = arith.addf %324, %325 : vector<1x32xf32>
    %327 = math.tanh %326 : vector<1x32xf32>
    %328 = arith.mulf %323, %327 : vector<1x32xf32>
    %c2_147 = arith.constant 2 : index
    %c0_148 = arith.constant 0 : index
    %c0_149 = arith.constant 0 : index
    %329 = vector.load %arg1[%c2_147, %c0_148, %c0_149] : memref<5x32x128xf32, #tpu.memory_space<vmem>>, vector<1x32x128xf32>
    %330 = vector.shape_cast %329 : vector<1x32x128xf32> to vector<32x128xf32>
    %cst_150 = arith.constant dense<0.000000e+00> : vector<1x128xf32>
    %331 = tpu.matmul %221, %330, %cst_150 {dimension_numbers = #tpu.dot_dimension_numbers<[1], [0], [0], [1], [0, 0, 1, 1], [], []>} : vector<1x32xf32>, vector<32x128xf32>, vector<1x128xf32> -> vector<1x128xf32>
    %c2_151 = arith.constant 2 : index
    %c0_152 = arith.constant 0 : index
    %c0_153 = arith.constant 0 : index
    %332 = vector.load %arg2[%c2_151, %c0_152, %c0_153] : memref<5x32x128xf32, #tpu.memory_space<vmem>>, vector<1x32x128xf32>
    %333 = vector.shape_cast %332 : vector<1x32x128xf32> to vector<32x128xf32>
    %cst_154 = arith.constant dense<0.000000e+00> : vector<1x128xf32>
    %334 = tpu.matmul %249, %333, %cst_154 {dimension_numbers = #tpu.dot_dimension_numbers<[1], [0], [0], [1], [0, 0, 1, 1], [], []>} : vector<1x32xf32>, vector<32x128xf32>, vector<1x128xf32> -> vector<1x128xf32>
    %335 = arith.addf %331, %334 : vector<1x128xf32>
    %c2_155 = arith.constant 2 : index
    %c0_156 = arith.constant 0 : index
    %c0_157 = arith.constant 0 : index
    %336 = vector.load %arg3[%c2_155, %c0_156, %c0_157] : memref<5x1x128xf32, #tpu.memory_space<vmem>>, vector<1x1x128xf32>
    %337 = vector.shape_cast %336 : vector<1x1x128xf32> to vector<1x128xf32>
    %338 = arith.addf %335, %337 : vector<1x128xf32>
    %339 = arith.negf %338 : vector<1x128xf32>
    %340 = math.exp %339 : vector<1x128xf32>
    %cst_158 = arith.constant 1.000000e+00 : f32
    %341 = vector.broadcast %cst_158 : f32 to vector<1x128xf32>
    %342 = arith.addf %341, %340 : vector<1x128xf32>
    %343 = arith.divf %341, %342 : vector<1x128xf32>
    %344 = vector.extract_strided_slice %343 {offsets = [0, 0], sizes = [1, 32], strides = [1, 1]} : vector<1x128xf32> to vector<1x32xf32>
    %345 = vector.extract_strided_slice %343 {offsets = [0, 32], sizes = [1, 32], strides = [1, 1]} : vector<1x128xf32> to vector<1x32xf32>
    %346 = vector.extract_strided_slice %343 {offsets = [0, 64], sizes = [1, 32], strides = [1, 1]} : vector<1x128xf32> to vector<1x32xf32>
    %cst_159 = arith.constant 2.000000e+00 : f32
    %347 = vector.broadcast %cst_159 : f32 to vector<1x32xf32>
    %348 = arith.mulf %347, %346 : vector<1x32xf32>
    %cst_160 = arith.constant 1.000000e+00 : f32
    %349 = vector.broadcast %cst_160 : f32 to vector<1x32xf32>
    %350 = arith.subf %348, %349 : vector<1x32xf32>
    %351 = vector.extract_strided_slice %343 {offsets = [0, 96], sizes = [1, 32], strides = [1, 1]} : vector<1x128xf32> to vector<1x32xf32>
    %352 = arith.mulf %345, %247 : vector<1x32xf32>
    %353 = arith.mulf %344, %350 : vector<1x32xf32>
    %354 = arith.addf %352, %353 : vector<1x32xf32>
    %355 = math.tanh %354 : vector<1x32xf32>
    %356 = arith.mulf %351, %355 : vector<1x32xf32>
    %c3_161 = arith.constant 3 : index
    %c0_162 = arith.constant 0 : index
    %c0_163 = arith.constant 0 : index
    %357 = vector.load %arg1[%c3_161, %c0_162, %c0_163] : memref<5x32x128xf32, #tpu.memory_space<vmem>>, vector<1x32x128xf32>
    %358 = vector.shape_cast %357 : vector<1x32x128xf32> to vector<32x128xf32>
    %cst_164 = arith.constant dense<0.000000e+00> : vector<1x128xf32>
    %359 = tpu.matmul %249, %358, %cst_164 {dimension_numbers = #tpu.dot_dimension_numbers<[1], [0], [0], [1], [0, 0, 1, 1], [], []>} : vector<1x32xf32>, vector<32x128xf32>, vector<1x128xf32> -> vector<1x128xf32>
    %c3_165 = arith.constant 3 : index
    %c0_166 = arith.constant 0 : index
    %c0_167 = arith.constant 0 : index
    %360 = vector.load %arg2[%c3_165, %c0_166, %c0_167] : memref<5x32x128xf32, #tpu.memory_space<vmem>>, vector<1x32x128xf32>
    %361 = vector.shape_cast %360 : vector<1x32x128xf32> to vector<32x128xf32>
    %cst_168 = arith.constant dense<0.000000e+00> : vector<1x128xf32>
    %362 = tpu.matmul %277, %361, %cst_168 {dimension_numbers = #tpu.dot_dimension_numbers<[1], [0], [0], [1], [0, 0, 1, 1], [], []>} : vector<1x32xf32>, vector<32x128xf32>, vector<1x128xf32> -> vector<1x128xf32>
    %363 = arith.addf %359, %362 : vector<1x128xf32>
    %c3_169 = arith.constant 3 : index
    %c0_170 = arith.constant 0 : index
    %c0_171 = arith.constant 0 : index
    %364 = vector.load %arg3[%c3_169, %c0_170, %c0_171] : memref<5x1x128xf32, #tpu.memory_space<vmem>>, vector<1x1x128xf32>
    %365 = vector.shape_cast %364 : vector<1x1x128xf32> to vector<1x128xf32>
    %366 = arith.addf %363, %365 : vector<1x128xf32>
    %367 = arith.negf %366 : vector<1x128xf32>
    %368 = math.exp %367 : vector<1x128xf32>
    %cst_172 = arith.constant 1.000000e+00 : f32
    %369 = vector.broadcast %cst_172 : f32 to vector<1x128xf32>
    %370 = arith.addf %369, %368 : vector<1x128xf32>
    %371 = arith.divf %369, %370 : vector<1x128xf32>
    %372 = vector.extract_strided_slice %371 {offsets = [0, 0], sizes = [1, 32], strides = [1, 1]} : vector<1x128xf32> to vector<1x32xf32>
    %373 = vector.extract_strided_slice %371 {offsets = [0, 32], sizes = [1, 32], strides = [1, 1]} : vector<1x128xf32> to vector<1x32xf32>
    %374 = vector.extract_strided_slice %371 {offsets = [0, 64], sizes = [1, 32], strides = [1, 1]} : vector<1x128xf32> to vector<1x32xf32>
    %cst_173 = arith.constant 2.000000e+00 : f32
    %375 = vector.broadcast %cst_173 : f32 to vector<1x32xf32>
    %376 = arith.mulf %375, %374 : vector<1x32xf32>
    %cst_174 = arith.constant 1.000000e+00 : f32
    %377 = vector.broadcast %cst_174 : f32 to vector<1x32xf32>
    %378 = arith.subf %376, %377 : vector<1x32xf32>
    %379 = vector.extract_strided_slice %371 {offsets = [0, 96], sizes = [1, 32], strides = [1, 1]} : vector<1x128xf32> to vector<1x32xf32>
    %380 = arith.mulf %373, %275 : vector<1x32xf32>
    %381 = arith.mulf %372, %378 : vector<1x32xf32>
    %382 = arith.addf %380, %381 : vector<1x32xf32>
    %383 = math.tanh %382 : vector<1x32xf32>
    %384 = arith.mulf %379, %383 : vector<1x32xf32>
    %c4 = arith.constant 4 : index
    %c0_175 = arith.constant 0 : index
    %c0_176 = arith.constant 0 : index
    %385 = vector.load %arg1[%c4, %c0_175, %c0_176] : memref<5x32x128xf32, #tpu.memory_space<vmem>>, vector<1x32x128xf32>
    %386 = vector.shape_cast %385 : vector<1x32x128xf32> to vector<32x128xf32>
    %cst_177 = arith.constant dense<0.000000e+00> : vector<1x128xf32>
    %387 = tpu.matmul %277, %386, %cst_177 {dimension_numbers = #tpu.dot_dimension_numbers<[1], [0], [0], [1], [0, 0, 1, 1], [], []>} : vector<1x32xf32>, vector<32x128xf32>, vector<1x128xf32> -> vector<1x128xf32>
    %c4_178 = arith.constant 4 : index
    %c0_179 = arith.constant 0 : index
    %c0_180 = arith.constant 0 : index
    %388 = vector.load %arg2[%c4_178, %c0_179, %c0_180] : memref<5x32x128xf32, #tpu.memory_space<vmem>>, vector<1x32x128xf32>
    %389 = vector.shape_cast %388 : vector<1x32x128xf32> to vector<32x128xf32>
    %cst_181 = arith.constant dense<0.000000e+00> : vector<1x128xf32>
    %390 = tpu.matmul %12, %389, %cst_181 {dimension_numbers = #tpu.dot_dimension_numbers<[1], [0], [0], [1], [0, 0, 1, 1], [], []>} : vector<1x32xf32>, vector<32x128xf32>, vector<1x128xf32> -> vector<1x128xf32>
    %391 = arith.addf %387, %390 : vector<1x128xf32>
    %c4_182 = arith.constant 4 : index
    %c0_183 = arith.constant 0 : index
    %c0_184 = arith.constant 0 : index
    %392 = vector.load %arg3[%c4_182, %c0_183, %c0_184] : memref<5x1x128xf32, #tpu.memory_space<vmem>>, vector<1x1x128xf32>
    %393 = vector.shape_cast %392 : vector<1x1x128xf32> to vector<1x128xf32>
    %394 = arith.addf %391, %393 : vector<1x128xf32>
    %395 = arith.negf %394 : vector<1x128xf32>
    %396 = math.exp %395 : vector<1x128xf32>
    %cst_185 = arith.constant 1.000000e+00 : f32
    %397 = vector.broadcast %cst_185 : f32 to vector<1x128xf32>
    %398 = arith.addf %397, %396 : vector<1x128xf32>
    %399 = arith.divf %397, %398 : vector<1x128xf32>
    %400 = vector.extract_strided_slice %399 {offsets = [0, 0], sizes = [1, 32], strides = [1, 1]} : vector<1x128xf32> to vector<1x32xf32>
    %401 = vector.extract_strided_slice %399 {offsets = [0, 32], sizes = [1, 32], strides = [1, 1]} : vector<1x128xf32> to vector<1x32xf32>
    %402 = vector.extract_strided_slice %399 {offsets = [0, 64], sizes = [1, 32], strides = [1, 1]} : vector<1x128xf32> to vector<1x32xf32>
    %cst_186 = arith.constant 2.000000e+00 : f32
    %403 = vector.broadcast %cst_186 : f32 to vector<1x32xf32>
    %404 = arith.mulf %403, %402 : vector<1x32xf32>
    %cst_187 = arith.constant 1.000000e+00 : f32
    %405 = vector.broadcast %cst_187 : f32 to vector<1x32xf32>
    %406 = arith.subf %404, %405 : vector<1x32xf32>
    %407 = vector.extract_strided_slice %399 {offsets = [0, 96], sizes = [1, 32], strides = [1, 1]} : vector<1x128xf32> to vector<1x32xf32>
    %408 = arith.mulf %401, %17 : vector<1x32xf32>
    %409 = arith.mulf %400, %406 : vector<1x32xf32>
    %410 = arith.addf %408, %409 : vector<1x32xf32>
    %411 = math.tanh %410 : vector<1x32xf32>
    %412 = arith.mulf %407, %411 : vector<1x32xf32>
    %c0_188 = arith.constant 0 : index
    %c0_189 = arith.constant 0 : index
    %413 = vector.load %arg4[%c0_188, %c0_189] : memref<32x128xf32, #tpu.memory_space<vmem>>, vector<32x128xf32>
    %cst_190 = arith.constant dense<0.000000e+00> : vector<1x128xf32>
    %414 = tpu.matmul %412, %413, %cst_190 {dimension_numbers = #tpu.dot_dimension_numbers<[1], [0], [0], [1], [0, 0, 1, 1], [], []>} : vector<1x32xf32>, vector<32x128xf32>, vector<1x128xf32> -> vector<1x128xf32>
    %c0_191 = arith.constant 0 : index
    %c0_192 = arith.constant 0 : index
    %415 = vector.load %arg5[%c0_191, %c0_192] : memref<1x128xf32, #tpu.memory_space<vmem>>, vector<1x128xf32>
    %416 = arith.addf %414, %415 : vector<1x128xf32>
    %c0_193 = arith.constant 0 : index
    %c0_194 = arith.constant 0 : index
    %417 = vector.load %arg6[%c0_193, %c0_194] : memref<8x128xf32, #tpu.memory_space<vmem>>, vector<1x128xf32>
    tpu.vector_store %arg6[%c0_193, %c0_194], %416 {strides = array<i32>} : memref<8x128xf32, #tpu.memory_space<vmem>>, vector<1x128xf32>,
    %418 = vector.extract_strided_slice %7 {offsets = [5, 0], sizes = [1, 128], strides = [1, 1]} : vector<8x128xf32> to vector<1x128xf32>
    %c0_195 = arith.constant 0 : index
    %c0_196 = arith.constant 0 : index
    %c0_197 = arith.constant 0 : index
    %419 = vector.load %arg2[%c0_195, %c0_196, %c0_197] : memref<5x32x128xf32, #tpu.memory_space<vmem>>, vector<1x32x128xf32>
    %420 = vector.shape_cast %419 : vector<1x32x128xf32> to vector<32x128xf32>
    %cst_198 = arith.constant dense<0.000000e+00> : vector<1x128xf32>
    %421 = tpu.matmul %300, %420, %cst_198 {dimension_numbers = #tpu.dot_dimension_numbers<[1], [0], [0], [1], [0, 0, 1, 1], [], []>} : vector<1x32xf32>, vector<32x128xf32>, vector<1x128xf32> -> vector<1x128xf32>
    %422 = arith.addf %418, %421 : vector<1x128xf32>
    %423 = arith.negf %422 : vector<1x128xf32>
    %424 = math.exp %423 : vector<1x128xf32>
    %cst_199 = arith.constant 1.000000e+00 : f32
    %425 = vector.broadcast %cst_199 : f32 to vector<1x128xf32>
    %426 = arith.addf %425, %424 : vector<1x128xf32>
    %427 = arith.divf %425, %426 : vector<1x128xf32>
    %428 = vector.extract_strided_slice %427 {offsets = [0, 0], sizes = [1, 32], strides = [1, 1]} : vector<1x128xf32> to vector<1x32xf32>
    %429 = vector.extract_strided_slice %427 {offsets = [0, 32], sizes = [1, 32], strides = [1, 1]} : vector<1x128xf32> to vector<1x32xf32>
    %430 = vector.extract_strided_slice %427 {offsets = [0, 64], sizes = [1, 32], strides = [1, 1]} : vector<1x128xf32> to vector<1x32xf32>
    %cst_200 = arith.constant 2.000000e+00 : f32
    %431 = vector.broadcast %cst_200 : f32 to vector<1x32xf32>
    %432 = arith.mulf %431, %430 : vector<1x32xf32>
    %cst_201 = arith.constant 1.000000e+00 : f32
    %433 = vector.broadcast %cst_201 : f32 to vector<1x32xf32>
    %434 = arith.subf %432, %433 : vector<1x32xf32>
    %435 = vector.extract_strided_slice %427 {offsets = [0, 96], sizes = [1, 32], strides = [1, 1]} : vector<1x128xf32> to vector<1x32xf32>
    %436 = arith.mulf %429, %298 : vector<1x32xf32>
    %437 = arith.mulf %428, %434 : vector<1x32xf32>
    %438 = arith.addf %436, %437 : vector<1x32xf32>
    %439 = math.tanh %438 : vector<1x32xf32>
    %440 = arith.mulf %435, %439 : vector<1x32xf32>
    %c1_202 = arith.constant 1 : index
    %c0_203 = arith.constant 0 : index
    %c0_204 = arith.constant 0 : index
    %441 = vector.load %arg1[%c1_202, %c0_203, %c0_204] : memref<5x32x128xf32, #tpu.memory_space<vmem>>, vector<1x32x128xf32>
    %442 = vector.shape_cast %441 : vector<1x32x128xf32> to vector<32x128xf32>
    %cst_205 = arith.constant dense<0.000000e+00> : vector<1x128xf32>
    %443 = tpu.matmul %300, %442, %cst_205 {dimension_numbers = #tpu.dot_dimension_numbers<[1], [0], [0], [1], [0, 0, 1, 1], [], []>} : vector<1x32xf32>, vector<32x128xf32>, vector<1x128xf32> -> vector<1x128xf32>
    %c1_206 = arith.constant 1 : index
    %c0_207 = arith.constant 0 : index
    %c0_208 = arith.constant 0 : index
    %444 = vector.load %arg2[%c1_206, %c0_207, %c0_208] : memref<5x32x128xf32, #tpu.memory_space<vmem>>, vector<1x32x128xf32>
    %445 = vector.shape_cast %444 : vector<1x32x128xf32> to vector<32x128xf32>
    %cst_209 = arith.constant dense<0.000000e+00> : vector<1x128xf32>
    %446 = tpu.matmul %328, %445, %cst_209 {dimension_numbers = #tpu.dot_dimension_numbers<[1], [0], [0], [1], [0, 0, 1, 1], [], []>} : vector<1x32xf32>, vector<32x128xf32>, vector<1x128xf32> -> vector<1x128xf32>
    %447 = arith.addf %443, %446 : vector<1x128xf32>
    %c1_210 = arith.constant 1 : index
    %c0_211 = arith.constant 0 : index
    %c0_212 = arith.constant 0 : index
    %448 = vector.load %arg3[%c1_210, %c0_211, %c0_212] : memref<5x1x128xf32, #tpu.memory_space<vmem>>, vector<1x1x128xf32>
    %449 = vector.shape_cast %448 : vector<1x1x128xf32> to vector<1x128xf32>
    %450 = arith.addf %447, %449 : vector<1x128xf32>
    %451 = arith.negf %450 : vector<1x128xf32>
    %452 = math.exp %451 : vector<1x128xf32>
    %cst_213 = arith.constant 1.000000e+00 : f32
    %453 = vector.broadcast %cst_213 : f32 to vector<1x128xf32>
    %454 = arith.addf %453, %452 : vector<1x128xf32>
    %455 = arith.divf %453, %454 : vector<1x128xf32>
    %456 = vector.extract_strided_slice %455 {offsets = [0, 0], sizes = [1, 32], strides = [1, 1]} : vector<1x128xf32> to vector<1x32xf32>
    %457 = vector.extract_strided_slice %455 {offsets = [0, 32], sizes = [1, 32], strides = [1, 1]} : vector<1x128xf32> to vector<1x32xf32>
    %458 = vector.extract_strided_slice %455 {offsets = [0, 64], sizes = [1, 32], strides = [1, 1]} : vector<1x128xf32> to vector<1x32xf32>
    %cst_214 = arith.constant 2.000000e+00 : f32
    %459 = vector.broadcast %cst_214 : f32 to vector<1x32xf32>
    %460 = arith.mulf %459, %458 : vector<1x32xf32>
    %cst_215 = arith.constant 1.000000e+00 : f32
    %461 = vector.broadcast %cst_215 : f32 to vector<1x32xf32>
    %462 = arith.subf %460, %461 : vector<1x32xf32>
    %463 = vector.extract_strided_slice %455 {offsets = [0, 96], sizes = [1, 32], strides = [1, 1]} : vector<1x128xf32> to vector<1x32xf32>
    %464 = arith.mulf %457, %326 : vector<1x32xf32>
    %465 = arith.mulf %456, %462 : vector<1x32xf32>
    %466 = arith.addf %464, %465 : vector<1x32xf32>
    %467 = math.tanh %466 : vector<1x32xf32>
    %468 = arith.mulf %463, %467 : vector<1x32xf32>
    %c2_216 = arith.constant 2 : index
    %c0_217 = arith.constant 0 : index
    %c0_218 = arith.constant 0 : index
    %469 = vector.load %arg1[%c2_216, %c0_217, %c0_218] : memref<5x32x128xf32, #tpu.memory_space<vmem>>, vector<1x32x128xf32>
    %470 = vector.shape_cast %469 : vector<1x32x128xf32> to vector<32x128xf32>
    %cst_219 = arith.constant dense<0.000000e+00> : vector<1x128xf32>
    %471 = tpu.matmul %328, %470, %cst_219 {dimension_numbers = #tpu.dot_dimension_numbers<[1], [0], [0], [1], [0, 0, 1, 1], [], []>} : vector<1x32xf32>, vector<32x128xf32>, vector<1x128xf32> -> vector<1x128xf32>
    %c2_220 = arith.constant 2 : index
    %c0_221 = arith.constant 0 : index
    %c0_222 = arith.constant 0 : index
    %472 = vector.load %arg2[%c2_220, %c0_221, %c0_222] : memref<5x32x128xf32, #tpu.memory_space<vmem>>, vector<1x32x128xf32>
    %473 = vector.shape_cast %472 : vector<1x32x128xf32> to vector<32x128xf32>
    %cst_223 = arith.constant dense<0.000000e+00> : vector<1x128xf32>
    %474 = tpu.matmul %356, %473, %cst_223 {dimension_numbers = #tpu.dot_dimension_numbers<[1], [0], [0], [1], [0, 0, 1, 1], [], []>} : vector<1x32xf32>, vector<32x128xf32>, vector<1x128xf32> -> vector<1x128xf32>
    %475 = arith.addf %471, %474 : vector<1x128xf32>
    %c2_224 = arith.constant 2 : index
    %c0_225 = arith.constant 0 : index
    %c0_226 = arith.constant 0 : index
    %476 = vector.load %arg3[%c2_224, %c0_225, %c0_226] : memref<5x1x128xf32, #tpu.memory_space<vmem>>, vector<1x1x128xf32>
    %477 = vector.shape_cast %476 : vector<1x1x128xf32> to vector<1x128xf32>
    %478 = arith.addf %475, %477 : vector<1x128xf32>
    %479 = arith.negf %478 : vector<1x128xf32>
    %480 = math.exp %479 : vector<1x128xf32>
    %cst_227 = arith.constant 1.000000e+00 : f32
    %481 = vector.broadcast %cst_227 : f32 to vector<1x128xf32>
    %482 = arith.addf %481, %480 : vector<1x128xf32>
    %483 = arith.divf %481, %482 : vector<1x128xf32>
    %484 = vector.extract_strided_slice %483 {offsets = [0, 0], sizes = [1, 32], strides = [1, 1]} : vector<1x128xf32> to vector<1x32xf32>
    %485 = vector.extract_strided_slice %483 {offsets = [0, 32], sizes = [1, 32], strides = [1, 1]} : vector<1x128xf32> to vector<1x32xf32>
    %486 = vector.extract_strided_slice %483 {offsets = [0, 64], sizes = [1, 32], strides = [1, 1]} : vector<1x128xf32> to vector<1x32xf32>
    %cst_228 = arith.constant 2.000000e+00 : f32
    %487 = vector.broadcast %cst_228 : f32 to vector<1x32xf32>
    %488 = arith.mulf %487, %486 : vector<1x32xf32>
    %cst_229 = arith.constant 1.000000e+00 : f32
    %489 = vector.broadcast %cst_229 : f32 to vector<1x32xf32>
    %490 = arith.subf %488, %489 : vector<1x32xf32>
    %491 = vector.extract_strided_slice %483 {offsets = [0, 96], sizes = [1, 32], strides = [1, 1]} : vector<1x128xf32> to vector<1x32xf32>
    %492 = arith.mulf %485, %354 : vector<1x32xf32>
    %493 = arith.mulf %484, %490 : vector<1x32xf32>
    %494 = arith.addf %492, %493 : vector<1x32xf32>
    %495 = math.tanh %494 : vector<1x32xf32>
    %496 = arith.mulf %491, %495 : vector<1x32xf32>
    %c3_230 = arith.constant 3 : index
    %c0_231 = arith.constant 0 : index
    %c0_232 = arith.constant 0 : index
    %497 = vector.load %arg1[%c3_230, %c0_231, %c0_232] : memref<5x32x128xf32, #tpu.memory_space<vmem>>, vector<1x32x128xf32>
    %498 = vector.shape_cast %497 : vector<1x32x128xf32> to vector<32x128xf32>
    %cst_233 = arith.constant dense<0.000000e+00> : vector<1x128xf32>
    %499 = tpu.matmul %356, %498, %cst_233 {dimension_numbers = #tpu.dot_dimension_numbers<[1], [0], [0], [1], [0, 0, 1, 1], [], []>} : vector<1x32xf32>, vector<32x128xf32>, vector<1x128xf32> -> vector<1x128xf32>
    %c3_234 = arith.constant 3 : index
    %c0_235 = arith.constant 0 : index
    %c0_236 = arith.constant 0 : index
    %500 = vector.load %arg2[%c3_234, %c0_235, %c0_236] : memref<5x32x128xf32, #tpu.memory_space<vmem>>, vector<1x32x128xf32>
    %501 = vector.shape_cast %500 : vector<1x32x128xf32> to vector<32x128xf32>
    %cst_237 = arith.constant dense<0.000000e+00> : vector<1x128xf32>
    %502 = tpu.matmul %384, %501, %cst_237 {dimension_numbers = #tpu.dot_dimension_numbers<[1], [0], [0], [1], [0, 0, 1, 1], [], []>} : vector<1x32xf32>, vector<32x128xf32>, vector<1x128xf32> -> vector<1x128xf32>
    %503 = arith.addf %499, %502 : vector<1x128xf32>
    %c3_238 = arith.constant 3 : index
    %c0_239 = arith.constant 0 : index
    %c0_240 = arith.constant 0 : index
    %504 = vector.load %arg3[%c3_238, %c0_239, %c0_240] : memref<5x1x128xf32, #tpu.memory_space<vmem>>, vector<1x1x128xf32>
    %505 = vector.shape_cast %504 : vector<1x1x128xf32> to vector<1x128xf32>
    %506 = arith.addf %503, %505 : vector<1x128xf32>
    %507 = arith.negf %506 : vector<1x128xf32>
    %508 = math.exp %507 : vector<1x128xf32>
    %cst_241 = arith.constant 1.000000e+00 : f32
    %509 = vector.broadcast %cst_241 : f32 to vector<1x128xf32>
    %510 = arith.addf %509, %508 : vector<1x128xf32>
    %511 = arith.divf %509, %510 : vector<1x128xf32>
    %512 = vector.extract_strided_slice %511 {offsets = [0, 0], sizes = [1, 32], strides = [1, 1]} : vector<1x128xf32> to vector<1x32xf32>
    %513 = vector.extract_strided_slice %511 {offsets = [0, 32], sizes = [1, 32], strides = [1, 1]} : vector<1x128xf32> to vector<1x32xf32>
    %514 = vector.extract_strided_slice %511 {offsets = [0, 64], sizes = [1, 32], strides = [1, 1]} : vector<1x128xf32> to vector<1x32xf32>
    %cst_242 = arith.constant 2.000000e+00 : f32
    %515 = vector.broadcast %cst_242 : f32 to vector<1x32xf32>
    %516 = arith.mulf %515, %514 : vector<1x32xf32>
    %cst_243 = arith.constant 1.000000e+00 : f32
    %517 = vector.broadcast %cst_243 : f32 to vector<1x32xf32>
    %518 = arith.subf %516, %517 : vector<1x32xf32>
    %519 = vector.extract_strided_slice %511 {offsets = [0, 96], sizes = [1, 32], strides = [1, 1]} : vector<1x128xf32> to vector<1x32xf32>
    %520 = arith.mulf %513, %382 : vector<1x32xf32>
    %521 = arith.mulf %512, %518 : vector<1x32xf32>
    %522 = arith.addf %520, %521 : vector<1x32xf32>
    %523 = math.tanh %522 : vector<1x32xf32>
    %524 = arith.mulf %519, %523 : vector<1x32xf32>
    %c4_244 = arith.constant 4 : index
    %c0_245 = arith.constant 0 : index
    %c0_246 = arith.constant 0 : index
    %525 = vector.load %arg1[%c4_244, %c0_245, %c0_246] : memref<5x32x128xf32, #tpu.memory_space<vmem>>, vector<1x32x128xf32>
    %526 = vector.shape_cast %525 : vector<1x32x128xf32> to vector<32x128xf32>
    %cst_247 = arith.constant dense<0.000000e+00> : vector<1x128xf32>
    %527 = tpu.matmul %384, %526, %cst_247 {dimension_numbers = #tpu.dot_dimension_numbers<[1], [0], [0], [1], [0, 0, 1, 1], [], []>} : vector<1x32xf32>, vector<32x128xf32>, vector<1x128xf32> -> vector<1x128xf32>
    %c4_248 = arith.constant 4 : index
    %c0_249 = arith.constant 0 : index
    %c0_250 = arith.constant 0 : index
    %528 = vector.load %arg2[%c4_248, %c0_249, %c0_250] : memref<5x32x128xf32, #tpu.memory_space<vmem>>, vector<1x32x128xf32>
    %529 = vector.shape_cast %528 : vector<1x32x128xf32> to vector<32x128xf32>
    %cst_251 = arith.constant dense<0.000000e+00> : vector<1x128xf32>
    %530 = tpu.matmul %412, %529, %cst_251 {dimension_numbers = #tpu.dot_dimension_numbers<[1], [0], [0], [1], [0, 0, 1, 1], [], []>} : vector<1x32xf32>, vector<32x128xf32>, vector<1x128xf32> -> vector<1x128xf32>
    %531 = arith.addf %527, %530 : vector<1x128xf32>
    %c4_252 = arith.constant 4 : index
    %c0_253 = arith.constant 0 : index
    %c0_254 = arith.constant 0 : index
    %532 = vector.load %arg3[%c4_252, %c0_253, %c0_254] : memref<5x1x128xf32, #tpu.memory_space<vmem>>, vector<1x1x128xf32>
    %533 = vector.shape_cast %532 : vector<1x1x128xf32> to vector<1x128xf32>
    %534 = arith.addf %531, %533 : vector<1x128xf32>
    %535 = arith.negf %534 : vector<1x128xf32>
    %536 = math.exp %535 : vector<1x128xf32>
    %cst_255 = arith.constant 1.000000e+00 : f32
    %537 = vector.broadcast %cst_255 : f32 to vector<1x128xf32>
    %538 = arith.addf %537, %536 : vector<1x128xf32>
    %539 = arith.divf %537, %538 : vector<1x128xf32>
    %540 = vector.extract_strided_slice %539 {offsets = [0, 0], sizes = [1, 32], strides = [1, 1]} : vector<1x128xf32> to vector<1x32xf32>
    %541 = vector.extract_strided_slice %539 {offsets = [0, 32], sizes = [1, 32], strides = [1, 1]} : vector<1x128xf32> to vector<1x32xf32>
    %542 = vector.extract_strided_slice %539 {offsets = [0, 64], sizes = [1, 32], strides = [1, 1]} : vector<1x128xf32> to vector<1x32xf32>
    %cst_256 = arith.constant 2.000000e+00 : f32
    %543 = vector.broadcast %cst_256 : f32 to vector<1x32xf32>
    %544 = arith.mulf %543, %542 : vector<1x32xf32>
    %cst_257 = arith.constant 1.000000e+00 : f32
    %545 = vector.broadcast %cst_257 : f32 to vector<1x32xf32>
    %546 = arith.subf %544, %545 : vector<1x32xf32>
    %547 = vector.extract_strided_slice %539 {offsets = [0, 96], sizes = [1, 32], strides = [1, 1]} : vector<1x128xf32> to vector<1x32xf32>
    %548 = arith.mulf %541, %410 : vector<1x32xf32>
    %549 = arith.mulf %540, %546 : vector<1x32xf32>
    %550 = arith.addf %548, %549 : vector<1x32xf32>
    %551 = math.tanh %550 : vector<1x32xf32>
    %552 = arith.mulf %547, %551 : vector<1x32xf32>
    %c0_258 = arith.constant 0 : index
    %c0_259 = arith.constant 0 : index
    %553 = vector.load %arg4[%c0_258, %c0_259] : memref<32x128xf32, #tpu.memory_space<vmem>>, vector<32x128xf32>
    %cst_260 = arith.constant dense<0.000000e+00> : vector<1x128xf32>
    %554 = tpu.matmul %552, %553, %cst_260 {dimension_numbers = #tpu.dot_dimension_numbers<[1], [0], [0], [1], [0, 0, 1, 1], [], []>} : vector<1x32xf32>, vector<32x128xf32>, vector<1x128xf32> -> vector<1x128xf32>
    %c0_261 = arith.constant 0 : index
    %c0_262 = arith.constant 0 : index
    %555 = vector.load %arg5[%c0_261, %c0_262] : memref<1x128xf32, #tpu.memory_space<vmem>>, vector<1x128xf32>
    %556 = arith.addf %554, %555 : vector<1x128xf32>
    %c1_263 = arith.constant 1 : index
    %c0_264 = arith.constant 0 : index
    %557 = vector.load %arg6[%c1_263, %c0_264] : memref<8x128xf32, #tpu.memory_space<vmem>>, vector<1x128xf32>
    tpu.vector_store %arg6[%c1_263, %c0_264], %556 {strides = array<i32>} : memref<8x128xf32, #tpu.memory_space<vmem>>, vector<1x128xf32>,
    %558 = vector.extract_strided_slice %7 {offsets = [6, 0], sizes = [1, 128], strides = [1, 1]} : vector<8x128xf32> to vector<1x128xf32>
    %c0_265 = arith.constant 0 : index
    %c0_266 = arith.constant 0 : index
    %c0_267 = arith.constant 0 : index
    %559 = vector.load %arg2[%c0_265, %c0_266, %c0_267] : memref<5x32x128xf32, #tpu.memory_space<vmem>>, vector<1x32x128xf32>
    %560 = vector.shape_cast %559 : vector<1x32x128xf32> to vector<32x128xf32>
    %cst_268 = arith.constant dense<0.000000e+00> : vector<1x128xf32>
    %561 = tpu.matmul %440, %560, %cst_268 {dimension_numbers = #tpu.dot_dimension_numbers<[1], [0], [0], [1], [0, 0, 1, 1], [], []>} : vector<1x32xf32>, vector<32x128xf32>, vector<1x128xf32> -> vector<1x128xf32>
    %562 = arith.addf %558, %561 : vector<1x128xf32>
    %563 = arith.negf %562 : vector<1x128xf32>
    %564 = math.exp %563 : vector<1x128xf32>
    %cst_269 = arith.constant 1.000000e+00 : f32
    %565 = vector.broadcast %cst_269 : f32 to vector<1x128xf32>
    %566 = arith.addf %565, %564 : vector<1x128xf32>
    %567 = arith.divf %565, %566 : vector<1x128xf32>
    %568 = vector.extract_strided_slice %567 {offsets = [0, 0], sizes = [1, 32], strides = [1, 1]} : vector<1x128xf32> to vector<1x32xf32>
    %569 = vector.extract_strided_slice %567 {offsets = [0, 32], sizes = [1, 32], strides = [1, 1]} : vector<1x128xf32> to vector<1x32xf32>
    %570 = vector.extract_strided_slice %567 {offsets = [0, 64], sizes = [1, 32], strides = [1, 1]} : vector<1x128xf32> to vector<1x32xf32>
    %cst_270 = arith.constant 2.000000e+00 : f32
    %571 = vector.broadcast %cst_270 : f32 to vector<1x32xf32>
    %572 = arith.mulf %571, %570 : vector<1x32xf32>
    %cst_271 = arith.constant 1.000000e+00 : f32
    %573 = vector.broadcast %cst_271 : f32 to vector<1x32xf32>
    %574 = arith.subf %572, %573 : vector<1x32xf32>
    %575 = vector.extract_strided_slice %567 {offsets = [0, 96], sizes = [1, 32], strides = [1, 1]} : vector<1x128xf32> to vector<1x32xf32>
    %576 = arith.mulf %569, %438 : vector<1x32xf32>
    %577 = arith.mulf %568, %574 : vector<1x32xf32>
    %578 = arith.addf %576, %577 : vector<1x32xf32>
    %579 = math.tanh %578 : vector<1x32xf32>
    %580 = arith.mulf %575, %579 : vector<1x32xf32>
    %c1_272 = arith.constant 1 : index
    %c0_273 = arith.constant 0 : index
    %c0_274 = arith.constant 0 : index
    %581 = vector.load %arg1[%c1_272, %c0_273, %c0_274] : memref<5x32x128xf32, #tpu.memory_space<vmem>>, vector<1x32x128xf32>
    %582 = vector.shape_cast %581 : vector<1x32x128xf32> to vector<32x128xf32>
    %cst_275 = arith.constant dense<0.000000e+00> : vector<1x128xf32>
    %583 = tpu.matmul %440, %582, %cst_275 {dimension_numbers = #tpu.dot_dimension_numbers<[1], [0], [0], [1], [0, 0, 1, 1], [], []>} : vector<1x32xf32>, vector<32x128xf32>, vector<1x128xf32> -> vector<1x128xf32>
    %c1_276 = arith.constant 1 : index
    %c0_277 = arith.constant 0 : index
    %c0_278 = arith.constant 0 : index
    %584 = vector.load %arg2[%c1_276, %c0_277, %c0_278] : memref<5x32x128xf32, #tpu.memory_space<vmem>>, vector<1x32x128xf32>
    %585 = vector.shape_cast %584 : vector<1x32x128xf32> to vector<32x128xf32>
    %cst_279 = arith.constant dense<0.000000e+00> : vector<1x128xf32>
    %586 = tpu.matmul %468, %585, %cst_279 {dimension_numbers = #tpu.dot_dimension_numbers<[1], [0], [0], [1], [0, 0, 1, 1], [], []>} : vector<1x32xf32>, vector<32x128xf32>, vector<1x128xf32> -> vector<1x128xf32>
    %587 = arith.addf %583, %586 : vector<1x128xf32>
    %c1_280 = arith.constant 1 : index
    %c0_281 = arith.constant 0 : index
    %c0_282 = arith.constant 0 : index
    %588 = vector.load %arg3[%c1_280, %c0_281, %c0_282] : memref<5x1x128xf32, #tpu.memory_space<vmem>>, vector<1x1x128xf32>
    %589 = vector.shape_cast %588 : vector<1x1x128xf32> to vector<1x128xf32>
    %590 = arith.addf %587, %589 : vector<1x128xf32>
    %591 = arith.negf %590 : vector<1x128xf32>
    %592 = math.exp %591 : vector<1x128xf32>
    %cst_283 = arith.constant 1.000000e+00 : f32
    %593 = vector.broadcast %cst_283 : f32 to vector<1x128xf32>
    %594 = arith.addf %593, %592 : vector<1x128xf32>
    %595 = arith.divf %593, %594 : vector<1x128xf32>
    %596 = vector.extract_strided_slice %595 {offsets = [0, 0], sizes = [1, 32], strides = [1, 1]} : vector<1x128xf32> to vector<1x32xf32>
    %597 = vector.extract_strided_slice %595 {offsets = [0, 32], sizes = [1, 32], strides = [1, 1]} : vector<1x128xf32> to vector<1x32xf32>
    %598 = vector.extract_strided_slice %595 {offsets = [0, 64], sizes = [1, 32], strides = [1, 1]} : vector<1x128xf32> to vector<1x32xf32>
    %cst_284 = arith.constant 2.000000e+00 : f32
    %599 = vector.broadcast %cst_284 : f32 to vector<1x32xf32>
    %600 = arith.mulf %599, %598 : vector<1x32xf32>
    %cst_285 = arith.constant 1.000000e+00 : f32
    %601 = vector.broadcast %cst_285 : f32 to vector<1x32xf32>
    %602 = arith.subf %600, %601 : vector<1x32xf32>
    %603 = vector.extract_strided_slice %595 {offsets = [0, 96], sizes = [1, 32], strides = [1, 1]} : vector<1x128xf32> to vector<1x32xf32>
    %604 = arith.mulf %597, %466 : vector<1x32xf32>
    %605 = arith.mulf %596, %602 : vector<1x32xf32>
    %606 = arith.addf %604, %605 : vector<1x32xf32>
    %607 = math.tanh %606 : vector<1x32xf32>
    %608 = arith.mulf %603, %607 : vector<1x32xf32>
    %c2_286 = arith.constant 2 : index
    %c0_287 = arith.constant 0 : index
    %c0_288 = arith.constant 0 : index
    %609 = vector.load %arg1[%c2_286, %c0_287, %c0_288] : memref<5x32x128xf32, #tpu.memory_space<vmem>>, vector<1x32x128xf32>
    %610 = vector.shape_cast %609 : vector<1x32x128xf32> to vector<32x128xf32>
    %cst_289 = arith.constant dense<0.000000e+00> : vector<1x128xf32>
    %611 = tpu.matmul %468, %610, %cst_289 {dimension_numbers = #tpu.dot_dimension_numbers<[1], [0], [0], [1], [0, 0, 1, 1], [], []>} : vector<1x32xf32>, vector<32x128xf32>, vector<1x128xf32> -> vector<1x128xf32>
    %c2_290 = arith.constant 2 : index
    %c0_291 = arith.constant 0 : index
    %c0_292 = arith.constant 0 : index
    %612 = vector.load %arg2[%c2_290, %c0_291, %c0_292] : memref<5x32x128xf32, #tpu.memory_space<vmem>>, vector<1x32x128xf32>
    %613 = vector.shape_cast %612 : vector<1x32x128xf32> to vector<32x128xf32>
    %cst_293 = arith.constant dense<0.000000e+00> : vector<1x128xf32>
    %614 = tpu.matmul %496, %613, %cst_293 {dimension_numbers = #tpu.dot_dimension_numbers<[1], [0], [0], [1], [0, 0, 1, 1], [], []>} : vector<1x32xf32>, vector<32x128xf32>, vector<1x128xf32> -> vector<1x128xf32>
    %615 = arith.addf %611, %614 : vector<1x128xf32>
    %c2_294 = arith.constant 2 : index
    %c0_295 = arith.constant 0 : index
    %c0_296 = arith.constant 0 : index
    %616 = vector.load %arg3[%c2_294, %c0_295, %c0_296] : memref<5x1x128xf32, #tpu.memory_space<vmem>>, vector<1x1x128xf32>
    %617 = vector.shape_cast %616 : vector<1x1x128xf32> to vector<1x128xf32>
    %618 = arith.addf %615, %617 : vector<1x128xf32>
    %619 = arith.negf %618 : vector<1x128xf32>
    %620 = math.exp %619 : vector<1x128xf32>
    %cst_297 = arith.constant 1.000000e+00 : f32
    %621 = vector.broadcast %cst_297 : f32 to vector<1x128xf32>
    %622 = arith.addf %621, %620 : vector<1x128xf32>
    %623 = arith.divf %621, %622 : vector<1x128xf32>
    %624 = vector.extract_strided_slice %623 {offsets = [0, 0], sizes = [1, 32], strides = [1, 1]} : vector<1x128xf32> to vector<1x32xf32>
    %625 = vector.extract_strided_slice %623 {offsets = [0, 32], sizes = [1, 32], strides = [1, 1]} : vector<1x128xf32> to vector<1x32xf32>
    %626 = vector.extract_strided_slice %623 {offsets = [0, 64], sizes = [1, 32], strides = [1, 1]} : vector<1x128xf32> to vector<1x32xf32>
    %cst_298 = arith.constant 2.000000e+00 : f32
    %627 = vector.broadcast %cst_298 : f32 to vector<1x32xf32>
    %628 = arith.mulf %627, %626 : vector<1x32xf32>
    %cst_299 = arith.constant 1.000000e+00 : f32
    %629 = vector.broadcast %cst_299 : f32 to vector<1x32xf32>
    %630 = arith.subf %628, %629 : vector<1x32xf32>
    %631 = vector.extract_strided_slice %623 {offsets = [0, 96], sizes = [1, 32], strides = [1, 1]} : vector<1x128xf32> to vector<1x32xf32>
    %632 = arith.mulf %625, %494 : vector<1x32xf32>
    %633 = arith.mulf %624, %630 : vector<1x32xf32>
    %634 = arith.addf %632, %633 : vector<1x32xf32>
    %635 = math.tanh %634 : vector<1x32xf32>
    %636 = arith.mulf %631, %635 : vector<1x32xf32>
    %c3_300 = arith.constant 3 : index
    %c0_301 = arith.constant 0 : index
    %c0_302 = arith.constant 0 : index
    %637 = vector.load %arg1[%c3_300, %c0_301, %c0_302] : memref<5x32x128xf32, #tpu.memory_space<vmem>>, vector<1x32x128xf32>
    %638 = vector.shape_cast %637 : vector<1x32x128xf32> to vector<32x128xf32>
    %cst_303 = arith.constant dense<0.000000e+00> : vector<1x128xf32>
    %639 = tpu.matmul %496, %638, %cst_303 {dimension_numbers = #tpu.dot_dimension_numbers<[1], [0], [0], [1], [0, 0, 1, 1], [], []>} : vector<1x32xf32>, vector<32x128xf32>, vector<1x128xf32> -> vector<1x128xf32>
    %c3_304 = arith.constant 3 : index
    %c0_305 = arith.constant 0 : index
    %c0_306 = arith.constant 0 : index
    %640 = vector.load %arg2[%c3_304, %c0_305, %c0_306] : memref<5x32x128xf32, #tpu.memory_space<vmem>>, vector<1x32x128xf32>
    %641 = vector.shape_cast %640 : vector<1x32x128xf32> to vector<32x128xf32>
    %cst_307 = arith.constant dense<0.000000e+00> : vector<1x128xf32>
    %642 = tpu.matmul %524, %641, %cst_307 {dimension_numbers = #tpu.dot_dimension_numbers<[1], [0], [0], [1], [0, 0, 1, 1], [], []>} : vector<1x32xf32>, vector<32x128xf32>, vector<1x128xf32> -> vector<1x128xf32>
    %643 = arith.addf %639, %642 : vector<1x128xf32>
    %c3_308 = arith.constant 3 : index
    %c0_309 = arith.constant 0 : index
    %c0_310 = arith.constant 0 : index
    %644 = vector.load %arg3[%c3_308, %c0_309, %c0_310] : memref<5x1x128xf32, #tpu.memory_space<vmem>>, vector<1x1x128xf32>
    %645 = vector.shape_cast %644 : vector<1x1x128xf32> to vector<1x128xf32>
    %646 = arith.addf %643, %645 : vector<1x128xf32>
    %647 = arith.negf %646 : vector<1x128xf32>
    %648 = math.exp %647 : vector<1x128xf32>
    %cst_311 = arith.constant 1.000000e+00 : f32
    %649 = vector.broadcast %cst_311 : f32 to vector<1x128xf32>
    %650 = arith.addf %649, %648 : vector<1x128xf32>
    %651 = arith.divf %649, %650 : vector<1x128xf32>
    %652 = vector.extract_strided_slice %651 {offsets = [0, 0], sizes = [1, 32], strides = [1, 1]} : vector<1x128xf32> to vector<1x32xf32>
    %653 = vector.extract_strided_slice %651 {offsets = [0, 32], sizes = [1, 32], strides = [1, 1]} : vector<1x128xf32> to vector<1x32xf32>
    %654 = vector.extract_strided_slice %651 {offsets = [0, 64], sizes = [1, 32], strides = [1, 1]} : vector<1x128xf32> to vector<1x32xf32>
    %cst_312 = arith.constant 2.000000e+00 : f32
    %655 = vector.broadcast %cst_312 : f32 to vector<1x32xf32>
    %656 = arith.mulf %655, %654 : vector<1x32xf32>
    %cst_313 = arith.constant 1.000000e+00 : f32
    %657 = vector.broadcast %cst_313 : f32 to vector<1x32xf32>
    %658 = arith.subf %656, %657 : vector<1x32xf32>
    %659 = vector.extract_strided_slice %651 {offsets = [0, 96], sizes = [1, 32], strides = [1, 1]} : vector<1x128xf32> to vector<1x32xf32>
    %660 = arith.mulf %653, %522 : vector<1x32xf32>
    %661 = arith.mulf %652, %658 : vector<1x32xf32>
    %662 = arith.addf %660, %661 : vector<1x32xf32>
    %663 = math.tanh %662 : vector<1x32xf32>
    %664 = arith.mulf %659, %663 : vector<1x32xf32>
    %c4_314 = arith.constant 4 : index
    %c0_315 = arith.constant 0 : index
    %c0_316 = arith.constant 0 : index
    %665 = vector.load %arg1[%c4_314, %c0_315, %c0_316] : memref<5x32x128xf32, #tpu.memory_space<vmem>>, vector<1x32x128xf32>
    %666 = vector.shape_cast %665 : vector<1x32x128xf32> to vector<32x128xf32>
    %cst_317 = arith.constant dense<0.000000e+00> : vector<1x128xf32>
    %667 = tpu.matmul %524, %666, %cst_317 {dimension_numbers = #tpu.dot_dimension_numbers<[1], [0], [0], [1], [0, 0, 1, 1], [], []>} : vector<1x32xf32>, vector<32x128xf32>, vector<1x128xf32> -> vector<1x128xf32>
    %c4_318 = arith.constant 4 : index
    %c0_319 = arith.constant 0 : index
    %c0_320 = arith.constant 0 : index
    %668 = vector.load %arg2[%c4_318, %c0_319, %c0_320] : memref<5x32x128xf32, #tpu.memory_space<vmem>>, vector<1x32x128xf32>
    %669 = vector.shape_cast %668 : vector<1x32x128xf32> to vector<32x128xf32>
    %cst_321 = arith.constant dense<0.000000e+00> : vector<1x128xf32>
    %670 = tpu.matmul %552, %669, %cst_321 {dimension_numbers = #tpu.dot_dimension_numbers<[1], [0], [0], [1], [0, 0, 1, 1], [], []>} : vector<1x32xf32>, vector<32x128xf32>, vector<1x128xf32> -> vector<1x128xf32>
    %671 = arith.addf %667, %670 : vector<1x128xf32>
    %c4_322 = arith.constant 4 : index
    %c0_323 = arith.constant 0 : index
    %c0_324 = arith.constant 0 : index
    %672 = vector.load %arg3[%c4_322, %c0_323, %c0_324] : memref<5x1x128xf32, #tpu.memory_space<vmem>>, vector<1x1x128xf32>
    %673 = vector.shape_cast %672 : vector<1x1x128xf32> to vector<1x128xf32>
    %674 = arith.addf %671, %673 : vector<1x128xf32>
    %675 = arith.negf %674 : vector<1x128xf32>
    %676 = math.exp %675 : vector<1x128xf32>
    %cst_325 = arith.constant 1.000000e+00 : f32
    %677 = vector.broadcast %cst_325 : f32 to vector<1x128xf32>
    %678 = arith.addf %677, %676 : vector<1x128xf32>
    %679 = arith.divf %677, %678 : vector<1x128xf32>
    %680 = vector.extract_strided_slice %679 {offsets = [0, 0], sizes = [1, 32], strides = [1, 1]} : vector<1x128xf32> to vector<1x32xf32>
    %681 = vector.extract_strided_slice %679 {offsets = [0, 32], sizes = [1, 32], strides = [1, 1]} : vector<1x128xf32> to vector<1x32xf32>
    %682 = vector.extract_strided_slice %679 {offsets = [0, 64], sizes = [1, 32], strides = [1, 1]} : vector<1x128xf32> to vector<1x32xf32>
    %cst_326 = arith.constant 2.000000e+00 : f32
    %683 = vector.broadcast %cst_326 : f32 to vector<1x32xf32>
    %684 = arith.mulf %683, %682 : vector<1x32xf32>
    %cst_327 = arith.constant 1.000000e+00 : f32
    %685 = vector.broadcast %cst_327 : f32 to vector<1x32xf32>
    %686 = arith.subf %684, %685 : vector<1x32xf32>
    %687 = vector.extract_strided_slice %679 {offsets = [0, 96], sizes = [1, 32], strides = [1, 1]} : vector<1x128xf32> to vector<1x32xf32>
    %688 = arith.mulf %681, %550 : vector<1x32xf32>
    %689 = arith.mulf %680, %686 : vector<1x32xf32>
    %690 = arith.addf %688, %689 : vector<1x32xf32>
    %691 = math.tanh %690 : vector<1x32xf32>
    %692 = arith.mulf %687, %691 : vector<1x32xf32>
    %c0_328 = arith.constant 0 : index
    %c0_329 = arith.constant 0 : index
    %693 = vector.load %arg4[%c0_328, %c0_329] : memref<32x128xf32, #tpu.memory_space<vmem>>, vector<32x128xf32>
    %cst_330 = arith.constant dense<0.000000e+00> : vector<1x128xf32>
    %694 = tpu.matmul %692, %693, %cst_330 {dimension_numbers = #tpu.dot_dimension_numbers<[1], [0], [0], [1], [0, 0, 1, 1], [], []>} : vector<1x32xf32>, vector<32x128xf32>, vector<1x128xf32> -> vector<1x128xf32>
    %c0_331 = arith.constant 0 : index
    %c0_332 = arith.constant 0 : index
    %695 = vector.load %arg5[%c0_331, %c0_332] : memref<1x128xf32, #tpu.memory_space<vmem>>, vector<1x128xf32>
    %696 = arith.addf %694, %695 : vector<1x128xf32>
    %c2_333 = arith.constant 2 : index
    %c0_334 = arith.constant 0 : index
    %697 = vector.load %arg6[%c2_333, %c0_334] : memref<8x128xf32, #tpu.memory_space<vmem>>, vector<1x128xf32>
    tpu.vector_store %arg6[%c2_333, %c0_334], %696 {strides = array<i32>} : memref<8x128xf32, #tpu.memory_space<vmem>>, vector<1x128xf32>,
    %698 = vector.extract_strided_slice %7 {offsets = [7, 0], sizes = [1, 128], strides = [1, 1]} : vector<8x128xf32> to vector<1x128xf32>
    %c0_335 = arith.constant 0 : index
    %c0_336 = arith.constant 0 : index
    %c0_337 = arith.constant 0 : index
    %699 = vector.load %arg2[%c0_335, %c0_336, %c0_337] : memref<5x32x128xf32, #tpu.memory_space<vmem>>, vector<1x32x128xf32>
    %700 = vector.shape_cast %699 : vector<1x32x128xf32> to vector<32x128xf32>
    %cst_338 = arith.constant dense<0.000000e+00> : vector<1x128xf32>
    %701 = tpu.matmul %580, %700, %cst_338 {dimension_numbers = #tpu.dot_dimension_numbers<[1], [0], [0], [1], [0, 0, 1, 1], [], []>} : vector<1x32xf32>, vector<32x128xf32>, vector<1x128xf32> -> vector<1x128xf32>
    %702 = arith.addf %698, %701 : vector<1x128xf32>
    %703 = arith.negf %702 : vector<1x128xf32>
    %704 = math.exp %703 : vector<1x128xf32>
    %cst_339 = arith.constant 1.000000e+00 : f32
    %705 = vector.broadcast %cst_339 : f32 to vector<1x128xf32>
    %706 = arith.addf %705, %704 : vector<1x128xf32>
    %707 = arith.divf %705, %706 : vector<1x128xf32>
    %708 = vector.extract_strided_slice %707 {offsets = [0, 0], sizes = [1, 32], strides = [1, 1]} : vector<1x128xf32> to vector<1x32xf32>
    %709 = vector.extract_strided_slice %707 {offsets = [0, 32], sizes = [1, 32], strides = [1, 1]} : vector<1x128xf32> to vector<1x32xf32>
    %710 = vector.extract_strided_slice %707 {offsets = [0, 64], sizes = [1, 32], strides = [1, 1]} : vector<1x128xf32> to vector<1x32xf32>
    %cst_340 = arith.constant 2.000000e+00 : f32
    %711 = vector.broadcast %cst_340 : f32 to vector<1x32xf32>
    %712 = arith.mulf %711, %710 : vector<1x32xf32>
    %cst_341 = arith.constant 1.000000e+00 : f32
    %713 = vector.broadcast %cst_341 : f32 to vector<1x32xf32>
    %714 = arith.subf %712, %713 : vector<1x32xf32>
    %715 = vector.extract_strided_slice %707 {offsets = [0, 96], sizes = [1, 32], strides = [1, 1]} : vector<1x128xf32> to vector<1x32xf32>
    %716 = arith.mulf %709, %578 : vector<1x32xf32>
    %717 = arith.mulf %708, %714 : vector<1x32xf32>
    %718 = arith.addf %716, %717 : vector<1x32xf32>
    %719 = math.tanh %718 : vector<1x32xf32>
    %720 = arith.mulf %715, %719 : vector<1x32xf32>
    %c1_342 = arith.constant 1 : index
    %c0_343 = arith.constant 0 : index
    %c0_344 = arith.constant 0 : index
    %721 = vector.load %arg1[%c1_342, %c0_343, %c0_344] : memref<5x32x128xf32, #tpu.memory_space<vmem>>, vector<1x32x128xf32>
    %722 = vector.shape_cast %721 : vector<1x32x128xf32> to vector<32x128xf32>
    %cst_345 = arith.constant dense<0.000000e+00> : vector<1x128xf32>
    %723 = tpu.matmul %580, %722, %cst_345 {dimension_numbers = #tpu.dot_dimension_numbers<[1], [0], [0], [1], [0, 0, 1, 1], [], []>} : vector<1x32xf32>, vector<32x128xf32>, vector<1x128xf32> -> vector<1x128xf32>
    %c1_346 = arith.constant 1 : index
    %c0_347 = arith.constant 0 : index
    %c0_348 = arith.constant 0 : index
    %724 = vector.load %arg2[%c1_346, %c0_347, %c0_348] : memref<5x32x128xf32, #tpu.memory_space<vmem>>, vector<1x32x128xf32>
    %725 = vector.shape_cast %724 : vector<1x32x128xf32> to vector<32x128xf32>
    %cst_349 = arith.constant dense<0.000000e+00> : vector<1x128xf32>
    %726 = tpu.matmul %608, %725, %cst_349 {dimension_numbers = #tpu.dot_dimension_numbers<[1], [0], [0], [1], [0, 0, 1, 1], [], []>} : vector<1x32xf32>, vector<32x128xf32>, vector<1x128xf32> -> vector<1x128xf32>
    %727 = arith.addf %723, %726 : vector<1x128xf32>
    %c1_350 = arith.constant 1 : index
    %c0_351 = arith.constant 0 : index
    %c0_352 = arith.constant 0 : index
    %728 = vector.load %arg3[%c1_350, %c0_351, %c0_352] : memref<5x1x128xf32, #tpu.memory_space<vmem>>, vector<1x1x128xf32>
    %729 = vector.shape_cast %728 : vector<1x1x128xf32> to vector<1x128xf32>
    %730 = arith.addf %727, %729 : vector<1x128xf32>
    %731 = arith.negf %730 : vector<1x128xf32>
    %732 = math.exp %731 : vector<1x128xf32>
    %cst_353 = arith.constant 1.000000e+00 : f32
    %733 = vector.broadcast %cst_353 : f32 to vector<1x128xf32>
    %734 = arith.addf %733, %732 : vector<1x128xf32>
    %735 = arith.divf %733, %734 : vector<1x128xf32>
    %736 = vector.extract_strided_slice %735 {offsets = [0, 0], sizes = [1, 32], strides = [1, 1]} : vector<1x128xf32> to vector<1x32xf32>
    %737 = vector.extract_strided_slice %735 {offsets = [0, 32], sizes = [1, 32], strides = [1, 1]} : vector<1x128xf32> to vector<1x32xf32>
    %738 = vector.extract_strided_slice %735 {offsets = [0, 64], sizes = [1, 32], strides = [1, 1]} : vector<1x128xf32> to vector<1x32xf32>
    %cst_354 = arith.constant 2.000000e+00 : f32
    %739 = vector.broadcast %cst_354 : f32 to vector<1x32xf32>
    %740 = arith.mulf %739, %738 : vector<1x32xf32>
    %cst_355 = arith.constant 1.000000e+00 : f32
    %741 = vector.broadcast %cst_355 : f32 to vector<1x32xf32>
    %742 = arith.subf %740, %741 : vector<1x32xf32>
    %743 = vector.extract_strided_slice %735 {offsets = [0, 96], sizes = [1, 32], strides = [1, 1]} : vector<1x128xf32> to vector<1x32xf32>
    %744 = arith.mulf %737, %606 : vector<1x32xf32>
    %745 = arith.mulf %736, %742 : vector<1x32xf32>
    %746 = arith.addf %744, %745 : vector<1x32xf32>
    %747 = math.tanh %746 : vector<1x32xf32>
    %748 = arith.mulf %743, %747 : vector<1x32xf32>
    %c2_356 = arith.constant 2 : index
    %c0_357 = arith.constant 0 : index
    %c0_358 = arith.constant 0 : index
    %749 = vector.load %arg1[%c2_356, %c0_357, %c0_358] : memref<5x32x128xf32, #tpu.memory_space<vmem>>, vector<1x32x128xf32>
    %750 = vector.shape_cast %749 : vector<1x32x128xf32> to vector<32x128xf32>
    %cst_359 = arith.constant dense<0.000000e+00> : vector<1x128xf32>
    %751 = tpu.matmul %608, %750, %cst_359 {dimension_numbers = #tpu.dot_dimension_numbers<[1], [0], [0], [1], [0, 0, 1, 1], [], []>} : vector<1x32xf32>, vector<32x128xf32>, vector<1x128xf32> -> vector<1x128xf32>
    %c2_360 = arith.constant 2 : index
    %c0_361 = arith.constant 0 : index
    %c0_362 = arith.constant 0 : index
    %752 = vector.load %arg2[%c2_360, %c0_361, %c0_362] : memref<5x32x128xf32, #tpu.memory_space<vmem>>, vector<1x32x128xf32>
    %753 = vector.shape_cast %752 : vector<1x32x128xf32> to vector<32x128xf32>
    %cst_363 = arith.constant dense<0.000000e+00> : vector<1x128xf32>
    %754 = tpu.matmul %636, %753, %cst_363 {dimension_numbers = #tpu.dot_dimension_numbers<[1], [0], [0], [1], [0, 0, 1, 1], [], []>} : vector<1x32xf32>, vector<32x128xf32>, vector<1x128xf32> -> vector<1x128xf32>
    %755 = arith.addf %751, %754 : vector<1x128xf32>
    %c2_364 = arith.constant 2 : index
    %c0_365 = arith.constant 0 : index
    %c0_366 = arith.constant 0 : index
    %756 = vector.load %arg3[%c2_364, %c0_365, %c0_366] : memref<5x1x128xf32, #tpu.memory_space<vmem>>, vector<1x1x128xf32>
    %757 = vector.shape_cast %756 : vector<1x1x128xf32> to vector<1x128xf32>
    %758 = arith.addf %755, %757 : vector<1x128xf32>
    %759 = arith.negf %758 : vector<1x128xf32>
    %760 = math.exp %759 : vector<1x128xf32>
    %cst_367 = arith.constant 1.000000e+00 : f32
    %761 = vector.broadcast %cst_367 : f32 to vector<1x128xf32>
    %762 = arith.addf %761, %760 : vector<1x128xf32>
    %763 = arith.divf %761, %762 : vector<1x128xf32>
    %764 = vector.extract_strided_slice %763 {offsets = [0, 0], sizes = [1, 32], strides = [1, 1]} : vector<1x128xf32> to vector<1x32xf32>
    %765 = vector.extract_strided_slice %763 {offsets = [0, 32], sizes = [1, 32], strides = [1, 1]} : vector<1x128xf32> to vector<1x32xf32>
    %766 = vector.extract_strided_slice %763 {offsets = [0, 64], sizes = [1, 32], strides = [1, 1]} : vector<1x128xf32> to vector<1x32xf32>
    %cst_368 = arith.constant 2.000000e+00 : f32
    %767 = vector.broadcast %cst_368 : f32 to vector<1x32xf32>
    %768 = arith.mulf %767, %766 : vector<1x32xf32>
    %cst_369 = arith.constant 1.000000e+00 : f32
    %769 = vector.broadcast %cst_369 : f32 to vector<1x32xf32>
    %770 = arith.subf %768, %769 : vector<1x32xf32>
    %771 = vector.extract_strided_slice %763 {offsets = [0, 96], sizes = [1, 32], strides = [1, 1]} : vector<1x128xf32> to vector<1x32xf32>
    %772 = arith.mulf %765, %634 : vector<1x32xf32>
    %773 = arith.mulf %764, %770 : vector<1x32xf32>
    %774 = arith.addf %772, %773 : vector<1x32xf32>
    %775 = math.tanh %774 : vector<1x32xf32>
    %776 = arith.mulf %771, %775 : vector<1x32xf32>
    %c3_370 = arith.constant 3 : index
    %c0_371 = arith.constant 0 : index
    %c0_372 = arith.constant 0 : index
    %777 = vector.load %arg1[%c3_370, %c0_371, %c0_372] : memref<5x32x128xf32, #tpu.memory_space<vmem>>, vector<1x32x128xf32>
    %778 = vector.shape_cast %777 : vector<1x32x128xf32> to vector<32x128xf32>
    %cst_373 = arith.constant dense<0.000000e+00> : vector<1x128xf32>
    %779 = tpu.matmul %636, %778, %cst_373 {dimension_numbers = #tpu.dot_dimension_numbers<[1], [0], [0], [1], [0, 0, 1, 1], [], []>} : vector<1x32xf32>, vector<32x128xf32>, vector<1x128xf32> -> vector<1x128xf32>
    %c3_374 = arith.constant 3 : index
    %c0_375 = arith.constant 0 : index
    %c0_376 = arith.constant 0 : index
    %780 = vector.load %arg2[%c3_374, %c0_375, %c0_376] : memref<5x32x128xf32, #tpu.memory_space<vmem>>, vector<1x32x128xf32>
    %781 = vector.shape_cast %780 : vector<1x32x128xf32> to vector<32x128xf32>
    %cst_377 = arith.constant dense<0.000000e+00> : vector<1x128xf32>
    %782 = tpu.matmul %664, %781, %cst_377 {dimension_numbers = #tpu.dot_dimension_numbers<[1], [0], [0], [1], [0, 0, 1, 1], [], []>} : vector<1x32xf32>, vector<32x128xf32>, vector<1x128xf32> -> vector<1x128xf32>
    %783 = arith.addf %779, %782 : vector<1x128xf32>
    %c3_378 = arith.constant 3 : index
    %c0_379 = arith.constant 0 : index
    %c0_380 = arith.constant 0 : index
    %784 = vector.load %arg3[%c3_378, %c0_379, %c0_380] : memref<5x1x128xf32, #tpu.memory_space<vmem>>, vector<1x1x128xf32>
    %785 = vector.shape_cast %784 : vector<1x1x128xf32> to vector<1x128xf32>
    %786 = arith.addf %783, %785 : vector<1x128xf32>
    %787 = arith.negf %786 : vector<1x128xf32>
    %788 = math.exp %787 : vector<1x128xf32>
    %cst_381 = arith.constant 1.000000e+00 : f32
    %789 = vector.broadcast %cst_381 : f32 to vector<1x128xf32>
    %790 = arith.addf %789, %788 : vector<1x128xf32>
    %791 = arith.divf %789, %790 : vector<1x128xf32>
    %792 = vector.extract_strided_slice %791 {offsets = [0, 0], sizes = [1, 32], strides = [1, 1]} : vector<1x128xf32> to vector<1x32xf32>
    %793 = vector.extract_strided_slice %791 {offsets = [0, 32], sizes = [1, 32], strides = [1, 1]} : vector<1x128xf32> to vector<1x32xf32>
    %794 = vector.extract_strided_slice %791 {offsets = [0, 64], sizes = [1, 32], strides = [1, 1]} : vector<1x128xf32> to vector<1x32xf32>
    %cst_382 = arith.constant 2.000000e+00 : f32
    %795 = vector.broadcast %cst_382 : f32 to vector<1x32xf32>
    %796 = arith.mulf %795, %794 : vector<1x32xf32>
    %cst_383 = arith.constant 1.000000e+00 : f32
    %797 = vector.broadcast %cst_383 : f32 to vector<1x32xf32>
    %798 = arith.subf %796, %797 : vector<1x32xf32>
    %799 = vector.extract_strided_slice %791 {offsets = [0, 96], sizes = [1, 32], strides = [1, 1]} : vector<1x128xf32> to vector<1x32xf32>
    %800 = arith.mulf %793, %662 : vector<1x32xf32>
    %801 = arith.mulf %792, %798 : vector<1x32xf32>
    %802 = arith.addf %800, %801 : vector<1x32xf32>
    %803 = math.tanh %802 : vector<1x32xf32>
    %804 = arith.mulf %799, %803 : vector<1x32xf32>
    %c4_384 = arith.constant 4 : index
    %c0_385 = arith.constant 0 : index
    %c0_386 = arith.constant 0 : index
    %805 = vector.load %arg1[%c4_384, %c0_385, %c0_386] : memref<5x32x128xf32, #tpu.memory_space<vmem>>, vector<1x32x128xf32>
    %806 = vector.shape_cast %805 : vector<1x32x128xf32> to vector<32x128xf32>
    %cst_387 = arith.constant dense<0.000000e+00> : vector<1x128xf32>
    %807 = tpu.matmul %664, %806, %cst_387 {dimension_numbers = #tpu.dot_dimension_numbers<[1], [0], [0], [1], [0, 0, 1, 1], [], []>} : vector<1x32xf32>, vector<32x128xf32>, vector<1x128xf32> -> vector<1x128xf32>
    %c4_388 = arith.constant 4 : index
    %c0_389 = arith.constant 0 : index
    %c0_390 = arith.constant 0 : index
    %808 = vector.load %arg2[%c4_388, %c0_389, %c0_390] : memref<5x32x128xf32, #tpu.memory_space<vmem>>, vector<1x32x128xf32>
    %809 = vector.shape_cast %808 : vector<1x32x128xf32> to vector<32x128xf32>
    %cst_391 = arith.constant dense<0.000000e+00> : vector<1x128xf32>
    %810 = tpu.matmul %692, %809, %cst_391 {dimension_numbers = #tpu.dot_dimension_numbers<[1], [0], [0], [1], [0, 0, 1, 1], [], []>} : vector<1x32xf32>, vector<32x128xf32>, vector<1x128xf32> -> vector<1x128xf32>
    %811 = arith.addf %807, %810 : vector<1x128xf32>
    %c4_392 = arith.constant 4 : index
    %c0_393 = arith.constant 0 : index
    %c0_394 = arith.constant 0 : index
    %812 = vector.load %arg3[%c4_392, %c0_393, %c0_394] : memref<5x1x128xf32, #tpu.memory_space<vmem>>, vector<1x1x128xf32>
    %813 = vector.shape_cast %812 : vector<1x1x128xf32> to vector<1x128xf32>
    %814 = arith.addf %811, %813 : vector<1x128xf32>
    %815 = arith.negf %814 : vector<1x128xf32>
    %816 = math.exp %815 : vector<1x128xf32>
    %cst_395 = arith.constant 1.000000e+00 : f32
    %817 = vector.broadcast %cst_395 : f32 to vector<1x128xf32>
    %818 = arith.addf %817, %816 : vector<1x128xf32>
    %819 = arith.divf %817, %818 : vector<1x128xf32>
    %820 = vector.extract_strided_slice %819 {offsets = [0, 0], sizes = [1, 32], strides = [1, 1]} : vector<1x128xf32> to vector<1x32xf32>
    %821 = vector.extract_strided_slice %819 {offsets = [0, 32], sizes = [1, 32], strides = [1, 1]} : vector<1x128xf32> to vector<1x32xf32>
    %822 = vector.extract_strided_slice %819 {offsets = [0, 64], sizes = [1, 32], strides = [1, 1]} : vector<1x128xf32> to vector<1x32xf32>
    %cst_396 = arith.constant 2.000000e+00 : f32
    %823 = vector.broadcast %cst_396 : f32 to vector<1x32xf32>
    %824 = arith.mulf %823, %822 : vector<1x32xf32>
    %cst_397 = arith.constant 1.000000e+00 : f32
    %825 = vector.broadcast %cst_397 : f32 to vector<1x32xf32>
    %826 = arith.subf %824, %825 : vector<1x32xf32>
    %827 = vector.extract_strided_slice %819 {offsets = [0, 96], sizes = [1, 32], strides = [1, 1]} : vector<1x128xf32> to vector<1x32xf32>
    %828 = arith.mulf %821, %690 : vector<1x32xf32>
    %829 = arith.mulf %820, %826 : vector<1x32xf32>
    %830 = arith.addf %828, %829 : vector<1x32xf32>
    %831 = math.tanh %830 : vector<1x32xf32>
    %832 = arith.mulf %827, %831 : vector<1x32xf32>
    %c0_398 = arith.constant 0 : index
    %c0_399 = arith.constant 0 : index
    %833 = vector.load %arg4[%c0_398, %c0_399] : memref<32x128xf32, #tpu.memory_space<vmem>>, vector<32x128xf32>
    %cst_400 = arith.constant dense<0.000000e+00> : vector<1x128xf32>
    %834 = tpu.matmul %832, %833, %cst_400 {dimension_numbers = #tpu.dot_dimension_numbers<[1], [0], [0], [1], [0, 0, 1, 1], [], []>} : vector<1x32xf32>, vector<32x128xf32>, vector<1x128xf32> -> vector<1x128xf32>
    %c0_401 = arith.constant 0 : index
    %c0_402 = arith.constant 0 : index
    %835 = vector.load %arg5[%c0_401, %c0_402] : memref<1x128xf32, #tpu.memory_space<vmem>>, vector<1x128xf32>
    %836 = arith.addf %834, %835 : vector<1x128xf32>
    %c3_403 = arith.constant 3 : index
    %c0_404 = arith.constant 0 : index
    %837 = vector.load %arg6[%c3_403, %c0_404] : memref<8x128xf32, #tpu.memory_space<vmem>>, vector<1x128xf32>
    tpu.vector_store %arg6[%c3_403, %c0_404], %836 {strides = array<i32>} : memref<8x128xf32, #tpu.memory_space<vmem>>, vector<1x128xf32>,
    %c1_405 = arith.constant 1 : index
    %c0_406 = arith.constant 0 : index
    %c0_407 = arith.constant 0 : index
    %838 = vector.load %arg1[%c1_405, %c0_406, %c0_407] : memref<5x32x128xf32, #tpu.memory_space<vmem>>, vector<1x32x128xf32>
    %839 = vector.shape_cast %838 : vector<1x32x128xf32> to vector<32x128xf32>
    %cst_408 = arith.constant dense<0.000000e+00> : vector<1x128xf32>
    %840 = tpu.matmul %720, %839, %cst_408 {dimension_numbers = #tpu.dot_dimension_numbers<[1], [0], [0], [1], [0, 0, 1, 1], [], []>} : vector<1x32xf32>, vector<32x128xf32>, vector<1x128xf32> -> vector<1x128xf32>
    %c1_409 = arith.constant 1 : index
    %c0_410 = arith.constant 0 : index
    %c0_411 = arith.constant 0 : index
    %841 = vector.load %arg2[%c1_409, %c0_410, %c0_411] : memref<5x32x128xf32, #tpu.memory_space<vmem>>, vector<1x32x128xf32>
    %842 = vector.shape_cast %841 : vector<1x32x128xf32> to vector<32x128xf32>
    %cst_412 = arith.constant dense<0.000000e+00> : vector<1x128xf32>
    %843 = tpu.matmul %748, %842, %cst_412 {dimension_numbers = #tpu.dot_dimension_numbers<[1], [0], [0], [1], [0, 0, 1, 1], [], []>} : vector<1x32xf32>, vector<32x128xf32>, vector<1x128xf32> -> vector<1x128xf32>
    %844 = arith.addf %840, %843 : vector<1x128xf32>
    %c1_413 = arith.constant 1 : index
    %c0_414 = arith.constant 0 : index
    %c0_415 = arith.constant 0 : index
    %845 = vector.load %arg3[%c1_413, %c0_414, %c0_415] : memref<5x1x128xf32, #tpu.memory_space<vmem>>, vector<1x1x128xf32>
    %846 = vector.shape_cast %845 : vector<1x1x128xf32> to vector<1x128xf32>
    %847 = arith.addf %844, %846 : vector<1x128xf32>
    %848 = arith.negf %847 : vector<1x128xf32>
    %849 = math.exp %848 : vector<1x128xf32>
    %cst_416 = arith.constant 1.000000e+00 : f32
    %850 = vector.broadcast %cst_416 : f32 to vector<1x128xf32>
    %851 = arith.addf %850, %849 : vector<1x128xf32>
    %852 = arith.divf %850, %851 : vector<1x128xf32>
    %853 = vector.extract_strided_slice %852 {offsets = [0, 0], sizes = [1, 32], strides = [1, 1]} : vector<1x128xf32> to vector<1x32xf32>
    %854 = vector.extract_strided_slice %852 {offsets = [0, 32], sizes = [1, 32], strides = [1, 1]} : vector<1x128xf32> to vector<1x32xf32>
    %855 = vector.extract_strided_slice %852 {offsets = [0, 64], sizes = [1, 32], strides = [1, 1]} : vector<1x128xf32> to vector<1x32xf32>
    %cst_417 = arith.constant 2.000000e+00 : f32
    %856 = vector.broadcast %cst_417 : f32 to vector<1x32xf32>
    %857 = arith.mulf %856, %855 : vector<1x32xf32>
    %cst_418 = arith.constant 1.000000e+00 : f32
    %858 = vector.broadcast %cst_418 : f32 to vector<1x32xf32>
    %859 = arith.subf %857, %858 : vector<1x32xf32>
    %860 = vector.extract_strided_slice %852 {offsets = [0, 96], sizes = [1, 32], strides = [1, 1]} : vector<1x128xf32> to vector<1x32xf32>
    %861 = arith.mulf %854, %746 : vector<1x32xf32>
    %862 = arith.mulf %853, %859 : vector<1x32xf32>
    %863 = arith.addf %861, %862 : vector<1x32xf32>
    %864 = math.tanh %863 : vector<1x32xf32>
    %865 = arith.mulf %860, %864 : vector<1x32xf32>
    %c2_419 = arith.constant 2 : index
    %c0_420 = arith.constant 0 : index
    %c0_421 = arith.constant 0 : index
    %866 = vector.load %arg1[%c2_419, %c0_420, %c0_421] : memref<5x32x128xf32, #tpu.memory_space<vmem>>, vector<1x32x128xf32>
    %867 = vector.shape_cast %866 : vector<1x32x128xf32> to vector<32x128xf32>
    %cst_422 = arith.constant dense<0.000000e+00> : vector<1x128xf32>
    %868 = tpu.matmul %748, %867, %cst_422 {dimension_numbers = #tpu.dot_dimension_numbers<[1], [0], [0], [1], [0, 0, 1, 1], [], []>} : vector<1x32xf32>, vector<32x128xf32>, vector<1x128xf32> -> vector<1x128xf32>
    %c2_423 = arith.constant 2 : index
    %c0_424 = arith.constant 0 : index
    %c0_425 = arith.constant 0 : index
    %869 = vector.load %arg2[%c2_423, %c0_424, %c0_425] : memref<5x32x128xf32, #tpu.memory_space<vmem>>, vector<1x32x128xf32>
    %870 = vector.shape_cast %869 : vector<1x32x128xf32> to vector<32x128xf32>
    %cst_426 = arith.constant dense<0.000000e+00> : vector<1x128xf32>
    %871 = tpu.matmul %776, %870, %cst_426 {dimension_numbers = #tpu.dot_dimension_numbers<[1], [0], [0], [1], [0, 0, 1, 1], [], []>} : vector<1x32xf32>, vector<32x128xf32>, vector<1x128xf32> -> vector<1x128xf32>
    %872 = arith.addf %868, %871 : vector<1x128xf32>
    %c2_427 = arith.constant 2 : index
    %c0_428 = arith.constant 0 : index
    %c0_429 = arith.constant 0 : index
    %873 = vector.load %arg3[%c2_427, %c0_428, %c0_429] : memref<5x1x128xf32, #tpu.memory_space<vmem>>, vector<1x1x128xf32>
    %874 = vector.shape_cast %873 : vector<1x1x128xf32> to vector<1x128xf32>
    %875 = arith.addf %872, %874 : vector<1x128xf32>
    %876 = arith.negf %875 : vector<1x128xf32>
    %877 = math.exp %876 : vector<1x128xf32>
    %cst_430 = arith.constant 1.000000e+00 : f32
    %878 = vector.broadcast %cst_430 : f32 to vector<1x128xf32>
    %879 = arith.addf %878, %877 : vector<1x128xf32>
    %880 = arith.divf %878, %879 : vector<1x128xf32>
    %881 = vector.extract_strided_slice %880 {offsets = [0, 0], sizes = [1, 32], strides = [1, 1]} : vector<1x128xf32> to vector<1x32xf32>
    %882 = vector.extract_strided_slice %880 {offsets = [0, 32], sizes = [1, 32], strides = [1, 1]} : vector<1x128xf32> to vector<1x32xf32>
    %883 = vector.extract_strided_slice %880 {offsets = [0, 64], sizes = [1, 32], strides = [1, 1]} : vector<1x128xf32> to vector<1x32xf32>
    %cst_431 = arith.constant 2.000000e+00 : f32
    %884 = vector.broadcast %cst_431 : f32 to vector<1x32xf32>
    %885 = arith.mulf %884, %883 : vector<1x32xf32>
    %cst_432 = arith.constant 1.000000e+00 : f32
    %886 = vector.broadcast %cst_432 : f32 to vector<1x32xf32>
    %887 = arith.subf %885, %886 : vector<1x32xf32>
    %888 = vector.extract_strided_slice %880 {offsets = [0, 96], sizes = [1, 32], strides = [1, 1]} : vector<1x128xf32> to vector<1x32xf32>
    %889 = arith.mulf %882, %774 : vector<1x32xf32>
    %890 = arith.mulf %881, %887 : vector<1x32xf32>
    %891 = arith.addf %889, %890 : vector<1x32xf32>
    %892 = math.tanh %891 : vector<1x32xf32>
    %893 = arith.mulf %888, %892 : vector<1x32xf32>
    %c3_433 = arith.constant 3 : index
    %c0_434 = arith.constant 0 : index
    %c0_435 = arith.constant 0 : index
    %894 = vector.load %arg1[%c3_433, %c0_434, %c0_435] : memref<5x32x128xf32, #tpu.memory_space<vmem>>, vector<1x32x128xf32>
    %895 = vector.shape_cast %894 : vector<1x32x128xf32> to vector<32x128xf32>
    %cst_436 = arith.constant dense<0.000000e+00> : vector<1x128xf32>
    %896 = tpu.matmul %776, %895, %cst_436 {dimension_numbers = #tpu.dot_dimension_numbers<[1], [0], [0], [1], [0, 0, 1, 1], [], []>} : vector<1x32xf32>, vector<32x128xf32>, vector<1x128xf32> -> vector<1x128xf32>
    %c3_437 = arith.constant 3 : index
    %c0_438 = arith.constant 0 : index
    %c0_439 = arith.constant 0 : index
    %897 = vector.load %arg2[%c3_437, %c0_438, %c0_439] : memref<5x32x128xf32, #tpu.memory_space<vmem>>, vector<1x32x128xf32>
    %898 = vector.shape_cast %897 : vector<1x32x128xf32> to vector<32x128xf32>
    %cst_440 = arith.constant dense<0.000000e+00> : vector<1x128xf32>
    %899 = tpu.matmul %804, %898, %cst_440 {dimension_numbers = #tpu.dot_dimension_numbers<[1], [0], [0], [1], [0, 0, 1, 1], [], []>} : vector<1x32xf32>, vector<32x128xf32>, vector<1x128xf32> -> vector<1x128xf32>
    %900 = arith.addf %896, %899 : vector<1x128xf32>
    %c3_441 = arith.constant 3 : index
    %c0_442 = arith.constant 0 : index
    %c0_443 = arith.constant 0 : index
    %901 = vector.load %arg3[%c3_441, %c0_442, %c0_443] : memref<5x1x128xf32, #tpu.memory_space<vmem>>, vector<1x1x128xf32>
    %902 = vector.shape_cast %901 : vector<1x1x128xf32> to vector<1x128xf32>
    %903 = arith.addf %900, %902 : vector<1x128xf32>
    %904 = arith.negf %903 : vector<1x128xf32>
    %905 = math.exp %904 : vector<1x128xf32>
    %cst_444 = arith.constant 1.000000e+00 : f32
    %906 = vector.broadcast %cst_444 : f32 to vector<1x128xf32>
    %907 = arith.addf %906, %905 : vector<1x128xf32>
    %908 = arith.divf %906, %907 : vector<1x128xf32>
    %909 = vector.extract_strided_slice %908 {offsets = [0, 0], sizes = [1, 32], strides = [1, 1]} : vector<1x128xf32> to vector<1x32xf32>
    %910 = vector.extract_strided_slice %908 {offsets = [0, 32], sizes = [1, 32], strides = [1, 1]} : vector<1x128xf32> to vector<1x32xf32>
    %911 = vector.extract_strided_slice %908 {offsets = [0, 64], sizes = [1, 32], strides = [1, 1]} : vector<1x128xf32> to vector<1x32xf32>
    %cst_445 = arith.constant 2.000000e+00 : f32
    %912 = vector.broadcast %cst_445 : f32 to vector<1x32xf32>
    %913 = arith.mulf %912, %911 : vector<1x32xf32>
    %cst_446 = arith.constant 1.000000e+00 : f32
    %914 = vector.broadcast %cst_446 : f32 to vector<1x32xf32>
    %915 = arith.subf %913, %914 : vector<1x32xf32>
    %916 = vector.extract_strided_slice %908 {offsets = [0, 96], sizes = [1, 32], strides = [1, 1]} : vector<1x128xf32> to vector<1x32xf32>
    %917 = arith.mulf %910, %802 : vector<1x32xf32>
    %918 = arith.mulf %909, %915 : vector<1x32xf32>
    %919 = arith.addf %917, %918 : vector<1x32xf32>
    %920 = math.tanh %919 : vector<1x32xf32>
    %921 = arith.mulf %916, %920 : vector<1x32xf32>
    %c4_447 = arith.constant 4 : index
    %c0_448 = arith.constant 0 : index
    %c0_449 = arith.constant 0 : index
    %922 = vector.load %arg1[%c4_447, %c0_448, %c0_449] : memref<5x32x128xf32, #tpu.memory_space<vmem>>, vector<1x32x128xf32>
    %923 = vector.shape_cast %922 : vector<1x32x128xf32> to vector<32x128xf32>
    %cst_450 = arith.constant dense<0.000000e+00> : vector<1x128xf32>
    %924 = tpu.matmul %804, %923, %cst_450 {dimension_numbers = #tpu.dot_dimension_numbers<[1], [0], [0], [1], [0, 0, 1, 1], [], []>} : vector<1x32xf32>, vector<32x128xf32>, vector<1x128xf32> -> vector<1x128xf32>
    %c4_451 = arith.constant 4 : index
    %c0_452 = arith.constant 0 : index
    %c0_453 = arith.constant 0 : index
    %925 = vector.load %arg2[%c4_451, %c0_452, %c0_453] : memref<5x32x128xf32, #tpu.memory_space<vmem>>, vector<1x32x128xf32>
    %926 = vector.shape_cast %925 : vector<1x32x128xf32> to vector<32x128xf32>
    %cst_454 = arith.constant dense<0.000000e+00> : vector<1x128xf32>
    %927 = tpu.matmul %832, %926, %cst_454 {dimension_numbers = #tpu.dot_dimension_numbers<[1], [0], [0], [1], [0, 0, 1, 1], [], []>} : vector<1x32xf32>, vector<32x128xf32>, vector<1x128xf32> -> vector<1x128xf32>
    %928 = arith.addf %924, %927 : vector<1x128xf32>
    %c4_455 = arith.constant 4 : index
    %c0_456 = arith.constant 0 : index
    %c0_457 = arith.constant 0 : index
    %929 = vector.load %arg3[%c4_455, %c0_456, %c0_457] : memref<5x1x128xf32, #tpu.memory_space<vmem>>, vector<1x1x128xf32>
    %930 = vector.shape_cast %929 : vector<1x1x128xf32> to vector<1x128xf32>
    %931 = arith.addf %928, %930 : vector<1x128xf32>
    %932 = arith.negf %931 : vector<1x128xf32>
    %933 = math.exp %932 : vector<1x128xf32>
    %cst_458 = arith.constant 1.000000e+00 : f32
    %934 = vector.broadcast %cst_458 : f32 to vector<1x128xf32>
    %935 = arith.addf %934, %933 : vector<1x128xf32>
    %936 = arith.divf %934, %935 : vector<1x128xf32>
    %937 = vector.extract_strided_slice %936 {offsets = [0, 0], sizes = [1, 32], strides = [1, 1]} : vector<1x128xf32> to vector<1x32xf32>
    %938 = vector.extract_strided_slice %936 {offsets = [0, 32], sizes = [1, 32], strides = [1, 1]} : vector<1x128xf32> to vector<1x32xf32>
    %939 = vector.extract_strided_slice %936 {offsets = [0, 64], sizes = [1, 32], strides = [1, 1]} : vector<1x128xf32> to vector<1x32xf32>
    %cst_459 = arith.constant 2.000000e+00 : f32
    %940 = vector.broadcast %cst_459 : f32 to vector<1x32xf32>
    %941 = arith.mulf %940, %939 : vector<1x32xf32>
    %cst_460 = arith.constant 1.000000e+00 : f32
    %942 = vector.broadcast %cst_460 : f32 to vector<1x32xf32>
    %943 = arith.subf %941, %942 : vector<1x32xf32>
    %944 = vector.extract_strided_slice %936 {offsets = [0, 96], sizes = [1, 32], strides = [1, 1]} : vector<1x128xf32> to vector<1x32xf32>
    %945 = arith.mulf %938, %830 : vector<1x32xf32>
    %946 = arith.mulf %937, %943 : vector<1x32xf32>
    %947 = arith.addf %945, %946 : vector<1x32xf32>
    %948 = math.tanh %947 : vector<1x32xf32>
    %949 = arith.mulf %944, %948 : vector<1x32xf32>
    %c0_461 = arith.constant 0 : index
    %c0_462 = arith.constant 0 : index
    %950 = vector.load %arg4[%c0_461, %c0_462] : memref<32x128xf32, #tpu.memory_space<vmem>>, vector<32x128xf32>
    %cst_463 = arith.constant dense<0.000000e+00> : vector<1x128xf32>
    %951 = tpu.matmul %949, %950, %cst_463 {dimension_numbers = #tpu.dot_dimension_numbers<[1], [0], [0], [1], [0, 0, 1, 1], [], []>} : vector<1x32xf32>, vector<32x128xf32>, vector<1x128xf32> -> vector<1x128xf32>
    %c0_464 = arith.constant 0 : index
    %c0_465 = arith.constant 0 : index
    %952 = vector.load %arg5[%c0_464, %c0_465] : memref<1x128xf32, #tpu.memory_space<vmem>>, vector<1x128xf32>
    %953 = arith.addf %951, %952 : vector<1x128xf32>
    %c4_466 = arith.constant 4 : index
    %c0_467 = arith.constant 0 : index
    %954 = vector.load %arg6[%c4_466, %c0_467] : memref<8x128xf32, #tpu.memory_space<vmem>>, vector<1x128xf32>
    tpu.vector_store %arg6[%c4_466, %c0_467], %953 {strides = array<i32>} : memref<8x128xf32, #tpu.memory_space<vmem>>, vector<1x128xf32>,
    %c2_468 = arith.constant 2 : index
    %c0_469 = arith.constant 0 : index
    %c0_470 = arith.constant 0 : index
    %955 = vector.load %arg1[%c2_468, %c0_469, %c0_470] : memref<5x32x128xf32, #tpu.memory_space<vmem>>, vector<1x32x128xf32>
    %956 = vector.shape_cast %955 : vector<1x32x128xf32> to vector<32x128xf32>
    %cst_471 = arith.constant dense<0.000000e+00> : vector<1x128xf32>
    %957 = tpu.matmul %865, %956, %cst_471 {dimension_numbers = #tpu.dot_dimension_numbers<[1], [0], [0], [1], [0, 0, 1, 1], [], []>} : vector<1x32xf32>, vector<32x128xf32>, vector<1x128xf32> -> vector<1x128xf32>
    %c2_472 = arith.constant 2 : index
    %c0_473 = arith.constant 0 : index
    %c0_474 = arith.constant 0 : index
    %958 = vector.load %arg2[%c2_472, %c0_473, %c0_474] : memref<5x32x128xf32, #tpu.memory_space<vmem>>, vector<1x32x128xf32>
    %959 = vector.shape_cast %958 : vector<1x32x128xf32> to vector<32x128xf32>
    %cst_475 = arith.constant dense<0.000000e+00> : vector<1x128xf32>
    %960 = tpu.matmul %893, %959, %cst_475 {dimension_numbers = #tpu.dot_dimension_numbers<[1], [0], [0], [1], [0, 0, 1, 1], [], []>} : vector<1x32xf32>, vector<32x128xf32>, vector<1x128xf32> -> vector<1x128xf32>
    %961 = arith.addf %957, %960 : vector<1x128xf32>
    %c2_476 = arith.constant 2 : index
    %c0_477 = arith.constant 0 : index
    %c0_478 = arith.constant 0 : index
    %962 = vector.load %arg3[%c2_476, %c0_477, %c0_478] : memref<5x1x128xf32, #tpu.memory_space<vmem>>, vector<1x1x128xf32>
    %963 = vector.shape_cast %962 : vector<1x1x128xf32> to vector<1x128xf32>
    %964 = arith.addf %961, %963 : vector<1x128xf32>
    %965 = arith.negf %964 : vector<1x128xf32>
    %966 = math.exp %965 : vector<1x128xf32>
    %cst_479 = arith.constant 1.000000e+00 : f32
    %967 = vector.broadcast %cst_479 : f32 to vector<1x128xf32>
    %968 = arith.addf %967, %966 : vector<1x128xf32>
    %969 = arith.divf %967, %968 : vector<1x128xf32>
    %970 = vector.extract_strided_slice %969 {offsets = [0, 0], sizes = [1, 32], strides = [1, 1]} : vector<1x128xf32> to vector<1x32xf32>
    %971 = vector.extract_strided_slice %969 {offsets = [0, 32], sizes = [1, 32], strides = [1, 1]} : vector<1x128xf32> to vector<1x32xf32>
    %972 = vector.extract_strided_slice %969 {offsets = [0, 64], sizes = [1, 32], strides = [1, 1]} : vector<1x128xf32> to vector<1x32xf32>
    %cst_480 = arith.constant 2.000000e+00 : f32
    %973 = vector.broadcast %cst_480 : f32 to vector<1x32xf32>
    %974 = arith.mulf %973, %972 : vector<1x32xf32>
    %cst_481 = arith.constant 1.000000e+00 : f32
    %975 = vector.broadcast %cst_481 : f32 to vector<1x32xf32>
    %976 = arith.subf %974, %975 : vector<1x32xf32>
    %977 = vector.extract_strided_slice %969 {offsets = [0, 96], sizes = [1, 32], strides = [1, 1]} : vector<1x128xf32> to vector<1x32xf32>
    %978 = arith.mulf %971, %891 : vector<1x32xf32>
    %979 = arith.mulf %970, %976 : vector<1x32xf32>
    %980 = arith.addf %978, %979 : vector<1x32xf32>
    %981 = math.tanh %980 : vector<1x32xf32>
    %982 = arith.mulf %977, %981 : vector<1x32xf32>
    %c3_482 = arith.constant 3 : index
    %c0_483 = arith.constant 0 : index
    %c0_484 = arith.constant 0 : index
    %983 = vector.load %arg1[%c3_482, %c0_483, %c0_484] : memref<5x32x128xf32, #tpu.memory_space<vmem>>, vector<1x32x128xf32>
    %984 = vector.shape_cast %983 : vector<1x32x128xf32> to vector<32x128xf32>
    %cst_485 = arith.constant dense<0.000000e+00> : vector<1x128xf32>
    %985 = tpu.matmul %893, %984, %cst_485 {dimension_numbers = #tpu.dot_dimension_numbers<[1], [0], [0], [1], [0, 0, 1, 1], [], []>} : vector<1x32xf32>, vector<32x128xf32>, vector<1x128xf32> -> vector<1x128xf32>
    %c3_486 = arith.constant 3 : index
    %c0_487 = arith.constant 0 : index
    %c0_488 = arith.constant 0 : index
    %986 = vector.load %arg2[%c3_486, %c0_487, %c0_488] : memref<5x32x128xf32, #tpu.memory_space<vmem>>, vector<1x32x128xf32>
    %987 = vector.shape_cast %986 : vector<1x32x128xf32> to vector<32x128xf32>
    %cst_489 = arith.constant dense<0.000000e+00> : vector<1x128xf32>
    %988 = tpu.matmul %921, %987, %cst_489 {dimension_numbers = #tpu.dot_dimension_numbers<[1], [0], [0], [1], [0, 0, 1, 1], [], []>} : vector<1x32xf32>, vector<32x128xf32>, vector<1x128xf32> -> vector<1x128xf32>
    %989 = arith.addf %985, %988 : vector<1x128xf32>
    %c3_490 = arith.constant 3 : index
    %c0_491 = arith.constant 0 : index
    %c0_492 = arith.constant 0 : index
    %990 = vector.load %arg3[%c3_490, %c0_491, %c0_492] : memref<5x1x128xf32, #tpu.memory_space<vmem>>, vector<1x1x128xf32>
    %991 = vector.shape_cast %990 : vector<1x1x128xf32> to vector<1x128xf32>
    %992 = arith.addf %989, %991 : vector<1x128xf32>
    %993 = arith.negf %992 : vector<1x128xf32>
    %994 = math.exp %993 : vector<1x128xf32>
    %cst_493 = arith.constant 1.000000e+00 : f32
    %995 = vector.broadcast %cst_493 : f32 to vector<1x128xf32>
    %996 = arith.addf %995, %994 : vector<1x128xf32>
    %997 = arith.divf %995, %996 : vector<1x128xf32>
    %998 = vector.extract_strided_slice %997 {offsets = [0, 0], sizes = [1, 32], strides = [1, 1]} : vector<1x128xf32> to vector<1x32xf32>
    %999 = vector.extract_strided_slice %997 {offsets = [0, 32], sizes = [1, 32], strides = [1, 1]} : vector<1x128xf32> to vector<1x32xf32>
    %1000 = vector.extract_strided_slice %997 {offsets = [0, 64], sizes = [1, 32], strides = [1, 1]} : vector<1x128xf32> to vector<1x32xf32>
    %cst_494 = arith.constant 2.000000e+00 : f32
    %1001 = vector.broadcast %cst_494 : f32 to vector<1x32xf32>
    %1002 = arith.mulf %1001, %1000 : vector<1x32xf32>
    %cst_495 = arith.constant 1.000000e+00 : f32
    %1003 = vector.broadcast %cst_495 : f32 to vector<1x32xf32>
    %1004 = arith.subf %1002, %1003 : vector<1x32xf32>
    %1005 = vector.extract_strided_slice %997 {offsets = [0, 96], sizes = [1, 32], strides = [1, 1]} : vector<1x128xf32> to vector<1x32xf32>
    %1006 = arith.mulf %999, %919 : vector<1x32xf32>
    %1007 = arith.mulf %998, %1004 : vector<1x32xf32>
    %1008 = arith.addf %1006, %1007 : vector<1x32xf32>
    %1009 = math.tanh %1008 : vector<1x32xf32>
    %1010 = arith.mulf %1005, %1009 : vector<1x32xf32>
    %c4_496 = arith.constant 4 : index
    %c0_497 = arith.constant 0 : index
    %c0_498 = arith.constant 0 : index
    %1011 = vector.load %arg1[%c4_496, %c0_497, %c0_498] : memref<5x32x128xf32, #tpu.memory_space<vmem>>, vector<1x32x128xf32>
    %1012 = vector.shape_cast %1011 : vector<1x32x128xf32> to vector<32x128xf32>
    %cst_499 = arith.constant dense<0.000000e+00> : vector<1x128xf32>
    %1013 = tpu.matmul %921, %1012, %cst_499 {dimension_numbers = #tpu.dot_dimension_numbers<[1], [0], [0], [1], [0, 0, 1, 1], [], []>} : vector<1x32xf32>, vector<32x128xf32>, vector<1x128xf32> -> vector<1x128xf32>
    %c4_500 = arith.constant 4 : index
    %c0_501 = arith.constant 0 : index
    %c0_502 = arith.constant 0 : index
    %1014 = vector.load %arg2[%c4_500, %c0_501, %c0_502] : memref<5x32x128xf32, #tpu.memory_space<vmem>>, vector<1x32x128xf32>
    %1015 = vector.shape_cast %1014 : vector<1x32x128xf32> to vector<32x128xf32>
    %cst_503 = arith.constant dense<0.000000e+00> : vector<1x128xf32>
    %1016 = tpu.matmul %949, %1015, %cst_503 {dimension_numbers = #tpu.dot_dimension_numbers<[1], [0], [0], [1], [0, 0, 1, 1], [], []>} : vector<1x32xf32>, vector<32x128xf32>, vector<1x128xf32> -> vector<1x128xf32>
    %1017 = arith.addf %1013, %1016 : vector<1x128xf32>
    %c4_504 = arith.constant 4 : index
    %c0_505 = arith.constant 0 : index
    %c0_506 = arith.constant 0 : index
    %1018 = vector.load %arg3[%c4_504, %c0_505, %c0_506] : memref<5x1x128xf32, #tpu.memory_space<vmem>>, vector<1x1x128xf32>
    %1019 = vector.shape_cast %1018 : vector<1x1x128xf32> to vector<1x128xf32>
    %1020 = arith.addf %1017, %1019 : vector<1x128xf32>
    %1021 = arith.negf %1020 : vector<1x128xf32>
    %1022 = math.exp %1021 : vector<1x128xf32>
    %cst_507 = arith.constant 1.000000e+00 : f32
    %1023 = vector.broadcast %cst_507 : f32 to vector<1x128xf32>
    %1024 = arith.addf %1023, %1022 : vector<1x128xf32>
    %1025 = arith.divf %1023, %1024 : vector<1x128xf32>
    %1026 = vector.extract_strided_slice %1025 {offsets = [0, 0], sizes = [1, 32], strides = [1, 1]} : vector<1x128xf32> to vector<1x32xf32>
    %1027 = vector.extract_strided_slice %1025 {offsets = [0, 32], sizes = [1, 32], strides = [1, 1]} : vector<1x128xf32> to vector<1x32xf32>
    %1028 = vector.extract_strided_slice %1025 {offsets = [0, 64], sizes = [1, 32], strides = [1, 1]} : vector<1x128xf32> to vector<1x32xf32>
    %cst_508 = arith.constant 2.000000e+00 : f32
    %1029 = vector.broadcast %cst_508 : f32 to vector<1x32xf32>
    %1030 = arith.mulf %1029, %1028 : vector<1x32xf32>
    %cst_509 = arith.constant 1.000000e+00 : f32
    %1031 = vector.broadcast %cst_509 : f32 to vector<1x32xf32>
    %1032 = arith.subf %1030, %1031 : vector<1x32xf32>
    %1033 = vector.extract_strided_slice %1025 {offsets = [0, 96], sizes = [1, 32], strides = [1, 1]} : vector<1x128xf32> to vector<1x32xf32>
    %1034 = arith.mulf %1027, %947 : vector<1x32xf32>
    %1035 = arith.mulf %1026, %1032 : vector<1x32xf32>
    %1036 = arith.addf %1034, %1035 : vector<1x32xf32>
    %1037 = math.tanh %1036 : vector<1x32xf32>
    %1038 = arith.mulf %1033, %1037 : vector<1x32xf32>
    %c0_510 = arith.constant 0 : index
    %c0_511 = arith.constant 0 : index
    %1039 = vector.load %arg4[%c0_510, %c0_511] : memref<32x128xf32, #tpu.memory_space<vmem>>, vector<32x128xf32>
    %cst_512 = arith.constant dense<0.000000e+00> : vector<1x128xf32>
    %1040 = tpu.matmul %1038, %1039, %cst_512 {dimension_numbers = #tpu.dot_dimension_numbers<[1], [0], [0], [1], [0, 0, 1, 1], [], []>} : vector<1x32xf32>, vector<32x128xf32>, vector<1x128xf32> -> vector<1x128xf32>
    %c0_513 = arith.constant 0 : index
    %c0_514 = arith.constant 0 : index
    %1041 = vector.load %arg5[%c0_513, %c0_514] : memref<1x128xf32, #tpu.memory_space<vmem>>, vector<1x128xf32>
    %1042 = arith.addf %1040, %1041 : vector<1x128xf32>
    %c5 = arith.constant 5 : index
    %c0_515 = arith.constant 0 : index
    %1043 = vector.load %arg6[%c5, %c0_515] : memref<8x128xf32, #tpu.memory_space<vmem>>, vector<1x128xf32>
    tpu.vector_store %arg6[%c5, %c0_515], %1042 {strides = array<i32>} : memref<8x128xf32, #tpu.memory_space<vmem>>, vector<1x128xf32>,
    %c3_516 = arith.constant 3 : index
    %c0_517 = arith.constant 0 : index
    %c0_518 = arith.constant 0 : index
    %1044 = vector.load %arg1[%c3_516, %c0_517, %c0_518] : memref<5x32x128xf32, #tpu.memory_space<vmem>>, vector<1x32x128xf32>
    %1045 = vector.shape_cast %1044 : vector<1x32x128xf32> to vector<32x128xf32>
    %cst_519 = arith.constant dense<0.000000e+00> : vector<1x128xf32>
    %1046 = tpu.matmul %982, %1045, %cst_519 {dimension_numbers = #tpu.dot_dimension_numbers<[1], [0], [0], [1], [0, 0, 1, 1], [], []>} : vector<1x32xf32>, vector<32x128xf32>, vector<1x128xf32> -> vector<1x128xf32>
    %c3_520 = arith.constant 3 : index
    %c0_521 = arith.constant 0 : index
    %c0_522 = arith.constant 0 : index
    %1047 = vector.load %arg2[%c3_520, %c0_521, %c0_522] : memref<5x32x128xf32, #tpu.memory_space<vmem>>, vector<1x32x128xf32>
    %1048 = vector.shape_cast %1047 : vector<1x32x128xf32> to vector<32x128xf32>
    %cst_523 = arith.constant dense<0.000000e+00> : vector<1x128xf32>
    %1049 = tpu.matmul %1010, %1048, %cst_523 {dimension_numbers = #tpu.dot_dimension_numbers<[1], [0], [0], [1], [0, 0, 1, 1], [], []>} : vector<1x32xf32>, vector<32x128xf32>, vector<1x128xf32> -> vector<1x128xf32>
    %1050 = arith.addf %1046, %1049 : vector<1x128xf32>
    %c3_524 = arith.constant 3 : index
    %c0_525 = arith.constant 0 : index
    %c0_526 = arith.constant 0 : index
    %1051 = vector.load %arg3[%c3_524, %c0_525, %c0_526] : memref<5x1x128xf32, #tpu.memory_space<vmem>>, vector<1x1x128xf32>
    %1052 = vector.shape_cast %1051 : vector<1x1x128xf32> to vector<1x128xf32>
    %1053 = arith.addf %1050, %1052 : vector<1x128xf32>
    %1054 = arith.negf %1053 : vector<1x128xf32>
    %1055 = math.exp %1054 : vector<1x128xf32>
    %cst_527 = arith.constant 1.000000e+00 : f32
    %1056 = vector.broadcast %cst_527 : f32 to vector<1x128xf32>
    %1057 = arith.addf %1056, %1055 : vector<1x128xf32>
    %1058 = arith.divf %1056, %1057 : vector<1x128xf32>
    %1059 = vector.extract_strided_slice %1058 {offsets = [0, 0], sizes = [1, 32], strides = [1, 1]} : vector<1x128xf32> to vector<1x32xf32>
    %1060 = vector.extract_strided_slice %1058 {offsets = [0, 32], sizes = [1, 32], strides = [1, 1]} : vector<1x128xf32> to vector<1x32xf32>
    %1061 = vector.extract_strided_slice %1058 {offsets = [0, 64], sizes = [1, 32], strides = [1, 1]} : vector<1x128xf32> to vector<1x32xf32>
    %cst_528 = arith.constant 2.000000e+00 : f32
    %1062 = vector.broadcast %cst_528 : f32 to vector<1x32xf32>
    %1063 = arith.mulf %1062, %1061 : vector<1x32xf32>
    %cst_529 = arith.constant 1.000000e+00 : f32
    %1064 = vector.broadcast %cst_529 : f32 to vector<1x32xf32>
    %1065 = arith.subf %1063, %1064 : vector<1x32xf32>
    %1066 = vector.extract_strided_slice %1058 {offsets = [0, 96], sizes = [1, 32], strides = [1, 1]} : vector<1x128xf32> to vector<1x32xf32>
    %1067 = arith.mulf %1060, %1008 : vector<1x32xf32>
    %1068 = arith.mulf %1059, %1065 : vector<1x32xf32>
    %1069 = arith.addf %1067, %1068 : vector<1x32xf32>
    %1070 = math.tanh %1069 : vector<1x32xf32>
    %1071 = arith.mulf %1066, %1070 : vector<1x32xf32>
    %c4_530 = arith.constant 4 : index
    %c0_531 = arith.constant 0 : index
    %c0_532 = arith.constant 0 : index
    %1072 = vector.load %arg1[%c4_530, %c0_531, %c0_532] : memref<5x32x128xf32, #tpu.memory_space<vmem>>, vector<1x32x128xf32>
    %1073 = vector.shape_cast %1072 : vector<1x32x128xf32> to vector<32x128xf32>
    %cst_533 = arith.constant dense<0.000000e+00> : vector<1x128xf32>
    %1074 = tpu.matmul %1010, %1073, %cst_533 {dimension_numbers = #tpu.dot_dimension_numbers<[1], [0], [0], [1], [0, 0, 1, 1], [], []>} : vector<1x32xf32>, vector<32x128xf32>, vector<1x128xf32> -> vector<1x128xf32>
    %c4_534 = arith.constant 4 : index
    %c0_535 = arith.constant 0 : index
    %c0_536 = arith.constant 0 : index
    %1075 = vector.load %arg2[%c4_534, %c0_535, %c0_536] : memref<5x32x128xf32, #tpu.memory_space<vmem>>, vector<1x32x128xf32>
    %1076 = vector.shape_cast %1075 : vector<1x32x128xf32> to vector<32x128xf32>
    %cst_537 = arith.constant dense<0.000000e+00> : vector<1x128xf32>
    %1077 = tpu.matmul %1038, %1076, %cst_537 {dimension_numbers = #tpu.dot_dimension_numbers<[1], [0], [0], [1], [0, 0, 1, 1], [], []>} : vector<1x32xf32>, vector<32x128xf32>, vector<1x128xf32> -> vector<1x128xf32>
    %1078 = arith.addf %1074, %1077 : vector<1x128xf32>
    %c4_538 = arith.constant 4 : index
    %c0_539 = arith.constant 0 : index
    %c0_540 = arith.constant 0 : index
    %1079 = vector.load %arg3[%c4_538, %c0_539, %c0_540] : memref<5x1x128xf32, #tpu.memory_space<vmem>>, vector<1x1x128xf32>
    %1080 = vector.shape_cast %1079 : vector<1x1x128xf32> to vector<1x128xf32>
    %1081 = arith.addf %1078, %1080 : vector<1x128xf32>
    %1082 = arith.negf %1081 : vector<1x128xf32>
    %1083 = math.exp %1082 : vector<1x128xf32>
    %cst_541 = arith.constant 1.000000e+00 : f32
    %1084 = vector.broadcast %cst_541 : f32 to vector<1x128xf32>
    %1085 = arith.addf %1084, %1083 : vector<1x128xf32>
    %1086 = arith.divf %1084, %1085 : vector<1x128xf32>
    %1087 = vector.extract_strided_slice %1086 {offsets = [0, 0], sizes = [1, 32], strides = [1, 1]} : vector<1x128xf32> to vector<1x32xf32>
    %1088 = vector.extract_strided_slice %1086 {offsets = [0, 32], sizes = [1, 32], strides = [1, 1]} : vector<1x128xf32> to vector<1x32xf32>
    %1089 = vector.extract_strided_slice %1086 {offsets = [0, 64], sizes = [1, 32], strides = [1, 1]} : vector<1x128xf32> to vector<1x32xf32>
    %cst_542 = arith.constant 2.000000e+00 : f32
    %1090 = vector.broadcast %cst_542 : f32 to vector<1x32xf32>
    %1091 = arith.mulf %1090, %1089 : vector<1x32xf32>
    %cst_543 = arith.constant 1.000000e+00 : f32
    %1092 = vector.broadcast %cst_543 : f32 to vector<1x32xf32>
    %1093 = arith.subf %1091, %1092 : vector<1x32xf32>
    %1094 = vector.extract_strided_slice %1086 {offsets = [0, 96], sizes = [1, 32], strides = [1, 1]} : vector<1x128xf32> to vector<1x32xf32>
    %1095 = arith.mulf %1088, %1036 : vector<1x32xf32>
    %1096 = arith.mulf %1087, %1093 : vector<1x32xf32>
    %1097 = arith.addf %1095, %1096 : vector<1x32xf32>
    %1098 = math.tanh %1097 : vector<1x32xf32>
    %1099 = arith.mulf %1094, %1098 : vector<1x32xf32>
    %c0_544 = arith.constant 0 : index
    %c0_545 = arith.constant 0 : index
    %1100 = vector.load %arg4[%c0_544, %c0_545] : memref<32x128xf32, #tpu.memory_space<vmem>>, vector<32x128xf32>
    %cst_546 = arith.constant dense<0.000000e+00> : vector<1x128xf32>
    %1101 = tpu.matmul %1099, %1100, %cst_546 {dimension_numbers = #tpu.dot_dimension_numbers<[1], [0], [0], [1], [0, 0, 1, 1], [], []>} : vector<1x32xf32>, vector<32x128xf32>, vector<1x128xf32> -> vector<1x128xf32>
    %c0_547 = arith.constant 0 : index
    %c0_548 = arith.constant 0 : index
    %1102 = vector.load %arg5[%c0_547, %c0_548] : memref<1x128xf32, #tpu.memory_space<vmem>>, vector<1x128xf32>
    %1103 = arith.addf %1101, %1102 : vector<1x128xf32>
    %c6 = arith.constant 6 : index
    %c0_549 = arith.constant 0 : index
    %1104 = vector.load %arg6[%c6, %c0_549] : memref<8x128xf32, #tpu.memory_space<vmem>>, vector<1x128xf32>
    tpu.vector_store %arg6[%c6, %c0_549], %1103 {strides = array<i32>} : memref<8x128xf32, #tpu.memory_space<vmem>>, vector<1x128xf32>,
    %c4_550 = arith.constant 4 : index
    %c0_551 = arith.constant 0 : index
    %c0_552 = arith.constant 0 : index
    %1105 = vector.load %arg1[%c4_550, %c0_551, %c0_552] : memref<5x32x128xf32, #tpu.memory_space<vmem>>, vector<1x32x128xf32>
    %1106 = vector.shape_cast %1105 : vector<1x32x128xf32> to vector<32x128xf32>
    %cst_553 = arith.constant dense<0.000000e+00> : vector<1x128xf32>
    %1107 = tpu.matmul %1071, %1106, %cst_553 {dimension_numbers = #tpu.dot_dimension_numbers<[1], [0], [0], [1], [0, 0, 1, 1], [], []>} : vector<1x32xf32>, vector<32x128xf32>, vector<1x128xf32> -> vector<1x128xf32>
    %c4_554 = arith.constant 4 : index
    %c0_555 = arith.constant 0 : index
    %c0_556 = arith.constant 0 : index
    %1108 = vector.load %arg2[%c4_554, %c0_555, %c0_556] : memref<5x32x128xf32, #tpu.memory_space<vmem>>, vector<1x32x128xf32>
    %1109 = vector.shape_cast %1108 : vector<1x32x128xf32> to vector<32x128xf32>
    %cst_557 = arith.constant dense<0.000000e+00> : vector<1x128xf32>
    %1110 = tpu.matmul %1099, %1109, %cst_557 {dimension_numbers = #tpu.dot_dimension_numbers<[1], [0], [0], [1], [0, 0, 1, 1], [], []>} : vector<1x32xf32>, vector<32x128xf32>, vector<1x128xf32> -> vector<1x128xf32>
    %1111 = arith.addf %1107, %1110 : vector<1x128xf32>
    %c4_558 = arith.constant 4 : index
    %c0_559 = arith.constant 0 : index
    %c0_560 = arith.constant 0 : index
    %1112 = vector.load %arg3[%c4_558, %c0_559, %c0_560] : memref<5x1x128xf32, #tpu.memory_space<vmem>>, vector<1x1x128xf32>
    %1113 = vector.shape_cast %1112 : vector<1x1x128xf32> to vector<1x128xf32>
    %1114 = arith.addf %1111, %1113 : vector<1x128xf32>
    %1115 = arith.negf %1114 : vector<1x128xf32>
    %1116 = math.exp %1115 : vector<1x128xf32>
    %cst_561 = arith.constant 1.000000e+00 : f32
    %1117 = vector.broadcast %cst_561 : f32 to vector<1x128xf32>
    %1118 = arith.addf %1117, %1116 : vector<1x128xf32>
    %1119 = arith.divf %1117, %1118 : vector<1x128xf32>
    %1120 = vector.extract_strided_slice %1119 {offsets = [0, 0], sizes = [1, 32], strides = [1, 1]} : vector<1x128xf32> to vector<1x32xf32>
    %1121 = vector.extract_strided_slice %1119 {offsets = [0, 32], sizes = [1, 32], strides = [1, 1]} : vector<1x128xf32> to vector<1x32xf32>
    %1122 = vector.extract_strided_slice %1119 {offsets = [0, 64], sizes = [1, 32], strides = [1, 1]} : vector<1x128xf32> to vector<1x32xf32>
    %cst_562 = arith.constant 2.000000e+00 : f32
    %1123 = vector.broadcast %cst_562 : f32 to vector<1x32xf32>
    %1124 = arith.mulf %1123, %1122 : vector<1x32xf32>
    %cst_563 = arith.constant 1.000000e+00 : f32
    %1125 = vector.broadcast %cst_563 : f32 to vector<1x32xf32>
    %1126 = arith.subf %1124, %1125 : vector<1x32xf32>
    %1127 = vector.extract_strided_slice %1119 {offsets = [0, 96], sizes = [1, 32], strides = [1, 1]} : vector<1x128xf32> to vector<1x32xf32>
    %1128 = arith.mulf %1121, %1097 : vector<1x32xf32>
    %1129 = arith.mulf %1120, %1126 : vector<1x32xf32>
    %1130 = arith.addf %1128, %1129 : vector<1x32xf32>
    %1131 = math.tanh %1130 : vector<1x32xf32>
    %1132 = arith.mulf %1127, %1131 : vector<1x32xf32>
    %c0_564 = arith.constant 0 : index
    %c0_565 = arith.constant 0 : index
    %1133 = vector.load %arg4[%c0_564, %c0_565] : memref<32x128xf32, #tpu.memory_space<vmem>>, vector<32x128xf32>
    %cst_566 = arith.constant dense<0.000000e+00> : vector<1x128xf32>
    %1134 = tpu.matmul %1132, %1133, %cst_566 {dimension_numbers = #tpu.dot_dimension_numbers<[1], [0], [0], [1], [0, 0, 1, 1], [], []>} : vector<1x32xf32>, vector<32x128xf32>, vector<1x128xf32> -> vector<1x128xf32>
    %c0_567 = arith.constant 0 : index
    %c0_568 = arith.constant 0 : index
    %1135 = vector.load %arg5[%c0_567, %c0_568] : memref<1x128xf32, #tpu.memory_space<vmem>>, vector<1x128xf32>
    %1136 = arith.addf %1134, %1135 : vector<1x128xf32>
    %c7 = arith.constant 7 : index
    %c0_569 = arith.constant 0 : index
    %1137 = vector.load %arg6[%c7, %c0_569] : memref<8x128xf32, #tpu.memory_space<vmem>>, vector<1x128xf32>
    tpu.vector_store %arg6[%c7, %c0_569], %1136 {strides = array<i32>} : memref<8x128xf32, #tpu.memory_space<vmem>>, vector<1x128xf32>,
    return
  }
}

</mosaic_0001>

<bundles_post_ra>
// kernel: tpu_custom_call.1
= control target key start
LH: loop header
LB: loop body
LE: loop exit
PB: predicated region body
PF: predicated region fallthrough
CT: control target
= control target key end

     0   :  { %11 = vsyncpa [#allocation3], 0  ;;  %s11023_s0 = inlined_call_operand.hbm [shape: f32[8,32], index: 0, kind: input, shape index: {}]   ;;  %s11024_s1 = inlined_call_operand.hbm [shape: f32[5,32,128], index: 1, kind: input, shape index: {}]   ;;  %s11025_s2 = inlined_call_operand.hbm [shape: f32[5,32,128], index: 2, kind: input, shape index: {}]   ;;  %s11026_s3 = inlined_call_operand.vmem [shape: f32[5,1,128], index: 3, kind: input, shape index: {}]   ;;  %s11027_s4 = inlined_call_operand.hbm [shape: f32[32,128], index: 4, kind: input, shape index: {}]   ;;  %s11028_s5 = inlined_call_operand.vmem [shape: f32[1,128], index: 5, kind: input, shape index: {}]   ;;  %s11029_s6 = inlined_call_operand.hbm [shape: f32[8,128], index: 6, kind: output, shape index: {}]  }
   0x1   :  { %12 = vsyncpa [#allocation6], 0 }
   0x2   :  { %13 = vsyncpa [#allocation9], 0 }
   0x3   :  { %14 = vsyncpa [#allocation4], 0  ;;  %s9717_s21 = smov [#allocation5]   ;;  %s9599_s25 = scalar_lea.hbm %s11024_s1, 2560 }
   0x4   :  { %s30_s22 = sshll.u32 %s9717_s21, 4  ;;  %p9600_p0 = scmp.ne.s32.totalorder %s11024_s1, %s9599_s25  ;;  %s31_s22 = int_to_ptr.vmem [resolvable:$true] %s30_s22 }
   0x5   :  { %p9603_p1 = scmp.lt.u32.totalorder %s9599_s25, %s11024_s1 }
   0x7   :  { %p9605_p2 = pnand %p9603_p1, %p9600_p0 }
   0x9   :  { %9608 = shalt.err (!%p9605_p2)
}
   0xa   :  { %s9609_s30 = scalar_lea.vmem %s31_s22, 2560  ;;  %p9614_p4 = scmp.lt.s32.totalorder %s31_s22, %s31_s22 }
   0xb   :  { %p9610_p3 = scmp.ne.s32.totalorder %s31_s22, %s9609_s30  ;;  %p9615_p5 = scmp.lt.s32.totalorder %s9609_s30, %s9609_s30 }
   0xd   :  { %p9616_p6 = por %p9615_p5, %p9614_p4 }
   0xf   :  { %p9617_p7 = pnand %p9616_p6, %p9610_p3 }
  0x11   :  { %9620 = shalt.err (!%p9617_p7)
}
  0x12   :  { %s9718_s7 = smov 128   ;;  %s9719_s8 = smov 8  }
  0x13   :  { %36 = dma.hbm_to_vmem [thread:$0]  %s11024_s1, 2560, %s31_s22, [#allocation6], %s9718_s7, %s9718_s7, %s9719_s8  }
  0x14   :  { %s9720_s11 = smov [#allocation2]   ;;  %s9721_s13 = smov [#allocation7]  }
  0x15   :  { %s21_s12 = sshll.u32 %s9720_s11, 4  ;;  %s42_s14 = sshll.u32 %s9721_s13, 4  ;;  %s22_s12 = int_to_ptr.vmem [resolvable:$true] %s21_s12  ;;  %s43_s14 = int_to_ptr.vmem [resolvable:$true] %s42_s14 }
  0x16   :  { %s9621_s17 = scalar_lea.hbm %s11023_s0, 128 }
  0x17   :  { %p9622_p8 = scmp.ne.s32.totalorder %s11023_s0, %s9621_s17  ;;  %p9625_p9 = scmp.lt.u32.totalorder %s9621_s17, %s11023_s0 }
  0x19   :  { %p9627_p10 = pnand %p9625_p9, %p9622_p8 }
  0x1b   :  { %9630 = shalt.err (!%p9627_p10)
}
  0x1c   :  { %s9631_s1 = scalar_lea.vmem %s22_s12, 128  ;;  %p9636_p12 = scmp.lt.s32.totalorder %s22_s12, %s22_s12 }
  0x1d   :  { %p9632_p11 = scmp.ne.s32.totalorder %s22_s12, %s9631_s1  ;;  %p9637_p13 = scmp.lt.s32.totalorder %s9631_s1, %s9631_s1 }
  0x1f   :  { %p9638_p0 = por %p9637_p13, %p9636_p12 }
  0x21   :  { %p9639_p1 = pnand %p9638_p0, %p9632_p11 }
  0x23   :  { %9642 = shalt.err (!%p9639_p1)
}
  0x24   :  { %24 = dma.hbm_to_vmem [thread:$0]  %s11023_s0, 128, %s22_s12, [#allocation3]  }
  0x25   :  { %s9643_s26 = scalar_lea.hbm %s11025_s2, 2560 }
  0x26   :  { %p9644_p2 = scmp.ne.s32.totalorder %s11025_s2, %s9643_s26  ;;  %p9647_p3 = scmp.lt.u32.totalorder %s9643_s26, %s11025_s2 }
  0x28   :  { %p9649_p4 = pnand %p9647_p3, %p9644_p2 }
  0x2a   :  { %9652 = shalt.err (!%p9649_p4)
}
  0x2b   :  { %s9653_s9 = scalar_lea.vmem %s43_s14, 2560  ;;  %p9658_p6 = scmp.lt.s32.totalorder %s43_s14, %s43_s14 }
  0x2c   :  { %p9654_p5 = scmp.ne.s32.totalorder %s43_s14, %s9653_s9  ;;  %p9659_p7 = scmp.lt.s32.totalorder %s9653_s9, %s9653_s9 }
  0x2e   :  { %p9660_p8 = por %p9659_p7, %p9658_p6 }
  0x30   :  { %p9661_p9 = pnand %p9660_p8, %p9654_p5 }
  0x32   :  { %9664 = shalt.err (!%p9661_p9)
}
  0x33   :  { %48 = dma.hbm_to_vmem [thread:$0]  %s11025_s2, 2560, %s43_s14, [#allocation6], %s9718_s7, %s9718_s7, %s9719_s8  }
  0x34   :  { %s9722_s11 = smov [#allocation8]   ;;  %s9665_s16 = scalar_lea.hbm %s11027_s4, 512 }
  0x35   :  { %s56_s12 = sshll.u32 %s9722_s11, 4  ;;  %p9666_p10 = scmp.ne.s32.totalorder %s11027_s4, %s9665_s16  ;;  %s57_s12 = int_to_ptr.vmem [resolvable:$true] %s56_s12 }
  0x36   :  { %p9669_p11 = scmp.lt.u32.totalorder %s9665_s16, %s11027_s4 }
  0x38   :  { %p9671_p12 = pnand %p9669_p11, %p9666_p10 }
  0x3a   :  { %9674 = shalt.err (!%p9671_p12)
}
  0x3b   :  { %s9675_s21 = scalar_lea.vmem %s57_s12, 512  ;;  %p9680_p0 = scmp.lt.s32.totalorder %s57_s12, %s57_s12 }
  0x3c   :  { %p9676_p13 = scmp.ne.s32.totalorder %s57_s12, %s9675_s21  ;;  %p9681_p1 = scmp.lt.s32.totalorder %s9675_s21, %s9675_s21 }
  0x3e   :  { %p9682_p2 = por %p9681_p1, %p9680_p0 }
  0x40   :  { %p9683_p3 = pnand %p9682_p2, %p9676_p13 }
  0x42   :  { %9686 = shalt.err (!%p9683_p3)
}
  0x43   :  { %62 = dma.hbm_to_vmem [thread:$0]  %s11027_s4, 512, %s57_s12, [#allocation9], %s9718_s7, %s9718_s7, %s9719_s8  }
  0x44   :  { %9709 = dma.done.wait [#allocation3], 128  }
  0x45   :  { %9710 = vsyncadd [#allocation3], 4294967168 }
  0x46   :  { %9711 = dma.done.wait [#allocation6], 5120  }
  0x47   :  { %9712 = vsyncadd [#allocation6], 4294962176 }
  0x48   :  { %9713 = dma.done.wait [#allocation9], 512  }
  0x49   :  { %9714 = vsyncadd [#allocation9], 4294966784  ;;  %v9723_v0 = vmov 0.0|0.0   ;;  %vm9724_vm0 = vmmov 0   ;;  %v9725_v1 = vmov 0.0   ;;  %v78_v2 = vld [vmem:[#allocation5] sm:$0xff] }
  0x4a   :  { %8861 = vmatprep.subr.bf16.mxu0 %v9723_v0  ;;  %8867 = vmatprep.subr.bf16.mxu1 %v9723_v0  ;;  %v79_v3 = vld [vmem:[#allocation5 + $0x8] sm:$0xff]  ;;  %v163_v4 = vld [vmem:[#allocation7] sm:$0xff]  ;;  %v80_v7 = vld [vmem:[#allocation5 + $0x10] sm:$0xff]  ;;  %vm89_vm1 = vcmask 261120   ;;  %s9726_s8 = smov 64   ;;  %s9727_s1 = smov 32  }
  0x4b   :  { %7978 = vmatprep.mubr.msk.f32.mxu0 %vm9724_vm0, %v9725_v1  ;;  %7989 = vmatprep.mubr.msk.f32.mxu1 %vm9724_vm0, %v9725_v1  ;;  %v8862_v5 = vpack.c.bf16 %v79_v3, %v78_v2  ;;  %v164_v6 = vld [vmem:[#allocation7 + $0x8] sm:$0xff]  ;;  %v81_v8 = vld [vmem:[#allocation5 + $0x18] sm:$0xff]  ;;  %v165_v10 = vld [vmem:[#allocation7 + $0x10] sm:$0xff]  ;;  %s9728_s15 = smov [#allocation10]  }
  0x4c   :  { %v9827_v9 = vpack.c.bf16 %v164_v6, %v163_v4  ;;  %v166_v11 = vld [vmem:[#allocation7 + $0x18] sm:$0xff]  ;;  %v8865_v12 = vpack.c.bf16 %v81_v8, %v80_v7  ;;  %v379_v34 = vld [vmem:[#allocation7 + $0x20] sm:$0xff]  ;;  %v380_v35 = vld [vmem:[#allocation7 + $0x28] sm:$0xff]  ;;  %s7371_s16 = sshll.u32 %s9728_s15, 4  ;;  %s7372_s16 = int_to_ptr.vmem [resolvable:$true] %s7371_s16 }
  0x4d   :  { %8863 = vmatpush3.bf16.msra.mxu0 %v8862_v5  ;;  %v9831_v13 = vpack.c.bf16 %v166_v11, %v165_v10  ;;  %v77_v14 = vld [vmem:[#allocation2] sm:$0xff]  ;;  %v9859_v36 = vpack.c.bf16 %v380_v35, %v379_v34  ;;  %v381_v37 = vld [vmem:[#allocation7 + $0x30] sm:$0xff]  ;;  %v374_v42 = vld [vmem:[#allocation5 + $0x20] sm:$0xff]  ;;  %s9687_s17 = scalar_lea.vmem %s7372_s16, 128  ;;  %p9692_p5 = scmp.lt.s32.totalorder %s7372_s16, %s7372_s16 }
  0x4e   :  { %8869 = vmatpush3.bf16.msra.mxu1 %v9827_v9  ;;  %8864 = vmatprep.subr.bf16.mxu0 %v9723_v0  ;;  %v7382_v15 = vld [vmem:[%s11026_s3] ss:$0 sm:$0xff]  ;;  %v375_v43 = vld [vmem:[#allocation5 + $0x28] sm:$0xff]  ;;  %v376_v45 = vld [vmem:[#allocation5 + $0x30] sm:$0xff]  ;;  %p9688_p4 = scmp.ne.s32.totalorder %s7372_s16, %s9687_s17  ;;  %p9693_p6 = scmp.lt.s32.totalorder %s9687_s17, %s9687_s17 }
  0x4f   :  { %8870 = vmatprep.subr.bf16.mxu1 %v9723_v0  ;;  %v382_v38 = vld [vmem:[#allocation7 + $0x38] sm:$0xff]  ;;  %v9875_v44 = vpack.c.bf16 %v375_v43, %v374_v42  ;;  %v831_v34 = vld [vmem:[#allocation5 + $0x40] sm:$0xff]  ;;  %v832_v35 = vld [vmem:[#allocation5 + $0x48] sm:$0xff] }
  0x50   :  { %v9863_v39 = vpack.c.bf16 %v382_v38, %v381_v37  ;;  %v377_v46 = vld [vmem:[#allocation5 + $0x38] sm:$0xff]  ;;  %v838_v38 = vld [vmem:[#allocation7 + $0x50] sm:$0xff]  ;;  %v9923_v42 = vpack.c.bf16 %v832_v35, %v831_v34  ;;  %p9694_p7 = por %p9693_p6, %p9692_p5 }
  0x51   :  { %8866 = vmatpush3.bf16.msra.mxu0 %v8865_v12  ;;  %v9879_v48 = vpack.c.bf16 %v377_v46, %v376_v45  ;;  %v9897_v57 = vld [vmem:[%s11026_s3 + $0x1] sm:$0x1]  ;;  %v833_v43 = vld [vmem:[#allocation5 + $0x50] sm:$0xff] }
  0x52   :  { %8872 = vmatpush3.bf16.msra.mxu1 %v9831_v13  ;;  %8873 = vmatprep.subr.bf16.mxu0 %v9723_v0  ;;  %v834_v45 = vld [vmem:[#allocation5 + $0x58] sm:$0xff]  ;;  %p9695_p8 = pnand %p9694_p7, %p9688_p4 }
  0x53   :  { %8879 = vmatprep.subr.bf16.mxu1 %v9723_v0 }
  0x54   :  { %7979 = vmatmul.mubr.msk.f32.vlgmr.msra.gmra.mrb[0].mxu0 %vm89_vm1, %v77_v14 }
  0x55   :  { %7990 = vmatmul.mubr.f32.vlgmr.msra.gmra.mrb[0].mxu1 %v9725_v1  ;;  %8875 = vmatpush3.bf16.msra.mxu0 %v9827_v9 }
  0x56   :  { %8876 = vmatprep.subr.bf16.mxu0 %v9723_v0  ;;  %8000 = vmatprep.mubr.msk.f32.mxu0 %vm9724_vm0, %v9725_v1 }
  0x57   :  { %8011 = vmatprep.mubr.msk.f32.mxu1 %vm9724_vm0, %v9725_v1  ;;  %8881 = vmatpush3.bf16.msra.mxu1 %v9859_v36 }
  0x58   :  { %8882 = vmatprep.subr.bf16.mxu1 %v9723_v0 }
  0x59   :  { %8878 = vmatpush3.bf16.msra.mxu0 %v9831_v13 }
  0x5a   :  { %8885 = vmatprep.subr.bf16.mxu0 %v9723_v0 }
  0x5b   :  { %8884 = vmatpush3.bf16.msra.mxu1 %v9863_v39 }
  0x5c   :  { %8891 = vmatprep.subr.bf16.mxu1 %v9723_v0 }
  0x5e   :  { %8012 = vmatmul.mubr.f32.vlgmr.msra.gmra.mrb[2].mxu1 %v9725_v1 }
  0x5f   :  { %8893 = vmatpush3.bf16.msra.mxu1 %v9827_v9  ;;  %8033 = vmatprep.mubr.msk.f32.mxu1 %vm9724_vm0, %v9725_v1 }
  0x60   :  { %8894 = vmatprep.subr.bf16.mxu1 %v9723_v0 }
  0x63   :  { %8896 = vmatpush3.bf16.msra.mxu1 %v9831_v13 }
  0x64   :  { %8903 = vmatprep.subr.bf16.mxu1 %v9723_v0 }
 0x127   :  { %v159_v16 = vpop.f32.mrb[0].mxu0 }
 0x128   :  { %v9850_v17 = vadd.f32 %v7382_v15, %v159_v16  ;;  %v7980_v18 = vpop.f32.mrb[1].mxu0  ;;  %v236_v19 = vpop.f32.mrb[0].mxu1 }
 0x129   :  { %v7991_v20 = vpop.f32.mrb[1].mxu1 }
 0x12a   :  { %v240_v21 = vadd.f32 %v236_v19, %v9850_v17 }
 0x12c   :  { %v7384_v22 = vmul.f32 -1.442695, %v240_v21 }
 0x12e   :  { %9359 = vpow2.f32 %v7384_v22 }
 0x131   :  { %v449_v49 = vpop.f32.mrb[2].mxu1 }
 0x132   :  { %v8013_v50 = vpop.f32.mrb[3].mxu1 }
 0x138   :  { %v9360_v23 = vpop.eup %9359 }
 0x139   :  { %v244_v24 = vadd.f32 1.0, %v9360_v23 }
 0x13b   :  { %9361 = vrcp.f32 %v244_v24 }
 0x145   :  { %v9362_v25 = vpop.eup %9361 }
 0x146   :  { %v247_v26 = vmul.f32 2.0, %v9362_v25  ;;  %v249_v30 = vmul.f32 0.0, %v9362_v25 }
 0x148   :  { %v7385_v27 = vadd.f32 -1.0, %v247_v26 }
 0x14a   :  { %251 = vrot.lane.b32.xlu0 %v7385_v27, %s9726_s8 }
 0x1bc   :  { %v252_v28 = vpop.permute.xlu0 %251 }
 0x1bd   :  { %v254_v29 = vmul.f32 %v9362_v25, %v252_v28 }
 0x1bf   :  { %256 = vrot.lane.b32.xlu0 %v254_v29, %s9727_s1 }
 0x231   :  { %v257_v31 = vpop.permute.xlu0 %256 }
 0x232   :  { %v9855_v32 = vadd.f32 %v257_v31, %v249_v30 }
 0x234   :  { %9363 = vtanh.f32 %v9855_v32  ;;  %v354_v16 = vrot.slane %v9855_v32, 7  ;;  %v836_v32 = vld [vmem:[#allocation7 + $0x40] sm:$0xff] }
 0x23e   :  { %v9364_v33 = vpop.eup %9363 }
 0x23f   :  { %262 = vrot.lane.b32.xlu1 %v9364_v33, %s9726_s8  ;;  %v837_v33 = vld [vmem:[#allocation7 + $0x48] sm:$0xff] }
 0x240   :  { %v9920_v37 = vpack.c.bf16 %v837_v33, %v836_v32 }
 0x2b1   :  { %v263_v40 = vpop.permute.xlu1 %262 }
 0x2b2   :  { %v265_v41 = vmul.f32 %v9362_v25, %v263_v40  ;;  %v839_v40 = vld [vmem:[#allocation7 + $0x58] sm:$0xff] }
 0x2b3   :  { %v9928_v46 = vpack.c.bf16 %v839_v40, %v838_v38 }
 0x2b4   :  { %267 = vrot.lane.b32.xlu1 %v265_v41, %s9727_s1 }
 0x326   :  { %v268_v47 = vpop.permute.xlu1 %267 }
 0x327   :  { %8001 = vmatmul.mubr.msk.f32.vlgmr.msra.gmra.mrb[2].mxu0 %vm89_vm1, %v268_v47 }
 0x328   :  { %8887 = vmatpush3.bf16.msra.mxu0 %v9875_v44  ;;  %8022 = vmatprep.mubr.msk.f32.mxu0 %vm9724_vm0, %v9725_v1 }
 0x329   :  { %8888 = vmatprep.subr.bf16.mxu0 %v9723_v0 }
 0x32c   :  { %8890 = vmatpush3.bf16.msra.mxu0 %v9879_v48 }
 0x32d   :  { %8897 = vmatprep.subr.bf16.mxu0 %v9723_v0 }
 0x32f   :  { %8023 = vmatmul.mubr.msk.f32.vlgmr.msra.gmra.mrb[4].mxu0 %vm89_vm1, %v268_v47  ;;  %v9935_v47 = vpack.c.bf16 %v834_v45, %v833_v43 }
 0x330   :  { %8899 = vmatpush3.bf16.msra.mxu0 %v9859_v36  ;;  %8044 = vmatprep.mubr.msk.f32.mxu0 %vm9724_vm0, %v9725_v1 }
 0x331   :  { %8900 = vmatprep.subr.bf16.mxu0 %v9723_v0 }
 0x334   :  { %8902 = vmatpush3.bf16.msra.mxu0 %v9863_v39 }
 0x335   :  { %8909 = vmatprep.subr.bf16.mxu0 %v9723_v0 }
 0x3fa   :  { %v337_v51 = vpop.f32.mrb[2].mxu0 }
 0x3fb   :  { %v342_v52 = vrot.slane %v337_v51, 7  ;;  %v8002_v53 = vpop.f32.mrb[3].mxu0 }
 0x3fd   :  { %v344_v54 = vadd.f32 %v342_v52, %v9850_v17 }
 0x3ff   :  { %v7387_v55 = vmul.f32 -1.442695, %v344_v54 }
 0x401   :  { %9365 = vpow2.f32 %v7387_v55 }
 0x402   :  { %v519_v56 = vpop.f32.mrb[4].mxu0 }
 0x403   :  { %v520_v58 = vadd.f32 %v519_v56, %v449_v49  ;;  %v8024_v59 = vpop.f32.mrb[5].mxu0 }
 0x405   :  { %v525_v60 = vadd.f32 %v9897_v57, %v520_v58 }
 0x407   :  { %v7391_v61 = vmul.f32 -1.442695, %v525_v60 }
 0x409   :  { %9367 = vpow2.f32 %v7391_v61 }
 0x40b   :  { %v9366_v62 = vpop.eup %9365 }
 0x40c   :  { %v348_v63 = vadd.f32 1.0, %v9366_v62 }
 0x40e   :  { %9369 = vrcp.f32 %v348_v63 }
 0x413   :  { %v9368_v2 = vpop.eup %9367 }
 0x414   :  { %v529_v3 = vadd.f32 1.0, %v9368_v2 }
 0x416   :  { %9371 = vrcp.f32 %v529_v3  ;;  %v9963_v3 = vld [vmem:[%s11026_s3 + $0x2] sm:$0x1] }
 0x418   :  { %v9370_v4 = vpop.eup %9369 }
 0x419   :  { %v351_v5 = vmul.f32 2.0, %v9370_v4  ;;  %v356_v18 = vmul.f32 %v9370_v4, %v354_v16 }
 0x41b   :  { %v7388_v6 = vadd.f32 -1.0, %v351_v5 }
 0x41d   :  { %358 = vrot.lane.b32.xlu0 %v7388_v6, %s9726_s8 }
 0x420   :  { %v9372_v7 = vpop.eup %9371 }
 0x421   :  { %v532_v8 = vmul.f32 2.0, %v9372_v7  ;;  %v534_v21 = vmul.f32 0.0, %v9372_v7 }
 0x423   :  { %v7392_v10 = vadd.f32 -1.0, %v532_v8 }
 0x425   :  { %536 = vrot.lane.b32.xlu1 %v7392_v10, %s9726_s8 }
 0x48f   :  { %v359_v11 = vpop.permute.xlu0 %358 }
 0x490   :  { %v361_v12 = vmul.f32 %v9370_v4, %v359_v11 }
 0x492   :  { %363 = vrot.lane.b32.xlu0 %v361_v12, %s9727_s1 }
 0x497   :  { %v537_v14 = vpop.permute.xlu1 %536 }
 0x498   :  { %v539_v15 = vmul.f32 %v9372_v7, %v537_v14 }
 0x49a   :  { %541 = vrot.lane.b32.xlu1 %v539_v15, %s9727_s1 }
 0x504   :  { %v364_v19 = vpop.permute.xlu0 %363 }
 0x505   :  { %v9905_v20 = vadd.f32 %v364_v19, %v356_v18 }
 0x507   :  { %9373 = vtanh.f32 %v9905_v20  ;;  %v640_v34 = vrot.slane %v9905_v20, 7 }
 0x50c   :  { %v542_v22 = vpop.permute.xlu1 %541 }
 0x50d   :  { %v9908_v23 = vadd.f32 %v542_v22, %v534_v21 }
 0x50f   :  { %9375 = vtanh.f32 %v9908_v23 }
 0x511   :  { %v9374_v24 = vpop.eup %9373 }
 0x512   :  { %369 = vrot.lane.b32.xlu0 %v9374_v24, %s9726_s8 }
 0x519   :  { %v9376_v25 = vpop.eup %9375 }
 0x51a   :  { %547 = vrot.lane.b32.xlu1 %v9376_v25, %s9726_s8 }
 0x584   :  { %v370_v26 = vpop.permute.xlu0 %369 }
 0x585   :  { %v372_v27 = vmul.f32 %v9370_v4, %v370_v26 }
 0x587   :  { %v552_v28 = vrot.slane %v372_v27, 1 }
 0x589   :  { %553 = vrot.lane.b32.xlu0 %v552_v28, %s9727_s1 }
 0x58c   :  { %v548_v29 = vpop.permute.xlu1 %547 }
 0x58d   :  { %v550_v30 = vmul.f32 %v9372_v7, %v548_v29 }
 0x58f   :  { %660 = vrot.lane.b32.xlu1 %v550_v30, %s9727_s1 }
 0x5fb   :  { %v554_v31 = vpop.permute.xlu0 %553 }
 0x5fc   :  { %8034 = vmatmul.mubr.msk.f32.vlgmr.msra.gmra.mrb[4].mxu1 %vm89_vm1, %v554_v31 }
 0x5fd   :  { %8905 = vmatpush3.bf16.msra.mxu1 %v9875_v44  ;;  %8055 = vmatprep.mubr.msk.f32.mxu1 %vm9724_vm0, %v9725_v1 }
 0x5fe   :  { %8906 = vmatprep.subr.bf16.mxu1 %v9723_v0 }
 0x601   :  { %8908 = vmatpush3.bf16.msra.mxu1 %v9879_v48  ;;  %v661_v41 = vpop.permute.xlu1 %660 }
 0x602   :  { %8045 = vmatmul.mubr.msk.f32.vlgmr.msra.gmra.mrb[6].mxu0 %vm89_vm1, %v661_v41  ;;  %8915 = vmatprep.subr.bf16.mxu1 %v9723_v0 }
 0x603   :  { %8911 = vmatpush3.bf16.msra.mxu0 %v9920_v37  ;;  %8066 = vmatprep.mubr.msk.f32.mxu0 %vm9724_vm0, %v9725_v1 }
 0x604   :  { %8056 = vmatmul.mubr.msk.f32.vlgmr.msra.gmra.mrb[6].mxu1 %vm89_vm1, %v554_v31  ;;  %8912 = vmatprep.subr.bf16.mxu0 %v9723_v0 }
 0x605   :  { %8917 = vmatpush3.bf16.msra.mxu1 %v9923_v42  ;;  %8077 = vmatprep.mubr.msk.f32.mxu1 %vm9724_vm0, %v9725_v1 }
 0x606   :  { %8918 = vmatprep.subr.bf16.mxu1 %v9723_v0 }
 0x607   :  { %8914 = vmatpush3.bf16.msra.mxu0 %v9928_v46 }
 0x608   :  { %8921 = vmatprep.subr.bf16.mxu0 %v9723_v0 }
 0x609   :  { %8920 = vmatpush3.bf16.msra.mxu1 %v9935_v47 }
 0x60a   :  { %8067 = vmatmul.mubr.f32.vlgmr.msra.gmra.mrb[8].mxu0 %v9725_v1  ;;  %8927 = vmatprep.subr.bf16.mxu1 %v9723_v0 }
 0x60b   :  { %8923 = vmatpush3.bf16.msra.mxu0 %v9827_v9  ;;  %8088 = vmatprep.mubr.msk.f32.mxu0 %vm9724_vm0, %v9725_v1 }
 0x60c   :  { %8078 = vmatmul.mubr.msk.f32.vlgmr.msra.gmra.mrb[8].mxu1 %vm89_vm1, %v661_v41  ;;  %8924 = vmatprep.subr.bf16.mxu0 %v9723_v0 }
 0x60d   :  { %8929 = vmatpush3.bf16.msra.mxu1 %v9859_v36  ;;  %8099 = vmatprep.mubr.msk.f32.mxu1 %vm9724_vm0, %v9725_v1 }
 0x60e   :  { %8930 = vmatprep.subr.bf16.mxu1 %v9723_v0 }
 0x60f   :  { %8926 = vmatpush3.bf16.msra.mxu0 %v9831_v13 }
 0x610   :  { %8933 = vmatprep.subr.bf16.mxu0 %v9723_v0 }
 0x611   :  { %8932 = vmatpush3.bf16.msra.mxu1 %v9863_v39 }
 0x612   :  { %8939 = vmatprep.subr.bf16.mxu1 %v9723_v0 }
 0x6cf   :  { %v623_v49 = vpop.f32.mrb[4].mxu1 }
 0x6d0   :  { %v628_v50 = vrot.slane %v623_v49, 6  ;;  %v8035_v51 = vpop.f32.mrb[5].mxu1 }
 0x6d2   :  { %v630_v52 = vadd.f32 %v628_v50, %v9850_v17 }
 0x6d4   :  { %v7394_v53 = vmul.f32 -1.442695, %v630_v52 }
 0x6d5   :  { %v730_v54 = vpop.f32.mrb[6].mxu0 }
 0x6d6   :  { %9377 = vpow2.f32 %v7394_v53  ;;  %v8046_v55 = vpop.f32.mrb[7].mxu0 }
 0x6d7   :  { %v800_v56 = vpop.f32.mrb[6].mxu1 }
 0x6d8   :  { %v801_v58 = vadd.f32 %v800_v56, %v730_v54  ;;  %v8057_v59 = vpop.f32.mrb[7].mxu1 }
 0x6da   :  { %v804_v60 = vadd.f32 %v9897_v57, %v801_v58 }
 0x6dc   :  { %v7398_v61 = vmul.f32 -1.442695, %v804_v60 }
 0x6dd   :  { %v906_v62 = vpop.f32.mrb[8].mxu0 }
 0x6de   :  { %9379 = vpow2.f32 %v7398_v61  ;;  %v8068_v63 = vpop.f32.mrb[9].mxu0 }
 0x6df   :  { %v976_v2 = vpop.f32.mrb[8].mxu1  ;;  %v1464_v63 = vld [vmem:[#allocation7 + $0x60] sm:$0xff] }
 0x6e0   :  { %v9378_v4 = vpop.eup %9377  ;;  %v977_v5 = vadd.f32 %v976_v2, %v906_v62  ;;  %v8079_v6 = vpop.f32.mrb[9].mxu1  ;;  %v1465_v2 = vld [vmem:[#allocation7 + $0x68] sm:$0xff] }
 0x6e1   :  { %v634_v7 = vadd.f32 1.0, %v9378_v4  ;;  %v1459_v4 = vld [vmem:[#allocation5 + $0x60] sm:$0xff]  ;;  %v10007_v6 = vpack.c.bf16 %v1465_v2, %v1464_v63 }
 0x6e2   :  { %v982_v8 = vadd.f32 %v9963_v3, %v977_v5  ;;  %v1460_v5 = vld [vmem:[#allocation5 + $0x68] sm:$0xff] }
 0x6e3   :  { %9381 = vrcp.f32 %v634_v7  ;;  %v1466_v7 = vld [vmem:[#allocation7 + $0x70] sm:$0xff] }
 0x6e4   :  { %v7402_v10 = vmul.f32 -1.442695, %v982_v8  ;;  %v1467_v8 = vld [vmem:[#allocation7 + $0x78] sm:$0xff] }
 0x6e6   :  { %9383 = vpow2.f32 %v7402_v10 }
 0x6e8   :  { %v9380_v11 = vpop.eup %9379 }
 0x6e9   :  { %v808_v12 = vadd.f32 1.0, %v9380_v11  ;;  %v10011_v11 = vpack.c.bf16 %v1460_v5, %v1459_v4 }
 0x6eb   :  { %9385 = vrcp.f32 %v808_v12  ;;  %v1461_v12 = vld [vmem:[#allocation5 + $0x70] sm:$0xff] }
 0x6ed   :  { %v9382_v14 = vpop.eup %9381 }
 0x6ee   :  { %v637_v15 = vmul.f32 2.0, %v9382_v14  ;;  %v642_v35 = vmul.f32 %v9382_v14, %v640_v34 }
 0x6f0   :  { %v9384_v16 = vpop.eup %9383  ;;  %v7395_v18 = vadd.f32 -1.0, %v637_v15  ;;  %v10016_v15 = vpack.c.bf16 %v1467_v8, %v1466_v7 }
 0x6f1   :  { %v986_v19 = vadd.f32 1.0, %v9384_v16 }
 0x6f2   :  { %644 = vrot.lane.b32.xlu0 %v7395_v18, %s9726_s8 }
 0x6f3   :  { %9387 = vrcp.f32 %v986_v19 }
 0x6f5   :  { %v9386_v21 = vpop.eup %9385 }
 0x6f6   :  { %v811_v22 = vmul.f32 2.0, %v9386_v21  ;;  %v813_v41 = vmul.f32 %v9386_v21, %v9908_v23 }
 0x6f8   :  { %v7399_v24 = vadd.f32 -1.0, %v811_v22 }
 0x6fa   :  { %815 = vrot.lane.b32.xlu1 %v7399_v24, %s9726_s8 }
 0x6fd   :  { %v9388_v25 = vpop.eup %9387 }
 0x6fe   :  { %v989_v26 = vmul.f32 2.0, %v9388_v25  ;;  %v991_v50 = vmul.f32 0.0, %v9388_v25 }
 0x700   :  { %v7403_v27 = vadd.f32 -1.0, %v989_v26 }
 0x702   :  { %993 = vrot.lane.b32.xlu0 %v7403_v27, %s9726_s8 }
 0x764   :  { %v645_v28 = vpop.permute.xlu0 %644 }
 0x765   :  { %v647_v29 = vmul.f32 %v9382_v14, %v645_v28 }
 0x767   :  { %649 = vrot.lane.b32.xlu1 %v647_v29, %s9727_s1 }
 0x76c   :  { %v816_v30 = vpop.permute.xlu1 %815 }
 0x76d   :  { %v818_v31 = vmul.f32 %v9386_v21, %v816_v30 }
 0x76f   :  { %820 = vrot.lane.b32.xlu0 %v818_v31, %s9727_s1 }
 0x774   :  { %v994_v32 = vpop.permute.xlu0 %993 }
 0x775   :  { %v996_v33 = vmul.f32 %v9388_v25, %v994_v32 }
 0x777   :  { %998 = vrot.lane.b32.xlu1 %v996_v33, %s9727_s1 }
 0x7d9   :  { %v650_v38 = vpop.permute.xlu1 %649 }
 0x7da   :  { %v9973_v40 = vadd.f32 %v650_v38, %v642_v35 }
 0x7dc   :  { %9389 = vtanh.f32 %v9973_v40 }
 0x7e1   :  { %v821_v43 = vpop.permute.xlu0 %820 }
 0x7e2   :  { %v9977_v45 = vadd.f32 %v821_v43, %v813_v41 }
 0x7e4   :  { %9391 = vtanh.f32 %v9977_v45 }
 0x7e6   :  { %v9390_v49 = vpop.eup %9389 }
 0x7e7   :  { %655 = vrot.lane.b32.xlu0 %v9390_v49, %s9726_s8 }
 0x7e9   :  { %v999_v51 = vpop.permute.xlu1 %998 }
 0x7ea   :  { %v9981_v52 = vadd.f32 %v999_v51, %v991_v50  ;;  %v10052_v50 = vld [vmem:[%s11026_s3 + $0x3] sm:$0x1] }
 0x7ec   :  { %9393 = vtanh.f32 %v9981_v52 }
 0x7ee   :  { %v9392_v20 = vpop.eup %9391 }
 0x7ef   :  { %826 = vrot.lane.b32.xlu1 %v9392_v20, %s9726_s8 }
 0x7f6   :  { %v9394_v53 = vpop.eup %9393 }
 0x7f7   :  { %1004 = vrot.lane.b32.xlu0 %v9394_v53, %s9726_s8 }
 0x859   :  { %v656_v23 = vpop.permute.xlu0 %655 }
 0x85a   :  { %v658_v54 = vmul.f32 %v9382_v14, %v656_v23  ;;  %v1462_v14 = vld [vmem:[#allocation5 + $0x78] sm:$0xff] }
 0x85b   :  { %v10023_v16 = vpack.c.bf16 %v1462_v14, %v1461_v12 }
 0x85c   :  { %v1009_v55 = vrot.slane %v658_v54, 2 }
 0x85e   :  { %1010 = vrot.lane.b32.xlu1 %v1009_v55, %s9727_s1 }
 0x861   :  { %v827_v56 = vpop.permute.xlu1 %826 }
 0x862   :  { %v829_v58 = vmul.f32 %v9386_v21, %v827_v56 }
 0x864   :  { %1117 = vrot.lane.b32.xlu0 %v829_v58, %s9727_s1 }
 0x869   :  { %v1005_v59 = vpop.permute.xlu0 %1004 }
 0x86a   :  { %v1007_v60 = vmul.f32 %v9388_v25, %v1005_v59 }
 0x86c   :  { %1288 = vrot.lane.b32.xlu1 %v1007_v60, %s9727_s1 }
 0x8d0   :  { %v1011_v61 = vpop.permute.xlu1 %1010 }
 0x8d1   :  { %8089 = vmatmul.mubr.msk.f32.vlgmr.msra.gmra.mrb[10].mxu0 %vm89_vm1, %v1011_v61 }
 0x8d2   :  { %8935 = vmatpush3.bf16.msra.mxu0 %v9875_v44  ;;  %8110 = vmatprep.mubr.msk.f32.mxu0 %vm9724_vm0, %v9725_v1 }
 0x8d3   :  { %8936 = vmatprep.subr.bf16.mxu0 %v9723_v0 }
 0x8d6   :  { %8938 = vmatpush3.bf16.msra.mxu0 %v9879_v48  ;;  %v1118_v62 = vpop.permute.xlu0 %1117 }
 0x8d7   :  { %8100 = vmatmul.mubr.msk.f32.vlgmr.msra.gmra.mrb[10].mxu1 %vm89_vm1, %v1118_v62  ;;  %8945 = vmatprep.subr.bf16.mxu0 %v9723_v0 }
 0x8d8   :  { %8941 = vmatpush3.bf16.msra.mxu1 %v9920_v37  ;;  %8121 = vmatprep.mubr.msk.f32.mxu1 %vm9724_vm0, %v9725_v1 }
 0x8d9   :  { %8111 = vmatmul.mubr.msk.f32.vlgmr.msra.gmra.mrb[12].mxu0 %vm89_vm1, %v1011_v61  ;;  %8942 = vmatprep.subr.bf16.mxu1 %v9723_v0 }
 0x8da   :  { %8947 = vmatpush3.bf16.msra.mxu0 %v9923_v42  ;;  %8132 = vmatprep.mubr.msk.f32.mxu0 %vm9724_vm0, %v9725_v1 }
 0x8db   :  { %8948 = vmatprep.subr.bf16.mxu0 %v9723_v0 }
 0x8dc   :  { %8944 = vmatpush3.bf16.msra.mxu1 %v9928_v46 }
 0x8dd   :  { %8951 = vmatprep.subr.bf16.mxu1 %v9723_v0 }
 0x8de   :  { %8950 = vmatpush3.bf16.msra.mxu0 %v9935_v47  ;;  %v1289_v10 = vpop.permute.xlu1 %1288 }
 0x8df   :  { %8122 = vmatmul.mubr.msk.f32.vlgmr.msra.gmra.mrb[12].mxu1 %vm89_vm1, %v1289_v10  ;;  %8957 = vmatprep.subr.bf16.mxu0 %v9723_v0 }
 0x8e0   :  { %8953 = vmatpush3.bf16.msra.mxu1 %v10007_v6  ;;  %8143 = vmatprep.mubr.msk.f32.mxu1 %vm9724_vm0, %v9725_v1 }
 0x8e1   :  { %8133 = vmatmul.mubr.msk.f32.vlgmr.msra.gmra.mrb[14].mxu0 %vm89_vm1, %v1118_v62  ;;  %8954 = vmatprep.subr.bf16.mxu1 %v9723_v0 }
 0x8e2   :  { %8959 = vmatpush3.bf16.msra.mxu0 %v10011_v11  ;;  %8154 = vmatprep.mubr.msk.f32.mxu0 %vm9724_vm0, %v9725_v1 }
 0x8e3   :  { %8960 = vmatprep.subr.bf16.mxu0 %v9723_v0 }
 0x8e4   :  { %8956 = vmatpush3.bf16.msra.mxu1 %v10016_v15 }
 0x8e5   :  { %8963 = vmatprep.subr.bf16.mxu1 %v9723_v0 }
 0x8e6   :  { %8962 = vmatpush3.bf16.msra.mxu0 %v10023_v16 }
 0x8e7   :  { %8144 = vmatmul.mubr.f32.vlgmr.msra.gmra.mrb[14].mxu1 %v9725_v1  ;;  %8969 = vmatprep.subr.bf16.mxu0 %v9723_v0 }
 0x8e8   :  { %8965 = vmatpush3.bf16.msra.mxu1 %v9827_v9  ;;  %8165 = vmatprep.mubr.msk.f32.mxu1 %vm9724_vm0, %v9725_v1 }
 0x8e9   :  { %8155 = vmatmul.mubr.msk.f32.vlgmr.msra.gmra.mrb[16].mxu0 %vm89_vm1, %v1289_v10  ;;  %8966 = vmatprep.subr.bf16.mxu1 %v9723_v0 }
 0x8ea   :  { %8971 = vmatpush3.bf16.msra.mxu0 %v9859_v36  ;;  %8176 = vmatprep.mubr.msk.f32.mxu0 %vm9724_vm0, %v9725_v1 }
 0x8eb   :  { %8972 = vmatprep.subr.bf16.mxu0 %v9723_v0 }
 0x8ec   :  { %8968 = vmatpush3.bf16.msra.mxu1 %v9831_v13 }
 0x8ed   :  { %8975 = vmatprep.subr.bf16.mxu1 %v9723_v0 }
 0x8ee   :  { %8974 = vmatpush3.bf16.msra.mxu0 %v9863_v39 }
 0x8ef   :  { %8981 = vmatprep.subr.bf16.mxu0 %v9723_v0 }
 0x9a4   :  { %v1080_v9 = vpop.f32.mrb[10].mxu0 }
 0x9a5   :  { %v1085_v18 = vrot.slane %v1080_v9, 5  ;;  %v8090_v19 = vpop.f32.mrb[11].mxu0 }
 0x9a7   :  { %v1087_v21 = vadd.f32 %v1085_v18, %v9850_v17 }
 0x9a9   :  { %v7405_v22 = vmul.f32 -1.442695, %v1087_v21 }
 0x9aa   :  { %v1187_v36 = vpop.f32.mrb[10].mxu1 }
 0x9ab   :  { %9395 = vpow2.f32 %v7405_v22  ;;  %v8101_v24 = vpop.f32.mrb[11].mxu1 }
 0x9ac   :  { %v1257_v25 = vpop.f32.mrb[12].mxu0 }
 0x9ad   :  { %v1258_v26 = vadd.f32 %v1257_v25, %v1187_v36  ;;  %v8112_v27 = vpop.f32.mrb[13].mxu0 }
 0x9ae   :  { %v1097_v27 = vrot.slane %v9973_v40, 7 }
 0x9af   :  { %v1261_v13 = vadd.f32 %v9897_v57, %v1258_v26 }
 0x9b1   :  { %v7409_v28 = vmul.f32 -1.442695, %v1261_v13 }
 0x9b2   :  { %v1358_v29 = vpop.f32.mrb[12].mxu1 }
 0x9b3   :  { %9397 = vpow2.f32 %v7409_v28  ;;  %v8123_v39 = vpop.f32.mrb[13].mxu1 }
 0x9b4   :  { %v1428_v30 = vpop.f32.mrb[14].mxu0 }
 0x9b5   :  { %v9396_v31 = vpop.eup %9395  ;;  %v1429_v32 = vadd.f32 %v1428_v30, %v1358_v29  ;;  %v8134_v33 = vpop.f32.mrb[15].mxu0 }
 0x9b6   :  { %v1091_v34 = vadd.f32 1.0, %v9396_v31 }
 0x9b7   :  { %v1432_v35 = vadd.f32 %v9963_v3, %v1429_v32 }
 0x9b8   :  { %9399 = vrcp.f32 %v1091_v34 }
 0x9b9   :  { %v7413_v38 = vmul.f32 -1.442695, %v1432_v35 }
 0x9ba   :  { %v1534_v41 = vpop.f32.mrb[14].mxu1 }
 0x9bb   :  { %9401 = vpow2.f32 %v7413_v38  ;;  %v8145_v43 = vpop.f32.mrb[15].mxu1 }
 0x9bc   :  { %v1604_v49 = vpop.f32.mrb[16].mxu0 }
 0x9bd   :  { %v9398_v51 = vpop.eup %9397  ;;  %v1605_v20 = vadd.f32 %v1604_v49, %v1534_v41  ;;  %v8156_v53 = vpop.f32.mrb[17].mxu0 }
 0x9be   :  { %v1265_v23 = vadd.f32 1.0, %v9398_v51 }
 0x9bf   :  { %v1610_v54 = vadd.f32 %v10052_v50, %v1605_v20 }
 0x9c0   :  { %9403 = vrcp.f32 %v1265_v23 }
 0x9c1   :  { %v7417_v55 = vmul.f32 -1.442695, %v1610_v54 }
 0x9c2   :  { %v9400_v56 = vpop.eup %9399 }
 0x9c3   :  { %9405 = vpow2.f32 %v7417_v55  ;;  %v1094_v58 = vmul.f32 2.0, %v9400_v56  ;;  %v1099_v13 = vmul.f32 %v9400_v56, %v1097_v27 }
 0x9c5   :  { %v9402_v59 = vpop.eup %9401  ;;  %v7406_v60 = vadd.f32 -1.0, %v1094_v58 }
 0x9c6   :  { %v1436_v61 = vadd.f32 1.0, %v9402_v59 }
 0x9c7   :  { %1101 = vrot.lane.b32.xlu0 %v7406_v60, %s9726_s8 }
 0x9c8   :  { %9407 = vrcp.f32 %v1436_v61  ;;  %v2258_v61 = vld [vmem:[#allocation5 + $0x80] sm:$0xff] }
 0x9ca   :  { %v9404_v62 = vpop.eup %9403 }
 0x9cb   :  { %v1268_v63 = vmul.f32 2.0, %v9404_v62  ;;  %v1270_v39 = vmul.f32 %v9404_v62, %v9977_v45 }
 0x9cd   :  { %v9406_v2 = vpop.eup %9405  ;;  %v7410_v4 = vadd.f32 -1.0, %v1268_v63 }
 0x9ce   :  { %v1614_v5 = vadd.f32 1.0, %v9406_v2  ;;  %v2265_v2 = vld [vmem:[#allocation7 + $0x90] sm:$0xff] }
 0x9cf   :  { %1272 = vrot.lane.b32.xlu1 %v7410_v4, %s9726_s8  ;;  %v2266_v4 = vld [vmem:[#allocation7 + $0x98] sm:$0xff] }
 0x9d0   :  { %9409 = vrcp.f32 %v1614_v5 }
 0x9d2   :  { %v9408_v7 = vpop.eup %9407 }
 0x9d3   :  { %v1439_v8 = vmul.f32 2.0, %v9408_v7  ;;  %v1441_v33 = vmul.f32 %v9408_v7, %v9981_v52 }
 0x9d5   :  { %v7414_v10 = vadd.f32 -1.0, %v1439_v8  ;;  %v2260_v8 = vld [vmem:[#allocation5 + $0x90] sm:$0xff] }
 0x9d7   :  { %1443 = vrot.lane.b32.xlu0 %v7414_v10, %s9726_s8  ;;  %v2261_v10 = vld [vmem:[#allocation5 + $0x98] sm:$0xff] }
 0x9da   :  { %v9410_v12 = vpop.eup %9409 }
 0x9db   :  { %v1617_v14 = vmul.f32 2.0, %v9410_v12  ;;  %v1619_v38 = vmul.f32 0.0, %v9410_v12 }
 0x9dd   :  { %v7418_v9 = vadd.f32 -1.0, %v1617_v14  ;;  %v10134_v14 = vpack.c.bf16 %v2261_v10, %v2260_v8 }
 0x9df   :  { %1621 = vrot.lane.b32.xlu1 %v7418_v9, %s9726_s8 }
 0xa39   :  { %v1102_v18 = vpop.permute.xlu0 %1101 }
 0xa3a   :  { %v1104_v19 = vmul.f32 %v9400_v56, %v1102_v18 }
 0xa3c   :  { %1106 = vrot.lane.b32.xlu0 %v1104_v19, %s9727_s1 }
 0xa41   :  { %v1273_v21 = vpop.permute.xlu1 %1272 }
 0xa42   :  { %v1275_v22 = vmul.f32 %v9404_v62, %v1273_v21 }
 0xa44   :  { %1277 = vrot.lane.b32.xlu1 %v1275_v22, %s9727_s1 }
 0xa49   :  { %v1444_v36 = vpop.permute.xlu0 %1443 }
 0xa4a   :  { %v1446_v24 = vmul.f32 %v9408_v7, %v1444_v36 }
 0xa4c   :  { %1448 = vrot.lane.b32.xlu0 %v1446_v24, %s9727_s1 }
 0xa51   :  { %v1622_v25 = vpop.permute.xlu1 %1621 }
 0xa52   :  { %v1624_v26 = vmul.f32 %v9410_v12, %v1622_v25 }
 0xa54   :  { %1626 = vrot.lane.b32.xlu1 %v1624_v26, %s9727_s1 }
 0xaae   :  { %v1107_v28 = vpop.permute.xlu0 %1106 }
 0xaaf   :  { %v10064_v29 = vadd.f32 %v1107_v28, %v1099_v13 }
 0xab1   :  { %9411 = vtanh.f32 %v10064_v29 }
 0xab6   :  { %v1278_v30 = vpop.permute.xlu1 %1277 }
 0xab7   :  { %v10068_v31 = vadd.f32 %v1278_v30, %v1270_v39 }
 0xab9   :  { %9413 = vtanh.f32 %v10068_v31 }
 0xabb   :  { %v9412_v32 = vpop.eup %9411 }
 0xabc   :  { %1112 = vrot.lane.b32.xlu0 %v9412_v32, %s9726_s8 }
 0xabe   :  { %v1449_v34 = vpop.permute.xlu0 %1448 }
 0xabf   :  { %v10073_v40 = vadd.f32 %v1449_v34, %v1441_v33 }
 0xac1   :  { %9415 = vtanh.f32 %v10073_v40 }
 0xac3   :  { %v9414_v35 = vpop.eup %9413 }
 0xac4   :  { %1283 = vrot.lane.b32.xlu1 %v9414_v35, %s9726_s8 }
 0xac6   :  { %v1627_v45 = vpop.permute.xlu1 %1626 }
 0xac7   :  { %v10077_v41 = vadd.f32 %v1627_v45, %v1619_v38 }
 0xac9   :  { %9417 = vtanh.f32 %v10077_v41 }
 0xacb   :  { %v9416_v43 = vpop.eup %9415 }
 0xacc   :  { %1454 = vrot.lane.b32.xlu0 %v9416_v43, %s9726_s8 }
 0xad3   :  { %v9418_v49 = vpop.eup %9417 }
 0xad4   :  { %1632 = vrot.lane.b32.xlu1 %v9418_v49, %s9726_s8 }
 0xb2e   :  { %v1113_v52 = vpop.permute.xlu0 %1112 }
 0xb2f   :  { %v1115_v51 = vmul.f32 %v9400_v56, %v1113_v52 }
 0xb31   :  { %v1637_v20 = vrot.slane %v1115_v51, 3 }
 0xb33   :  { %1638 = vrot.lane.b32.xlu0 %v1637_v20, %s9727_s1 }
 0xb36   :  { %v1284_v53 = vpop.permute.xlu1 %1283 }
 0xb37   :  { %v1286_v23 = vmul.f32 %v9404_v62, %v1284_v53  ;;  %v2259_v62 = vld [vmem:[#allocation5 + $0x88] sm:$0xff] }
 0xb39   :  { %1745 = vrot.lane.b32.xlu1 %v1286_v23, %s9727_s1 }
 0xb3e   :  { %v1455_v54 = vpop.permute.xlu0 %1454 }
 0xb3f   :  { %v1457_v55 = vmul.f32 %v9408_v7, %v1455_v54  ;;  %v10122_v7 = vpack.c.bf16 %v2259_v62, %v2258_v61 }
 0xb41   :  { %1916 = vrot.lane.b32.xlu0 %v1457_v55, %s9727_s1 }
 0xb46   :  { %v1633_v58 = vpop.permute.xlu1 %1632 }
 0xb47   :  { %v1635_v59 = vmul.f32 %v9410_v12, %v1633_v58  ;;  %v10127_v12 = vpack.c.bf16 %v2266_v4, %v2265_v2 }
 0xb49   :  { %2087 = vrot.lane.b32.xlu1 %v1635_v59, %s9727_s1 }
 0xba5   :  { %v1639_v60 = vpop.permute.xlu0 %1638 }
 0xba6   :  { %8166 = vmatmul.mubr.msk.f32.vlgmr.msra.gmra.mrb[16].mxu1 %vm89_vm1, %v1639_v60 }
 0xba7   :  { %8977 = vmatpush3.bf16.msra.mxu1 %v9875_v44  ;;  %8187 = vmatprep.mubr.msk.f32.mxu1 %vm9724_vm0, %v9725_v1 }
 0xba8   :  { %8978 = vmatprep.subr.bf16.mxu1 %v9723_v0 }
 0xbab   :  { %8980 = vmatpush3.bf16.msra.mxu1 %v9879_v48  ;;  %v1746_v56 = vpop.permute.xlu1 %1745  ;;  %v2263_v48 = vld [vmem:[#allocation7 + $0x80] sm:$0xff] }
 0xbac   :  { %8177 = vmatmul.mubr.msk.f32.vlgmr.msra.gmra.mrb[18].mxu0 %vm89_vm1, %v1746_v56  ;;  %8987 = vmatprep.subr.bf16.mxu1 %v9723_v0 }
 0xbad   :  { %8983 = vmatpush3.bf16.msra.mxu0 %v9920_v37  ;;  %8198 = vmatprep.mubr.msk.f32.mxu0 %vm9724_vm0, %v9725_v1 }
 0xbae   :  { %8188 = vmatmul.mubr.msk.f32.vlgmr.msra.gmra.mrb[18].mxu1 %vm89_vm1, %v1639_v60  ;;  %8984 = vmatprep.subr.bf16.mxu0 %v9723_v0 }
 0xbaf   :  { %8989 = vmatpush3.bf16.msra.mxu1 %v9923_v42  ;;  %8209 = vmatprep.mubr.msk.f32.mxu1 %vm9724_vm0, %v9725_v1 }
 0xbb0   :  { %8990 = vmatprep.subr.bf16.mxu1 %v9723_v0 }
 0xbb1   :  { %8986 = vmatpush3.bf16.msra.mxu0 %v9928_v46  ;;  %v2264_v46 = vld [vmem:[#allocation7 + $0x88] sm:$0xff] }
 0xbb2   :  { %8993 = vmatprep.subr.bf16.mxu0 %v9723_v0  ;;  %v10118_v63 = vpack.c.bf16 %v2264_v46, %v2263_v48  ;;  %v7435_v48 = vld [vmem:[%s11026_s3 + $0x4] sm:$0x1] }
 0xbb3   :  { %8992 = vmatpush3.bf16.msra.mxu1 %v9935_v47  ;;  %v1917_v44 = vpop.permute.xlu0 %1916 }
 0xbb4   :  { %8199 = vmatmul.mubr.msk.f32.vlgmr.msra.gmra.mrb[20].mxu0 %vm89_vm1, %v1917_v44  ;;  %8999 = vmatprep.subr.bf16.mxu1 %v9723_v0 }
 0xbb5   :  { %8995 = vmatpush3.bf16.msra.mxu0 %v10007_v6  ;;  %8220 = vmatprep.mubr.msk.f32.mxu0 %vm9724_vm0, %v9725_v1 }
 0xbb6   :  { %8210 = vmatmul.mubr.msk.f32.vlgmr.msra.gmra.mrb[20].mxu1 %vm89_vm1, %v1746_v56  ;;  %8996 = vmatprep.subr.bf16.mxu0 %v9723_v0 }
 0xbb7   :  { %9001 = vmatpush3.bf16.msra.mxu1 %v10011_v11  ;;  %8231 = vmatprep.mubr.msk.f32.mxu1 %vm9724_vm0, %v9725_v1 }
 0xbb8   :  { %9002 = vmatprep.subr.bf16.mxu1 %v9723_v0 }
 0xbb9   :  { %8998 = vmatpush3.bf16.msra.mxu0 %v10016_v15 }
 0xbba   :  { %9005 = vmatprep.subr.bf16.mxu0 %v9723_v0 }
 0xbbb   :  { %9004 = vmatpush3.bf16.msra.mxu1 %v10023_v16  ;;  %v2088_v5 = vpop.permute.xlu1 %2087 }
 0xbbc   :  { %8221 = vmatmul.mubr.msk.f32.vlgmr.msra.gmra.mrb[22].mxu0 %vm89_vm1, %v2088_v5  ;;  %9011 = vmatprep.subr.bf16.mxu1 %v9723_v0 }
 0xbbd   :  { %9007 = vmatpush3.bf16.msra.mxu0 %v10118_v63  ;;  %8242 = vmatprep.mubr.msk.f32.mxu0 %vm9724_vm0, %v9725_v1 }
 0xbbe   :  { %8232 = vmatmul.mubr.msk.f32.vlgmr.msra.gmra.mrb[22].mxu1 %vm89_vm1, %v1917_v44  ;;  %9008 = vmatprep.subr.bf16.mxu0 %v9723_v0 }
 0xbbf   :  { %9013 = vmatpush3.bf16.msra.mxu1 %v10122_v7  ;;  %8253 = vmatprep.mubr.msk.f32.mxu1 %vm9724_vm0, %v9725_v1 }
 0xbc0   :  { %9014 = vmatprep.subr.bf16.mxu1 %v9723_v0 }
 0xbc1   :  { %9010 = vmatpush3.bf16.msra.mxu0 %v10127_v12 }
 0xbc2   :  { %9017 = vmatprep.subr.bf16.mxu0 %v9723_v0 }
 0xbc3   :  { %9016 = vmatpush3.bf16.msra.mxu1 %v10134_v14 }
 0xbc4   :  { %8243 = vmatmul.mubr.f32.vlgmr.msra.gmra.mrb[24].mxu0 %v9725_v1  ;;  %9023 = vmatprep.subr.bf16.mxu1 %v9723_v0 }
 0xbc5   :  { %8264 = vmatprep.mubr.msk.f32.mxu0 %vm9724_vm0, %v9725_v1 }
 0xbc6   :  { %8254 = vmatmul.mubr.msk.f32.vlgmr.msra.gmra.mrb[24].mxu1 %vm89_vm1, %v2088_v5 }
 0xbc7   :  { %8275 = vmatprep.mubr.msk.f32.mxu1 %vm9724_vm0, %v9725_v1 }
 0xc79   :  { %v1708_v9 = vpop.f32.mrb[16].mxu1 }
 0xc7a   :  { %v1713_v18 = vrot.slane %v1708_v9, 4  ;;  %v8167_v19 = vpop.f32.mrb[17].mxu1 }
 0xc7c   :  { %v1715_v21 = vadd.f32 %v1713_v18, %v9850_v17 }
 0xc7e   :  { %v7420_v22 = vmul.f32 -1.442695, %v1715_v21 }
 0xc7f   :  { %v1815_v36 = vpop.f32.mrb[18].mxu0 }
 0xc80   :  { %9419 = vpow2.f32 %v7420_v22  ;;  %v8178_v24 = vpop.f32.mrb[19].mxu0 }
 0xc81   :  { %v1885_v25 = vpop.f32.mrb[18].mxu1 }
 0xc82   :  { %v1886_v26 = vadd.f32 %v1885_v25, %v1815_v36  ;;  %v8189_v27 = vpop.f32.mrb[19].mxu1 }
 0xc84   :  { %v1889_v13 = vadd.f32 %v9897_v57, %v1886_v26 }
 0xc86   :  { %v7424_v28 = vmul.f32 -1.442695, %v1889_v13 }
 0xc87   :  { %v1986_v39 = vpop.f32.mrb[20].mxu0 }
 0xc88   :  { %9421 = vpow2.f32 %v7424_v28  ;;  %v8200_v30 = vpop.f32.mrb[21].mxu0 }
 0xc89   :  { %v2056_v32 = vpop.f32.mrb[20].mxu1 }
 0xc8a   :  { %v9420_v33 = vpop.eup %9419  ;;  %v2057_v34 = vadd.f32 %v2056_v32, %v1986_v39  ;;  %v8211_v35 = vpop.f32.mrb[21].mxu1 }
 0xc8b   :  { %v1719_v38 = vadd.f32 1.0, %v9420_v33 }
 0xc8c   :  { %v2060_v23 = vadd.f32 %v9963_v3, %v2057_v34 }
 0xc8d   :  { %9423 = vrcp.f32 %v1719_v38 }
 0xc8e   :  { %v7428_v58 = vmul.f32 -1.442695, %v2060_v23 }
 0xc8f   :  { %v2157_v45 = vpop.f32.mrb[22].mxu0 }
 0xc90   :  { %v8222_v43 = vpop.f32.mrb[23].mxu0 }
 0xc91   :  { %v2227_v49 = vpop.f32.mrb[22].mxu1 }
 0xc92   :  { %v9422_v52 = vpop.eup %9421  ;;  %v2228_v51 = vadd.f32 %v2227_v49, %v2157_v45  ;;  %v8233_v20 = vpop.f32.mrb[23].mxu1 }
 0xc93   :  { %v1893_v53 = vadd.f32 1.0, %v9422_v52 }
 0xc94   :  { %v2231_v57 = vadd.f32 %v10052_v50, %v2228_v51  ;;  %v1725_v51 = vrot.slane %v10064_v29, 7 }
 0xc95   :  { %9425 = vrcp.f32 %v1893_v53 }
 0xc96   :  { %v7432_v54 = vmul.f32 -1.442695, %v2231_v57 }
 0xc97   :  { %v10153_v55 = vpop.eup %9423  ;;  %v2333_v59 = vpop.f32.mrb[24].mxu0 }
 0xc98   :  { %9427 = vpow2.f32 %v7432_v54  ;;  %v8244_v60 = vpop.f32.mrb[25].mxu0  ;;  %v1722_v56 = vmul.f32 2.0, %v10153_v55  ;;  %v1727_v20 = vmul.f32 %v10153_v55, %v1725_v51  ;;  %v2630_v51 = vld [vmem:[#allocation5 + $0x30] sm:$0xff] }
 0xc99   :  { %v2403_v44 = vpop.f32.mrb[24].mxu1  ;;  %9429 = vpow2.f32 %v7428_v58 }
 0xc9a   :  { %v2404_v46 = vadd.f32 %v2403_v44, %v2333_v59  ;;  %v8255_v61 = vpop.f32.mrb[25].mxu1  ;;  %v7421_v3 = vadd.f32 -1.0, %v1722_v56 }
 0xc9c   :  { %v2409_v50 = vadd.f32 %v7435_v48, %v2404_v46  ;;  %1729 = vrot.lane.b32.xlu0 %v7421_v3, %s9726_s8 }
 0xc9e   :  { %v7436_v62 = vmul.f32 -1.442695, %v2409_v50 }
 0xc9f   :  { %v10160_v2 = vpop.eup %9425 }
 0xca0   :  { %9431 = vpow2.f32 %v7436_v62  ;;  %v1896_v4 = vmul.f32 2.0, %v10160_v2  ;;  %v1898_v57 = vmul.f32 %v10160_v2, %v10068_v31 }
 0xca2   :  { %v9428_v5 = vpop.eup %9427  ;;  %v7425_v8 = vadd.f32 -1.0, %v1896_v4  ;;  %v2517_v4 = vld [vmem:[#allocation7 + $0x8] sm:$0xff] }
 0xca3   :  { %v2235_v10 = vadd.f32 1.0, %v9428_v5  ;;  %v9430_v9 = vpop.eup %9429  ;;  %v2518_v5 = vld [vmem:[#allocation7 + $0x10] sm:$0xff] }
 0xca4   :  { %1900 = vrot.lane.b32.xlu0 %v7425_v8, %s9726_s8  ;;  %v2064_v18 = vadd.f32 1.0, %v9430_v9 }
 0xca5   :  { %9433 = vrcp.f32 %v2235_v10  ;;  %v2519_v10 = vld [vmem:[#allocation7 + $0x18] sm:$0xff] }
 0xca6   :  { %9435 = vrcp.f32 %v2064_v18 }
 0xcaa   :  { %v9432_v19 = vpop.eup %9431 }
 0xcab   :  { %v2413_v21 = vadd.f32 1.0, %v9432_v19 }
 0xcad   :  { %9437 = vrcp.f32 %v2413_v21  ;;  %v2435_v21 = vld [vmem:[#allocation8] sm:$0xff] }
 0xcaf   :  { %v10164_v22 = vpop.eup %9433 }
 0xcb0   :  { %v2238_v36 = vmul.f32 2.0, %v10164_v22  ;;  %v10168_v25 = vpop.eup %9435  ;;  %v2240_v29 = vmul.f32 %v10164_v22, %v10077_v41  ;;  %v2516_v41 = vld [vmem:[#allocation7] sm:$0xff] }
 0xcb1   :  { %v2067_v28 = vmul.f32 2.0, %v10168_v25  ;;  %v2069_v61 = vmul.f32 %v10168_v25, %v10073_v40  ;;  %v10213_v8 = vpack.c.bf16 %v2517_v4, %v2516_v41  ;;  %v10217_v40 = vpack.c.bf16 %v2519_v10, %v2518_v5  ;;  %v2439_v5 = vld [vmem:[%s11028_s5] sm:$0x1] }
 0xcb2   :  { %v7433_v24 = vadd.f32 -1.0, %v2238_v36  ;;  %v2436_v36 = vld [vmem:[#allocation8 + $0x8] sm:$0xff] }
 0xcb3   :  { %v7429_v39 = vadd.f32 -1.0, %v2067_v28  ;;  %9025 = vmatpush3.bf16.msra.mxu1 %v10213_v8  ;;  %v2438_v28 = vld [vmem:[#allocation8 + $0x18] sm:$0xff] }
 0xcb4   :  { %2242 = vrot.lane.b32.xlu0 %v7433_v24, %s9726_s8  ;;  %9026 = vmatprep.subr.bf16.mxu1 %v9723_v0  ;;  %v2437_v24 = vld [vmem:[#allocation8 + $0x10] sm:$0xff] }
 0xcb7   :  { %v10170_v26 = vpop.eup %9437  ;;  %9028 = vmatpush3.bf16.msra.mxu1 %v10217_v40 }
 0xcb8   :  { %v2416_v27 = vmul.f32 2.0, %v10170_v26  ;;  %v2418_v31 = vmul.f32 0.0, %v10170_v26  ;;  %9035 = vmatprep.subr.bf16.mxu1 %v9723_v0 }
 0xcba   :  { %v7437_v13 = vadd.f32 -1.0, %v2416_v27 }
 0xcbc   :  { %2420 = vrot.lane.b32.xlu1 %v7437_v13, %s9726_s8  ;;  %v10224_v13 = vpack.c.bf16 %v2436_v36, %v2435_v21 }
 0xcbe   :  { %9019 = vmatpush3.bf16.msra.mxu0 %v10224_v13 }
 0xcbf   :  { %9020 = vmatprep.subr.bf16.mxu0 %v9723_v0 }
 0xcc0   :  { %2071 = vrot.lane.b32.xlu1 %v7429_v39, %s9726_s8 }
 0xd0e   :  { %v1730_v30 = vpop.permute.xlu0 %1729 }
 0xd0f   :  { %v1732_v32 = vmul.f32 %v10153_v55, %v1730_v30  ;;  %v10227_v30 = vpack.c.bf16 %v2438_v28, %v2437_v24 }
 0xd11   :  { %1734 = vrot.lane.b32.xlu1 %v1732_v32, %s9727_s1  ;;  %9022 = vmatpush3.bf16.msra.mxu0 %v10227_v30 }
 0xd12   :  { %9029 = vmatprep.subr.bf16.mxu0 %v9723_v0 }
 0xd16   :  { %v1901_v33 = vpop.permute.xlu0 %1900 }
 0xd17   :  { %v1903_v34 = vmul.f32 %v10160_v2, %v1901_v33 }
 0xd19   :  { %1905 = vrot.lane.b32.xlu1 %v1903_v34, %s9727_s1 }
 0xd26   :  { %v2243_v35 = vpop.permute.xlu0 %2242 }
 0xd27   :  { %v2245_v38 = vmul.f32 %v10164_v22, %v2243_v35 }
 0xd29   :  { %2247 = vrot.lane.b32.xlu1 %v2245_v38, %s9727_s1 }
 0xd2e   :  { %v2421_v45 = vpop.permute.xlu1 %2420 }
 0xd2f   :  { %v2423_v43 = vmul.f32 %v10170_v26, %v2421_v45 }
 0xd31   :  { %2425 = vrot.lane.b32.xlu0 %v2423_v43, %s9727_s1 }
 0xd32   :  { %v2072_v49 = vpop.permute.xlu1 %2071 }
 0xd33   :  { %v2074_v52 = vmul.f32 %v10168_v25, %v2072_v49  ;;  %v2628_v49 = vld [vmem:[#allocation5 + $0x20] sm:$0xff] }
 0xd35   :  { %2076 = vrot.lane.b32.xlu0 %v2074_v52, %s9727_s1  ;;  %v2629_v52 = vld [vmem:[#allocation5 + $0x28] sm:$0xff] }
 0xd83   :  { %v1735_v53 = vpop.permute.xlu1 %1734 }
 0xd84   :  { %v10188_v23 = vadd.f32 %v1735_v53, %v1727_v20  ;;  %v2631_v20 = vld [vmem:[#allocation5 + $0x38] sm:$0xff] }
 0xd86   :  { %9439 = vtanh.f32 %v10188_v23 }
 0xd8b   :  { %v1906_v54 = vpop.permute.xlu1 %1905 }
 0xd8c   :  { %v10193_v58 = vadd.f32 %v1906_v54, %v1898_v57  ;;  %v2634_v54 = vld [vmem:[#allocation7 + $0x30] sm:$0xff] }
 0xd8e   :  { %9441 = vtanh.f32 %v10193_v58 }
 0xd90   :  { %v9440_v59 = vpop.eup %9439 }
 0xd91   :  { %1740 = vrot.lane.b32.xlu0 %v9440_v59, %s9726_s8  ;;  %v2635_v59 = vld [vmem:[#allocation7 + $0x38] sm:$0xff] }
 0xd98   :  { %v9442_v60 = vpop.eup %9441 }
 0xd99   :  { %1911 = vrot.lane.b32.xlu0 %v9442_v60, %s9726_s8 }
 0xd9b   :  { %v2248_v56 = vpop.permute.xlu1 %2247 }
 0xd9c   :  { %v10200_v44 = vadd.f32 %v2248_v56, %v2240_v29  ;;  %v2814_v29 = vld [vmem:[#allocation7 + $0x50] sm:$0xff]  ;;  %v2815_v56 = vld [vmem:[#allocation7 + $0x58] sm:$0xff] }
 0xd9e   :  { %9443 = vtanh.f32 %v10200_v44 }
 0xda3   :  { %v2426_v48 = vpop.permute.xlu0 %2425 }
 0xda4   :  { %v10204_v46 = vadd.f32 %v2426_v48, %v2418_v31  ;;  %v10278_v31 = vpack.c.bf16 %v2815_v56, %v2814_v29 }
 0xda6   :  { %9445 = vtanh.f32 %v10204_v46 }
 0xda7   :  { %v2077_v3 = vpop.permute.xlu0 %2076 }
 0xda8   :  { %v9444_v50 = vpop.eup %9443  ;;  %v10209_v62 = vadd.f32 %v2077_v3, %v2069_v61 }
 0xda9   :  { %2253 = vrot.lane.b32.xlu0 %v9444_v50, %s9726_s8 }
 0xdaa   :  { %9447 = vtanh.f32 %v10209_v62 }
 0xdb0   :  { %v9446_v9 = vpop.eup %9445 }
 0xdb1   :  { %2431 = vrot.lane.b32.xlu1 %v9446_v9, %s9726_s8 }
 0xdb4   :  { %v9448_v18 = vpop.eup %9447 }
 0xdb5   :  { %2082 = vrot.lane.b32.xlu1 %v9448_v18, %s9726_s8 }
 0xe03   :  { %v1741_v19 = vpop.permute.xlu0 %1740 }
 0xe04   :  { %v1743_v27 = vmul.f32 %v10153_v55, %v1741_v19 }
 0xe06   :  { %v2521_v39 = vrot.slane %v1743_v27, 4 }
 0xe08   :  { %2522 = vrot.lane.b32.xlu0 %v2521_v39, %s9727_s1  ;;  %v7444_v39 = vld [vmem:[%s11026_s3 + $0x1] sm:$0x1] }
 0xe0b   :  { %v1912_v55 = vpop.permute.xlu0 %1911 }
 0xe0c   :  { %v1914_v35 = vmul.f32 %v10160_v2, %v1912_v55  ;;  %v10245_v2 = vpack.c.bf16 %v2631_v20, %v2630_v51  ;;  %v7449_v20 = vld [vmem:[%s11026_s3 + $0x2] sm:$0x1] }
 0xe1b   :  { %v2254_v45 = vpop.permute.xlu0 %2253 }
 0xe1c   :  { %v2256_v43 = vmul.f32 %v10164_v22, %v2254_v45  ;;  %v2632_v22 = vld [vmem:[#allocation7 + $0x20] sm:$0xff] }
 0xe23   :  { %v2432_v32 = vpop.permute.xlu1 %2431 }
 0xe24   :  { %v2434_v33 = vmul.f32 %v10170_v26, %v2432_v32  ;;  %v10241_v26 = vpack.c.bf16 %v2629_v52, %v2628_v49 }
 0xe26   :  { %2441 = vrot.lane.b32.xlu1 %v2434_v33, %s9727_s1 }
 0xe27   :  { %v2083_v34 = vpop.permute.xlu1 %2082 }
 0xe28   :  { %v2085_v38 = vmul.f32 %v10168_v25, %v2083_v34  ;;  %v2633_v25 = vld [vmem:[#allocation7 + $0x28] sm:$0xff] }
 0xe29   :  { %v10259_v57 = vpack.c.bf16 %v2633_v25, %v2632_v22  ;;  %v7454_v22 = vld [vmem:[%s11026_s3 + $0x3] sm:$0x1] }
 0xe2a   :  { %2637 = vrot.lane.b32.xlu1 %v1914_v35, %s9727_s1  ;;  %2817 = vrot.lane.b32.xlu0 %v2085_v38, %s9727_s1 }
 0xe2e   :  { %2997 = vrot.lane.b32.xlu1 %v2256_v43, %s9727_s1 }
 0xe7a   :  { %v2523_v53 = vpop.permute.xlu0 %2522 }
 0xe7b   :  { %8276 = vmatmul.mubr.msk.f32.vlgmr.msra.gmra.mrb[26].mxu1 %vm89_vm1, %v2523_v53 }
 0xe7c   :  { %9037 = vmatpush3.bf16.msra.mxu1 %v10241_v26  ;;  %8297 = vmatprep.mubr.msk.f32.mxu1 %vm9724_vm0, %v9725_v1 }
 0xe7d   :  { %9038 = vmatprep.subr.bf16.mxu1 %v9723_v0 }
 0xe80   :  { %9040 = vmatpush3.bf16.msra.mxu1 %v10245_v2 }
 0xe81   :  { %9047 = vmatprep.subr.bf16.mxu1 %v9723_v0 }
 0xe83   :  { %8298 = vmatmul.mubr.msk.f32.vlgmr.msra.gmra.mrb[28].mxu1 %vm89_vm1, %v2523_v53 }
 0xe84   :  { %9049 = vmatpush3.bf16.msra.mxu1 %v9923_v42  ;;  %8319 = vmatprep.mubr.msk.f32.mxu1 %vm9724_vm0, %v9725_v1  ;;  %v10263_v42 = vpack.c.bf16 %v2635_v59, %v2634_v54 }
 0xe85   :  { %9050 = vmatprep.subr.bf16.mxu1 %v9723_v0 }
 0xe88   :  { %9052 = vmatpush3.bf16.msra.mxu1 %v9935_v47 }
 0xe89   :  { %9059 = vmatprep.subr.bf16.mxu1 %v9723_v0 }
 0xe98   :  { %v2442_v60 = vpop.permute.xlu1 %2441 }
 0xe99   :  { %8265 = vmatmul.mubr.msk.f32.vlgmr.msra.gmra.mrb[26].mxu0 %vm89_vm1, %v2442_v60 }
 0xe9a   :  { %9031 = vmatpush3.bf16.msra.mxu0 %v10259_v57  ;;  %8286 = vmatprep.mubr.msk.f32.mxu0 %vm9724_vm0, %v9725_v1 }
 0xe9b   :  { %9032 = vmatprep.subr.bf16.mxu0 %v9723_v0 }
 0xe9c   :  { %v2638_v47 = vpop.permute.xlu1 %2637 }
 0xe9d   :  { %8320 = vmatmul.mubr.msk.f32.vlgmr.msra.gmra.mrb[30].mxu1 %vm89_vm1, %v2638_v47 }
 0xe9e   :  { %9034 = vmatpush3.bf16.msra.mxu0 %v10263_v42  ;;  %9061 = vmatpush3.bf16.msra.mxu1 %v10011_v11  ;;  %v2818_v11 = vpop.permute.xlu0 %2817 }
 0xe9f   :  { %9041 = vmatprep.subr.bf16.mxu0 %v9723_v0  ;;  %9062 = vmatprep.subr.bf16.mxu1 %v9723_v0 }
 0xea0   :  { %8341 = vmatprep.mubr.msk.f32.mxu1 %vm9724_vm0, %v9725_v1 }
 0xea1   :  { %8287 = vmatmul.mubr.msk.f32.vlgmr.msra.gmra.mrb[28].mxu0 %vm89_vm1, %v2638_v47 }
 0xea2   :  { %9043 = vmatpush3.bf16.msra.mxu0 %v9920_v37  ;;  %9064 = vmatpush3.bf16.msra.mxu1 %v10023_v16  ;;  %v2998_v37 = vpop.permute.xlu1 %2997 }
 0xea3   :  { %9044 = vmatprep.subr.bf16.mxu0 %v9723_v0  ;;  %9071 = vmatprep.subr.bf16.mxu1 %v9723_v0 }
 0xea4   :  { %8308 = vmatprep.mubr.msk.f32.mxu0 %vm9724_vm0, %v9725_v1 }
 0xea5   :  { %8342 = vmatmul.mubr.msk.f32.vlgmr.msra.gmra.mrb[32].mxu1 %vm89_vm1, %v2818_v11 }
 0xea6   :  { %9046 = vmatpush3.bf16.msra.mxu0 %v10278_v31  ;;  %9073 = vmatpush3.bf16.msra.mxu1 %v10122_v7 }
 0xea7   :  { %9053 = vmatprep.subr.bf16.mxu0 %v9723_v0  ;;  %9074 = vmatprep.subr.bf16.mxu1 %v9723_v0 }
 0xea8   :  { %8363 = vmatprep.mubr.msk.f32.mxu1 %vm9724_vm0, %v9725_v1 }
 0xea9   :  { %8309 = vmatmul.mubr.msk.f32.vlgmr.msra.gmra.mrb[30].mxu0 %vm89_vm1, %v2818_v11 }
 0xeaa   :  { %9055 = vmatpush3.bf16.msra.mxu0 %v10007_v6  ;;  %9076 = vmatpush3.bf16.msra.mxu1 %v10134_v14 }
 0xeab   :  { %9056 = vmatprep.subr.bf16.mxu0 %v9723_v0  ;;  %8330 = vmatprep.mubr.msk.f32.mxu0 %vm9724_vm0, %v9725_v1 }
 0xeac   :  { %9083 = vmatprep.subr.bf16.mxu1 %v9723_v0 }
 0xead   :  { %8364 = vmatmul.mubr.msk.f32.vlgmr.msra.gmra.mrb[34].mxu1 %vm89_vm1, %v2998_v37 }
 0xeae   :  { %9058 = vmatpush3.bf16.msra.mxu0 %v10016_v15  ;;  %9085 = vmatpush3.bf16.msra.mxu1 %v10213_v8 }
 0xeaf   :  { %9065 = vmatprep.subr.bf16.mxu0 %v9723_v0  ;;  %9086 = vmatprep.subr.bf16.mxu1 %v9723_v0 }
 0xeb0   :  { %8385 = vmatprep.mubr.msk.f32.mxu1 %vm9724_vm0, %v9725_v1 }
 0xeb1   :  { %8331 = vmatmul.mubr.msk.f32.vlgmr.msra.gmra.mrb[32].mxu0 %vm89_vm1, %v2998_v37 }
 0xeb2   :  { %9067 = vmatpush3.bf16.msra.mxu0 %v10118_v63  ;;  %8352 = vmatprep.mubr.msk.f32.mxu0 %vm9724_vm0, %v9725_v1 }
 0xeb3   :  { %9068 = vmatprep.subr.bf16.mxu0 %v9723_v0  ;;  %9088 = vmatpush3.bf16.msra.mxu1 %v10217_v40 }
 0xeb4   :  { %9095 = vmatprep.subr.bf16.mxu1 %v9723_v0 }
 0xeb6   :  { %9070 = vmatpush3.bf16.msra.mxu0 %v10127_v12 }
 0xeb7   :  { %9077 = vmatprep.subr.bf16.mxu0 %v9723_v0 }
 0xeb9   :  { %8353 = vmatmul.mubr.msk.f32.vlgmr.msra.gmra.mrb[34].mxu0 %vm89_vm1, %v2442_v60 }
 0xeba   :  { %9079 = vmatpush3.bf16.msra.mxu0 %v10224_v13  ;;  %8374 = vmatprep.mubr.msk.f32.mxu0 %vm9724_vm0, %v9725_v1 }
 0xebb   :  { %9080 = vmatprep.subr.bf16.mxu0 %v9723_v0 }
 0xebe   :  { %9082 = vmatpush3.bf16.msra.mxu0 %v10227_v30 }
 0xebf   :  { %9089 = vmatprep.subr.bf16.mxu0 %v9723_v0 }
 0xf4e   :  { %v2592_v6 = vpop.f32.mrb[26].mxu1 }
 0xf4f   :  { %v2597_v15 = vrot.slane %v2592_v6, 3  ;;  %v8277_v16 = vpop.f32.mrb[27].mxu1  ;;  %v7459_v6 = vld [vmem:[%s11026_s3 + $0x4] sm:$0x1] }
 0xf51   :  { %v2599_v48 = vadd.f32 %v2597_v15, %v9850_v17 }
 0xf53   :  { %v7440_v61 = vmul.f32 -1.442695, %v2599_v48 }
 0xf55   :  { %9449 = vpow2.f32 %v7440_v61 }
 0xf56   :  { %v2777_v3 = vpop.f32.mrb[28].mxu1 }
 0xf57   :  { %v8299_v50 = vpop.f32.mrb[29].mxu1 }
 0xf5f   :  { %v9450_v41 = vpop.eup %9449 }
 0xf60   :  { %v2603_v4 = vadd.f32 1.0, %v9450_v41 }
 0xf62   :  { %9451 = vrcp.f32 %v2603_v4 }
 0xf6c   :  { %v10325_v10 = vpop.eup %9451  ;;  %v2511_v9 = vpop.f32.mrb[26].mxu0 }
 0xf6d   :  { %v2512_v18 = vadd.f32 %v2511_v9, %v2439_v5  ;;  %v8266_v19 = vpop.f32.mrb[27].mxu0  ;;  %v2606_v21 = vmul.f32 2.0, %v10325_v10 }
 0xf6f   :  { %2515 = vst [vmem:[#allocation10] sm:$0x1] %v2512_v18  ;;  %v7441_v36 = vadd.f32 -1.0, %v2606_v21 }
 0xf70   :  { %v2957_v24 = vpop.f32.mrb[30].mxu1 }
 0xf71   :  { %v8321_v27 = vpop.f32.mrb[31].mxu1  ;;  %2613 = vrot.lane.b32.xlu0 %v7441_v36, %s9726_s8 }
 0xf74   :  { %v2707_v28 = vpop.f32.mrb[28].mxu0 }
 0xf75   :  { %v2778_v32 = vadd.f32 %v2777_v3, %v2707_v28  ;;  %v8288_v33 = vpop.f32.mrb[29].mxu0 }
 0xf77   :  { %v2782_v55 = vadd.f32 %v7444_v39, %v2778_v32 }
 0xf78   :  { %v3137_v34 = vpop.f32.mrb[32].mxu1 }
 0xf79   :  { %v7445_v35 = vmul.f32 -1.442695, %v2782_v55  ;;  %v8343_v38 = vpop.f32.mrb[33].mxu1 }
 0xf7b   :  { %9453 = vpow2.f32 %v7445_v35 }
 0xf7c   :  { %v2887_v45 = vpop.f32.mrb[30].mxu0 }
 0xf7d   :  { %v2958_v43 = vadd.f32 %v2957_v24, %v2887_v45  ;;  %v8310_v49 = vpop.f32.mrb[31].mxu0 }
 0xf7f   :  { %v2962_v47 = vadd.f32 %v7449_v20, %v2958_v43 }
 0xf80   :  { %v3312_v52 = vpop.f32.mrb[34].mxu1 }
 0xf81   :  { %v8365_v51 = vpop.f32.mrb[35].mxu1  ;;  %v7450_v11 = vmul.f32 -1.442695, %v2962_v47 }
 0xf84   :  { %v3067_v53 = vpop.f32.mrb[32].mxu0 }
 0xf85   :  { %v9454_v25 = vpop.eup %9453  ;;  %v3138_v54 = vadd.f32 %v3137_v34, %v3067_v53  ;;  %v8332_v59 = vpop.f32.mrb[33].mxu0 }
 0xf86   :  { %v2786_v60 = vadd.f32 1.0, %v9454_v25  ;;  %v2609_v25 = vrot.slane %v10188_v23, 7 }
 0xf87   :  { %v3142_v29 = vadd.f32 %v7454_v22, %v3138_v54 }
 0xf88   :  { %9455 = vrcp.f32 %v2786_v60  ;;  %v2611_v54 = vmul.f32 %v10325_v10, %v2609_v25 }
 0xf89   :  { %v7455_v56 = vmul.f32 -1.442695, %v3142_v29 }
 0xf8b   :  { %9457 = vpow2.f32 %v7455_v56 }
 0xf8c   :  { %v3242_v37 = vpop.f32.mrb[34].mxu0  ;;  %9459 = vpow2.f32 %v7450_v11 }
 0xf8d   :  { %v3313_v15 = vadd.f32 %v3312_v52, %v3242_v37  ;;  %v8354_v16 = vpop.f32.mrb[35].mxu0 }
 0xf8f   :  { %v3317_v48 = vadd.f32 %v7459_v6, %v3313_v15 }
 0xf91   :  { %v7460_v61 = vmul.f32 -1.442695, %v3317_v48 }
 0xf92   :  { %v10341_v3 = vpop.eup %9455 }
 0xf93   :  { %9461 = vpow2.f32 %v7460_v61  ;;  %v2789_v50 = vmul.f32 2.0, %v10341_v3  ;;  %v2791_v29 = vmul.f32 %v10341_v3, %v10193_v58 }
 0xf95   :  { %v9458_v41 = vpop.eup %9457  ;;  %v7446_v4 = vadd.f32 -1.0, %v2789_v50 }
 0xf96   :  { %v3146_v5 = vadd.f32 1.0, %v9458_v41  ;;  %v9460_v9 = vpop.eup %9459 }
 0xf97   :  { %2793 = vrot.lane.b32.xlu0 %v7446_v4, %s9726_s8  ;;  %v2966_v18 = vadd.f32 1.0, %v9460_v9 }
 0xf98   :  { %9463 = vrcp.f32 %v3146_v5 }
 0xf99   :  { %9465 = vrcp.f32 %v2966_v18 }
 0xf9d   :  { %v9462_v19 = vpop.eup %9461 }
 0xf9e   :  { %v3321_v21 = vadd.f32 1.0, %v9462_v19 }
 0xfa0   :  { %9467 = vrcp.f32 %v3321_v21 }
 0xfa2   :  { %v10345_v36 = vpop.eup %9463 }
 0xfa3   :  { %v3149_v24 = vmul.f32 2.0, %v10345_v36  ;;  %v10349_v28 = vpop.eup %9465  ;;  %v3151_v23 = vmul.f32 %v10345_v36, %v10200_v44 }
 0xfa4   :  { %v2969_v55 = vmul.f32 2.0, %v10349_v28  ;;  %v2971_v61 = vmul.f32 %v10349_v28, %v10209_v62 }
 0xfa5   :  { %v7456_v27 = vadd.f32 -1.0, %v3149_v24 }
 0xfa6   :  { %v7451_v34 = vadd.f32 -1.0, %v2969_v55 }
 0xfa7   :  { %3153 = vrot.lane.b32.xlu0 %v7456_v27, %s9726_s8 }
 0xfaa   :  { %v9468_v39 = vpop.eup %9467 }
 0xfab   :  { %v3324_v32 = vmul.f32 2.0, %v9468_v39  ;;  %v3326_v16 = vmul.f32 %v9468_v39, %v10204_v46 }
 0xfad   :  { %v7461_v33 = vadd.f32 -1.0, %v3324_v32 }
 0xfaf   :  { %3328 = vrot.lane.b32.xlu1 %v7461_v33, %s9726_s8 }
 0xfb3   :  { %2973 = vrot.lane.b32.xlu1 %v7451_v34, %s9726_s8  ;;  %v3719_v34 = vld [vmem:[#allocation5 + $0x58] sm:$0xff] }
 0xfe3   :  { %v2614_v35 = vpop.permute.xlu0 %2613 }
 0xfe4   :  { %v2616_v38 = vmul.f32 %v10325_v10, %v2614_v35 }
 0xfe6   :  { %2618 = vrot.lane.b32.xlu1 %v2616_v38, %s9727_s1  ;;  %v3896_v38 = vld [vmem:[#allocation5 + $0x60] sm:$0xff] }
0x1009   :  { %v2794_v45 = vpop.permute.xlu0 %2793 }
0x100a   :  { %v2796_v43 = vmul.f32 %v10341_v3, %v2794_v45  ;;  %v3897_v45 = vld [vmem:[#allocation5 + $0x68] sm:$0xff] }
0x100c   :  { %2798 = vrot.lane.b32.xlu1 %v2796_v43, %s9727_s1 }
0x1019   :  { %v3154_v49 = vpop.permute.xlu0 %3153 }
0x101a   :  { %v3156_v52 = vmul.f32 %v10345_v36, %v3154_v49  ;;  %v10421_v49 = vpack.c.bf16 %v3897_v45, %v3896_v38  ;;  %v7473_v45 = vld [vmem:[%s11026_s3 + $0x2] sm:$0x1] }
0x101c   :  { %3158 = vrot.lane.b32.xlu1 %v3156_v52, %s9727_s1  ;;  %v3720_v52 = vld [vmem:[#allocation7 + $0x40] sm:$0xff] }
0x1021   :  { %v3329_v51 = vpop.permute.xlu1 %3328 }
0x1022   :  { %v3331_v20 = vmul.f32 %v9468_v39, %v3329_v51  ;;  %v3721_v51 = vld [vmem:[#allocation7 + $0x48] sm:$0xff] }
0x1023   :  { %v10429_v25 = vpack.c.bf16 %v3721_v51, %v3720_v52  ;;  %v7478_v52 = vld [vmem:[%s11026_s3 + $0x3] sm:$0x1] }
0x1024   :  { %3333 = vrot.lane.b32.xlu0 %v3331_v20, %s9727_s1  ;;  %v3898_v20 = vld [vmem:[#allocation5 + $0x70] sm:$0xff] }
0x1025   :  { %v2974_v53 = vpop.permute.xlu1 %2973 }
0x1026   :  { %v2976_v22 = vmul.f32 %v10349_v28, %v2974_v53  ;;  %v3899_v53 = vld [vmem:[#allocation5 + $0x78] sm:$0xff] }
0x1028   :  { %2978 = vrot.lane.b32.xlu0 %v2976_v22, %s9727_s1 }
0x1058   :  { %v2619_v59 = vpop.permute.xlu1 %2618 }
0x1059   :  { %v10365_v60 = vadd.f32 %v2619_v59, %v2611_v54  ;;  %v10431_v54 = vpack.c.bf16 %v3899_v53, %v3898_v20  ;;  %v3900_v59 = vld [vmem:[#allocation7 + $0x60] sm:$0xff] }
0x105b   :  { %9469 = vtanh.f32 %v10365_v60 }
0x1065   :  { %v9470_v47 = vpop.eup %9469 }
0x1066   :  { %2624 = vrot.lane.b32.xlu0 %v9470_v47, %s9726_s8  ;;  %v3901_v47 = vld [vmem:[#allocation7 + $0x68] sm:$0xff] }
0x107e   :  { %v2799_v56 = vpop.permute.xlu1 %2798 }
0x107f   :  { %v10371_v11 = vadd.f32 %v2799_v56, %v2791_v29  ;;  %v10447_v56 = vpack.c.bf16 %v3901_v47, %v3900_v59 }
0x1081   :  { %9471 = vtanh.f32 %v10371_v11 }
0x108b   :  { %v9472_v37 = vpop.eup %9471 }
0x108c   :  { %2804 = vrot.lane.b32.xlu0 %v9472_v37, %s9726_s8  ;;  %v3902_v37 = vld [vmem:[#allocation7 + $0x70] sm:$0xff] }
0x108e   :  { %v3159_v6 = vpop.permute.xlu1 %3158 }
0x108f   :  { %v10377_v15 = vadd.f32 %v3159_v6, %v3151_v23  ;;  %v3903_v23 = vld [vmem:[#allocation7 + $0x78] sm:$0xff] }
0x1090   :  { %v10456_v6 = vpack.c.bf16 %v3903_v23, %v3902_v37 }
0x1091   :  { %9473 = vtanh.f32 %v10377_v15 }
0x1096   :  { %v3334_v48 = vpop.permute.xlu0 %3333 }
0x1097   :  { %v10381_v58 = vadd.f32 %v3334_v48, %v3326_v16 }
0x1099   :  { %9475 = vtanh.f32 %v10381_v58 }
0x109a   :  { %v2979_v50 = vpop.permute.xlu0 %2978 }
0x109b   :  { %v9474_v41 = vpop.eup %9473  ;;  %v10386_v4 = vadd.f32 %v2979_v50, %v2971_v61 }
0x109c   :  { %3164 = vrot.lane.b32.xlu0 %v9474_v41, %s9726_s8 }
0x109d   :  { %9477 = vtanh.f32 %v10386_v4 }
0x10a3   :  { %v9476_v44 = vpop.eup %9475 }
0x10a4   :  { %3339 = vrot.lane.b32.xlu1 %v9476_v44, %s9726_s8 }
0x10a7   :  { %v9478_v46 = vpop.eup %9477 }
0x10a8   :  { %2984 = vrot.lane.b32.xlu1 %v9478_v46, %s9726_s8 }
0x10d8   :  { %v2625_v5 = vpop.permute.xlu0 %2624 }
0x10d9   :  { %v2627_v9 = vmul.f32 %v10325_v10, %v2625_v5 }
0x10db   :  { %v3429_v18 = vrot.slane %v2627_v9, 5 }
0x10dd   :  { %3430 = vrot.lane.b32.xlu0 %v3429_v18, %s9727_s1 }
0x10fe   :  { %v2805_v21 = vpop.permute.xlu0 %2804 }
0x10ff   :  { %v2807_v27 = vmul.f32 %v10341_v3, %v2805_v21  ;;  %v3716_v3 = vld [vmem:[#allocation5 + $0x40] sm:$0xff]  ;;  %v7468_v21 = vld [vmem:[%s11026_s3 + $0x1] sm:$0x1] }
0x110e   :  { %v3165_v33 = vpop.permute.xlu0 %3164 }
0x110f   :  { %v3167_v10 = vmul.f32 %v10345_v36, %v3165_v33  ;;  %v3718_v36 = vld [vmem:[#allocation5 + $0x50] sm:$0xff] }
0x1110   :  { %v10412_v35 = vpack.c.bf16 %v3719_v34, %v3718_v36 }
0x1116   :  { %v3340_v62 = vpop.permute.xlu1 %3339 }
0x1117   :  { %v3342_v19 = vmul.f32 %v9468_v39, %v3340_v62 }
0x1119   :  { %3349 = vrot.lane.b32.xlu1 %v3342_v19, %s9727_s1 }
0x111a   :  { %v2985_v24 = vpop.permute.xlu1 %2984 }
0x111b   :  { %v2987_v32 = vmul.f32 %v10349_v28, %v2985_v24  ;;  %v3717_v28 = vld [vmem:[#allocation5 + $0x48] sm:$0xff] }
0x111c   :  { %v10407_v39 = vpack.c.bf16 %v3717_v28, %v3716_v3 }
0x111d   :  { %3545 = vrot.lane.b32.xlu1 %v2807_v27, %s9727_s1  ;;  %3725 = vrot.lane.b32.xlu0 %v2987_v32, %s9727_s1 }
0x1121   :  { %3905 = vrot.lane.b32.xlu1 %v3167_v10, %s9727_s1 }
0x114f   :  { %v3431_v55 = vpop.permute.xlu0 %3430 }
0x1150   :  { %8386 = vmatmul.mubr.msk.f32.vlgmr.msra.gmra.mrb[36].mxu1 %vm89_vm1, %v3431_v55 }
0x1151   :  { %9097 = vmatpush3.bf16.msra.mxu1 %v10241_v26  ;;  %8407 = vmatprep.mubr.msk.f32.mxu1 %vm9724_vm0, %v9725_v1 }
0x1152   :  { %9098 = vmatprep.subr.bf16.mxu1 %v9723_v0 }
0x1155   :  { %9100 = vmatpush3.bf16.msra.mxu1 %v10245_v2 }
0x1156   :  { %9107 = vmatprep.subr.bf16.mxu1 %v9723_v0 }
0x1158   :  { %8408 = vmatmul.mubr.msk.f32.vlgmr.msra.gmra.mrb[38].mxu1 %vm89_vm1, %v3431_v55 }
0x1159   :  { %9109 = vmatpush3.bf16.msra.mxu1 %v10407_v39  ;;  %8429 = vmatprep.mubr.msk.f32.mxu1 %vm9724_vm0, %v9725_v1 }
0x115a   :  { %9110 = vmatprep.subr.bf16.mxu1 %v9723_v0 }
0x115d   :  { %9112 = vmatpush3.bf16.msra.mxu1 %v10412_v35 }
0x115e   :  { %9119 = vmatprep.subr.bf16.mxu1 %v9723_v0 }
0x118b   :  { %v3350_v43 = vpop.permute.xlu1 %3349 }
0x118c   :  { %8375 = vmatmul.mubr.msk.f32.vlgmr.msra.gmra.mrb[36].mxu0 %vm89_vm1, %v3350_v43 }
0x118d   :  { %9091 = vmatpush3.bf16.msra.mxu0 %v10259_v57  ;;  %8396 = vmatprep.mubr.msk.f32.mxu0 %vm9724_vm0, %v9725_v1 }
0x118e   :  { %9092 = vmatprep.subr.bf16.mxu0 %v9723_v0 }
0x118f   :  { %v3546_v22 = vpop.permute.xlu1 %3545  ;;  %v3726_v29 = vpop.permute.xlu0 %3725 }
0x1190   :  { %8430 = vmatmul.mubr.msk.f32.vlgmr.msra.gmra.mrb[40].mxu1 %vm89_vm1, %v3546_v22 }
0x1191   :  { %9094 = vmatpush3.bf16.msra.mxu0 %v10263_v42  ;;  %9121 = vmatpush3.bf16.msra.mxu1 %v10421_v49 }
0x1192   :  { %9101 = vmatprep.subr.bf16.mxu0 %v9723_v0  ;;  %9122 = vmatprep.subr.bf16.mxu1 %v9723_v0 }
0x1193   :  { %8451 = vmatprep.mubr.msk.f32.mxu1 %vm9724_vm0, %v9725_v1 }
0x1194   :  { %8397 = vmatmul.mubr.msk.f32.vlgmr.msra.gmra.mrb[38].mxu0 %vm89_vm1, %v3546_v22 }
0x1195   :  { %9103 = vmatpush3.bf16.msra.mxu0 %v10429_v25  ;;  %9124 = vmatpush3.bf16.msra.mxu1 %v10431_v54 }
0x1196   :  { %9104 = vmatprep.subr.bf16.mxu0 %v9723_v0  ;;  %9131 = vmatprep.subr.bf16.mxu1 %v9723_v0 }
0x1197   :  { %8418 = vmatprep.mubr.msk.f32.mxu0 %vm9724_vm0, %v9725_v1 }
0x1198   :  { %8452 = vmatmul.mubr.msk.f32.vlgmr.msra.gmra.mrb[42].mxu1 %vm89_vm1, %v3726_v29 }
0x1199   :  { %9106 = vmatpush3.bf16.msra.mxu0 %v10278_v31  ;;  %9133 = vmatpush3.bf16.msra.mxu1 %v10122_v7  ;;  %v3906_v7 = vpop.permute.xlu1 %3905 }
0x119a   :  { %9113 = vmatprep.subr.bf16.mxu0 %v9723_v0  ;;  %9134 = vmatprep.subr.bf16.mxu1 %v9723_v0 }
0x119b   :  { %8473 = vmatprep.mubr.msk.f32.mxu1 %vm9724_vm0, %v9725_v1 }
0x119c   :  { %8419 = vmatmul.mubr.msk.f32.vlgmr.msra.gmra.mrb[40].mxu0 %vm89_vm1, %v3726_v29 }
0x119d   :  { %9115 = vmatpush3.bf16.msra.mxu0 %v10447_v56  ;;  %9136 = vmatpush3.bf16.msra.mxu1 %v10134_v14 }
0x119e   :  { %9116 = vmatprep.subr.bf16.mxu0 %v9723_v0  ;;  %8440 = vmatprep.mubr.msk.f32.mxu0 %vm9724_vm0, %v9725_v1 }
0x119f   :  { %9143 = vmatprep.subr.bf16.mxu1 %v9723_v0 }
0x11a0   :  { %8474 = vmatmul.mubr.msk.f32.vlgmr.msra.gmra.mrb[44].mxu1 %vm89_vm1, %v3906_v7 }
0x11a1   :  { %9118 = vmatpush3.bf16.msra.mxu0 %v10456_v6  ;;  %9145 = vmatpush3.bf16.msra.mxu1 %v10213_v8 }
0x11a2   :  { %9125 = vmatprep.subr.bf16.mxu0 %v9723_v0  ;;  %9146 = vmatprep.subr.bf16.mxu1 %v9723_v0 }
0x11a3   :  { %8495 = vmatprep.mubr.msk.f32.mxu1 %vm9724_vm0, %v9725_v1 }
0x11a4   :  { %8441 = vmatmul.mubr.msk.f32.vlgmr.msra.gmra.mrb[42].mxu0 %vm89_vm1, %v3906_v7  ;;  %v7483_v7 = vld [vmem:[%s11026_s3 + $0x4] sm:$0x1] }
0x11a5   :  { %9127 = vmatpush3.bf16.msra.mxu0 %v10118_v63  ;;  %8462 = vmatprep.mubr.msk.f32.mxu0 %vm9724_vm0, %v9725_v1 }
0x11a6   :  { %9128 = vmatprep.subr.bf16.mxu0 %v9723_v0  ;;  %9148 = vmatpush3.bf16.msra.mxu1 %v10217_v40 }
0x11a7   :  { %9155 = vmatprep.subr.bf16.mxu1 %v9723_v0 }
0x11a9   :  { %9130 = vmatpush3.bf16.msra.mxu0 %v10127_v12 }
0x11aa   :  { %9137 = vmatprep.subr.bf16.mxu0 %v9723_v0 }
0x11ac   :  { %8463 = vmatmul.mubr.msk.f32.vlgmr.msra.gmra.mrb[44].mxu0 %vm89_vm1, %v3350_v43 }
0x11ad   :  { %9139 = vmatpush3.bf16.msra.mxu0 %v10224_v13  ;;  %8484 = vmatprep.mubr.msk.f32.mxu0 %vm9724_vm0, %v9725_v1 }
0x11ae   :  { %9140 = vmatprep.subr.bf16.mxu0 %v9723_v0 }
0x11b1   :  { %9142 = vmatpush3.bf16.msra.mxu0 %v10227_v30  ;;  %v3347_v30 = vld [vmem:[%s11028_s5] sm:$0x1] }
0x11b2   :  { %9149 = vmatprep.subr.bf16.mxu0 %v9723_v0 }
0x1223   :  { %v3500_v63 = vpop.f32.mrb[36].mxu1 }
0x1224   :  { %v3505_v14 = vrot.slane %v3500_v63, 2  ;;  %v8387_v8 = vpop.f32.mrb[37].mxu1 }
0x1226   :  { %v3507_v12 = vadd.f32 %v3505_v14, %v9850_v17 }
0x1228   :  { %v7464_v40 = vmul.f32 -1.442695, %v3507_v12 }
0x122a   :  { %9479 = vpow2.f32 %v7464_v40 }
0x122b   :  { %v3685_v16 = vpop.f32.mrb[38].mxu1 }
0x122c   :  { %v8409_v48 = vpop.f32.mrb[39].mxu1 }
0x1234   :  { %v9480_v61 = vpop.eup %9479 }
0x1235   :  { %v3511_v13 = vadd.f32 1.0, %v9480_v61 }
0x1237   :  { %9481 = vrcp.f32 %v3511_v13 }
0x1241   :  { %v10486_v50 = vpop.eup %9481 }
0x1242   :  { %v3514_v41 = vmul.f32 2.0, %v10486_v50 }
0x1244   :  { %v7465_v44 = vadd.f32 -1.0, %v3514_v41 }
0x1246   :  { %3521 = vrot.lane.b32.xlu0 %v7465_v44, %s9726_s8 }
0x125f   :  { %v3419_v46 = vpop.f32.mrb[36].mxu0 }
0x1260   :  { %v3420_v5 = vadd.f32 %v3419_v46, %v3347_v30  ;;  %v8376_v9 = vpop.f32.mrb[37].mxu0 }
0x1262   :  { %3423 = vst [vmem:[#allocation10 + $0x1] sm:$0x1] %v3420_v5 }
0x1263   :  { %v3865_v18 = vpop.f32.mrb[40].mxu1 }
0x1264   :  { %v8431_v62 = vpop.f32.mrb[41].mxu1 }
0x1267   :  { %v3615_v19 = vpop.f32.mrb[38].mxu0 }
0x1268   :  { %v3686_v24 = vadd.f32 %v3685_v16, %v3615_v19  ;;  %v8398_v27 = vpop.f32.mrb[39].mxu0 }
0x126a   :  { %v3690_v32 = vadd.f32 %v7468_v21, %v3686_v24 }
0x126b   :  { %v4045_v33 = vpop.f32.mrb[42].mxu1 }
0x126c   :  { %v7469_v10 = vmul.f32 -1.442695, %v3690_v32  ;;  %v8453_v55 = vpop.f32.mrb[43].mxu1 }
0x126e   :  { %9483 = vpow2.f32 %v7469_v10 }
0x126f   :  { %v3795_v3 = vpop.f32.mrb[40].mxu0 }
0x1270   :  { %v3866_v28 = vadd.f32 %v3865_v18, %v3795_v3  ;;  %v8420_v36 = vpop.f32.mrb[41].mxu0 }
0x1272   :  { %v3870_v59 = vadd.f32 %v7473_v45, %v3866_v28 }
0x1273   :  { %v4220_v34 = vpop.f32.mrb[44].mxu1 }
0x1274   :  { %v8475_v38 = vpop.f32.mrb[45].mxu1  ;;  %v7474_v37 = vmul.f32 -1.442695, %v3870_v59 }
0x1277   :  { %v3975_v43 = vpop.f32.mrb[42].mxu0 }
0x1278   :  { %v9484_v51 = vpop.eup %9483  ;;  %v4046_v20 = vadd.f32 %v4045_v33, %v3975_v43  ;;  %v8442_v53 = vpop.f32.mrb[43].mxu0 }
0x1279   :  { %v3694_v22 = vadd.f32 1.0, %v9484_v51 }
0x127a   :  { %v4050_v47 = vadd.f32 %v7478_v52, %v4046_v20  ;;  %v3517_v52 = vrot.slane %v10365_v60, 7 }
0x127b   :  { %9485 = vrcp.f32 %v3694_v22 }
0x127c   :  { %v7479_v29 = vmul.f32 -1.442695, %v4050_v47  ;;  %v3519_v51 = vmul.f32 %v10486_v50, %v3517_v52 }
0x127e   :  { %9487 = vpow2.f32 %v7479_v29 }
0x127f   :  { %v4150_v23 = vpop.f32.mrb[44].mxu0  ;;  %9489 = vpow2.f32 %v7474_v37 }
0x1280   :  { %v4221_v63 = vadd.f32 %v4220_v34, %v4150_v23  ;;  %v8464_v14 = vpop.f32.mrb[45].mxu0 }
0x1282   :  { %v4225_v8 = vadd.f32 %v7483_v7, %v4221_v63 }
0x1284   :  { %v7484_v12 = vmul.f32 -1.442695, %v4225_v8 }
0x1285   :  { %v10505_v40 = vpop.eup %9485 }
0x1286   :  { %9491 = vpow2.f32 %v7484_v12  ;;  %v3697_v16 = vmul.f32 2.0, %v10505_v40  ;;  %v3699_v59 = vmul.f32 %v10505_v40, %v10371_v11 }
0x1288   :  { %v9488_v48 = vpop.eup %9487  ;;  %v7470_v61 = vadd.f32 -1.0, %v3697_v16 }
0x1289   :  { %v4054_v13 = vadd.f32 1.0, %v9488_v48  ;;  %v9490_v41 = vpop.eup %9489 }
0x128a   :  { %3701 = vrot.lane.b32.xlu0 %v7470_v61, %s9726_s8  ;;  %v3874_v44 = vadd.f32 1.0, %v9490_v41 }
0x128b   :  { %9493 = vrcp.f32 %v4054_v13 }
0x128c   :  { %9495 = vrcp.f32 %v3874_v44 }
0x1290   :  { %v9492_v30 = vpop.eup %9491 }
0x1291   :  { %v4229_v46 = vadd.f32 1.0, %v9492_v30 }
0x1293   :  { %9497 = vrcp.f32 %v4229_v46 }
0x1295   :  { %v10509_v5 = vpop.eup %9493 }
0x1296   :  { %v4057_v9 = vmul.f32 2.0, %v10509_v5  ;;  %v10513_v62 = vpop.eup %9495  ;;  %v4059_v60 = vmul.f32 %v10509_v5, %v10377_v15 }
0x1297   :  { %v3877_v27 = vmul.f32 2.0, %v10513_v62  ;;  %v3879_v8 = vmul.f32 %v10513_v62, %v10386_v4 }
0x1298   :  { %v7480_v18 = vadd.f32 -1.0, %v4057_v9 }
0x1299   :  { %v7475_v32 = vadd.f32 -1.0, %v3877_v27  ;;  %v4990_v27 = vld [vmem:[#allocation7 + $0x90] sm:$0xff] }
0x129a   :  { %4061 = vrot.lane.b32.xlu0 %v7480_v18, %s9726_s8 }
0x129d   :  { %v9498_v19 = vpop.eup %9497 }
0x129e   :  { %v4232_v21 = vmul.f32 2.0, %v9498_v19  ;;  %v4234_v63 = vmul.f32 %v9498_v19, %v10381_v58 }
0x12a0   :  { %v7485_v24 = vadd.f32 -1.0, %v4232_v21 }
0x12a2   :  { %4236 = vrot.lane.b32.xlu1 %v7485_v24, %s9726_s8 }
0x12a6   :  { %3881 = vrot.lane.b32.xlu1 %v7475_v32, %s9726_s8  ;;  %v4991_v32 = vld [vmem:[#allocation7 + $0x98] sm:$0xff] }
0x12b8   :  { %v3522_v33 = vpop.permute.xlu0 %3521 }
0x12b9   :  { %v3524_v10 = vmul.f32 %v10486_v50, %v3522_v33  ;;  %v10625_v33 = vpack.c.bf16 %v4991_v32, %v4990_v27 }
0x12bb   :  { %3526 = vrot.lane.b32.xlu1 %v3524_v10, %s9727_s1 }
0x12fc   :  { %v3702_v55 = vpop.permute.xlu0 %3701 }
0x12fd   :  { %v3704_v3 = vmul.f32 %v10505_v40, %v3702_v55 }
0x12ff   :  { %3706 = vrot.lane.b32.xlu1 %v3704_v3, %s9727_s1 }
0x130c   :  { %v4062_v28 = vpop.permute.xlu0 %4061 }
0x130d   :  { %v4064_v36 = vmul.f32 %v10509_v5, %v4062_v28 }
0x130f   :  { %4066 = vrot.lane.b32.xlu1 %v4064_v36, %s9727_s1 }
0x1314   :  { %v4237_v34 = vpop.permute.xlu1 %4236 }
0x1315   :  { %v4239_v38 = vmul.f32 %v9498_v19, %v4237_v34 }
0x1317   :  { %4241 = vrot.lane.b32.xlu0 %v4239_v38, %s9727_s1 }
0x1318   :  { %v3882_v45 = vpop.permute.xlu1 %3881 }
0x1319   :  { %v3884_v43 = vmul.f32 %v10513_v62, %v3882_v45 }
0x131b   :  { %3886 = vrot.lane.b32.xlu0 %v3884_v43, %s9727_s1 }
0x132d   :  { %v3527_v20 = vpop.permute.xlu1 %3526 }
0x132e   :  { %v10529_v53 = vadd.f32 %v3527_v20, %v3519_v51 }
0x1330   :  { %9499 = vtanh.f32 %v10529_v53 }
0x133a   :  { %v9500_v22 = vpop.eup %9499 }
0x133b   :  { %3532 = vrot.lane.b32.xlu0 %v9500_v22, %s9726_s8  ;;  %v4255_v22 = vld [vmem:[%s11028_s5] sm:$0x1] }
0x1371   :  { %v3707_v47 = vpop.permute.xlu1 %3706 }
0x1372   :  { %v10535_v29 = vadd.f32 %v3707_v47, %v3699_v59 }
0x1374   :  { %9501 = vtanh.f32 %v10535_v29 }
0x137e   :  { %v9502_v37 = vpop.eup %9501 }
0x137f   :  { %3712 = vrot.lane.b32.xlu0 %v9502_v37, %s9726_s8 }
0x1381   :  { %v4067_v23 = vpop.permute.xlu1 %4066 }
0x1382   :  { %v10541_v7 = vadd.f32 %v4067_v23, %v4059_v60 }
0x1384   :  { %9503 = vtanh.f32 %v10541_v7 }
0x1389   :  { %v4242_v14 = vpop.permute.xlu0 %4241 }
0x138a   :  { %v10545_v11 = vadd.f32 %v4242_v14, %v4234_v63 }
0x138c   :  { %9505 = vtanh.f32 %v10545_v11 }
0x138d   :  { %v3887_v12 = vpop.permute.xlu0 %3886 }
0x138e   :  { %v9504_v16 = vpop.eup %9503  ;;  %v10550_v48 = vadd.f32 %v3887_v12, %v3879_v8 }
0x138f   :  { %4072 = vrot.lane.b32.xlu0 %v9504_v16, %s9726_s8 }
0x1390   :  { %9507 = vtanh.f32 %v10550_v48 }
0x1396   :  { %v9506_v15 = vpop.eup %9505 }
0x1397   :  { %4247 = vrot.lane.b32.xlu1 %v9506_v15, %s9726_s8  ;;  %v7497_v15 = vld [vmem:[%s11026_s3 + $0x2] sm:$0x1] }
0x139a   :  { %v9508_v58 = vpop.eup %9507 }
0x139b   :  { %3892 = vrot.lane.b32.xlu1 %v9508_v58, %s9726_s8 }
0x13ad   :  { %v3533_v61 = vpop.permute.xlu0 %3532 }
0x13ae   :  { %v3535_v13 = vmul.f32 %v10486_v50, %v3533_v61 }
0x13b0   :  { %v4337_v41 = vrot.slane %v3535_v13, 6 }
0x13b2   :  { %4338 = vrot.lane.b32.xlu0 %v4337_v41, %s9727_s1 }
0x13f1   :  { %v3713_v30 = vpop.permute.xlu0 %3712 }
0x13f2   :  { %v3715_v9 = vmul.f32 %v10505_v40, %v3713_v30  ;;  %v7492_v30 = vld [vmem:[%s11026_s3 + $0x1] sm:$0x1] }
0x1401   :  { %v4073_v21 = vpop.permute.xlu0 %4072 }
0x1402   :  { %v4075_v50 = vmul.f32 %v10509_v5, %v4073_v21 }
0x1409   :  { %v4248_v4 = vpop.permute.xlu1 %4247 }
0x140a   :  { %v4250_v44 = vmul.f32 %v9498_v19, %v4248_v4 }
0x140c   :  { %4257 = vrot.lane.b32.xlu1 %v4250_v44, %s9727_s1 }
0x140d   :  { %v3893_v46 = vpop.permute.xlu1 %3892 }
0x140e   :  { %v3895_v18 = vmul.f32 %v10513_v62, %v3893_v46 }
0x1410   :  { %4453 = vrot.lane.b32.xlu1 %v3715_v9, %s9727_s1  ;;  %4633 = vrot.lane.b32.xlu0 %v3895_v18, %s9727_s1 }
0x1414   :  { %4813 = vrot.lane.b32.xlu1 %v4075_v50, %s9727_s1  ;;  %v7502_v50 = vld [vmem:[%s11026_s3 + $0x3] sm:$0x1] }
0x1424   :  { %v4339_v24 = vpop.permute.xlu0 %4338 }
0x1425   :  { %8496 = vmatmul.mubr.msk.f32.vlgmr.msra.gmra.mrb[46].mxu1 %vm89_vm1, %v4339_v24 }
0x1426   :  { %9157 = vmatpush3.bf16.msra.mxu1 %v10241_v26  ;;  %8517 = vmatprep.mubr.msk.f32.mxu1 %vm9724_vm0, %v9725_v1 }
0x1427   :  { %9158 = vmatprep.subr.bf16.mxu1 %v9723_v0 }
0x142a   :  { %9160 = vmatpush3.bf16.msra.mxu1 %v10245_v2 }
0x142b   :  { %9167 = vmatprep.subr.bf16.mxu1 %v9723_v0 }
0x142d   :  { %8518 = vmatmul.mubr.msk.f32.vlgmr.msra.gmra.mrb[48].mxu1 %vm89_vm1, %v4339_v24 }
0x142e   :  { %9169 = vmatpush3.bf16.msra.mxu1 %v10407_v39  ;;  %8539 = vmatprep.mubr.msk.f32.mxu1 %vm9724_vm0, %v9725_v1  ;;  %v4984_v39 = vld [vmem:[#allocation5 + $0x80] sm:$0xff] }
0x142f   :  { %9170 = vmatprep.subr.bf16.mxu1 %v9723_v0 }
0x1432   :  { %9172 = vmatpush3.bf16.msra.mxu1 %v10412_v35  ;;  %v4985_v35 = vld [vmem:[#allocation5 + $0x88] sm:$0xff] }
0x1433   :  { %9179 = vmatprep.subr.bf16.mxu1 %v9723_v0 }
0x147e   :  { %v4258_v26 = vpop.permute.xlu1 %4257 }
0x147f   :  { %8485 = vmatmul.mubr.msk.f32.vlgmr.msra.gmra.mrb[46].mxu0 %vm89_vm1, %v4258_v26 }
0x1480   :  { %9151 = vmatpush3.bf16.msra.mxu0 %v10259_v57  ;;  %8506 = vmatprep.mubr.msk.f32.mxu0 %vm9724_vm0, %v9725_v1  ;;  %v10594_v57 = vpack.c.bf16 %v4985_v35, %v4984_v39  ;;  %v7507_v39 = vld [vmem:[%s11026_s3 + $0x4] sm:$0x1] }
0x1481   :  { %9152 = vmatprep.subr.bf16.mxu0 %v9723_v0 }
0x1482   :  { %v4454_v2 = vpop.permute.xlu1 %4453  ;;  %v4634_v40 = vpop.permute.xlu0 %4633 }
0x1483   :  { %8540 = vmatmul.mubr.msk.f32.vlgmr.msra.gmra.mrb[50].mxu1 %vm89_vm1, %v4454_v2 }
0x1484   :  { %9154 = vmatpush3.bf16.msra.mxu0 %v10263_v42  ;;  %9181 = vmatpush3.bf16.msra.mxu1 %v10421_v49  ;;  %v4986_v42 = vld [vmem:[#allocation5 + $0x90] sm:$0xff]  ;;  %v4987_v49 = vld [vmem:[#allocation5 + $0x98] sm:$0xff] }
0x1485   :  { %9161 = vmatprep.subr.bf16.mxu0 %v9723_v0  ;;  %9182 = vmatprep.subr.bf16.mxu1 %v9723_v0  ;;  %v10603_v5 = vpack.c.bf16 %v4987_v49, %v4986_v42 }
0x1486   :  { %8561 = vmatprep.mubr.msk.f32.mxu1 %vm9724_vm0, %v9725_v1  ;;  %v4814_v62 = vpop.permute.xlu1 %4813 }
0x1487   :  { %8507 = vmatmul.mubr.msk.f32.vlgmr.msra.gmra.mrb[48].mxu0 %vm89_vm1, %v4454_v2 }
0x1488   :  { %9163 = vmatpush3.bf16.msra.mxu0 %v10429_v25  ;;  %9184 = vmatpush3.bf16.msra.mxu1 %v10431_v54  ;;  %v4989_v54 = vld [vmem:[#allocation7 + $0x88] sm:$0xff] }
0x1489   :  { %9164 = vmatprep.subr.bf16.mxu0 %v9723_v0  ;;  %9191 = vmatprep.subr.bf16.mxu1 %v9723_v0 }
0x148a   :  { %8528 = vmatprep.mubr.msk.f32.mxu0 %vm9724_vm0, %v9725_v1 }
0x148b   :  { %8562 = vmatmul.mubr.msk.f32.vlgmr.msra.gmra.mrb[52].mxu1 %vm89_vm1, %v4634_v40 }
0x148c   :  { %9166 = vmatpush3.bf16.msra.mxu0 %v10278_v31  ;;  %9193 = vmatpush3.bf16.msra.mxu1 %v10594_v57  ;;  %v4988_v31 = vld [vmem:[#allocation7 + $0x80] sm:$0xff] }
0x148d   :  { %9173 = vmatprep.subr.bf16.mxu0 %v9723_v0  ;;  %9194 = vmatprep.subr.bf16.mxu1 %v9723_v0  ;;  %v10618_v19 = vpack.c.bf16 %v4989_v54, %v4988_v31 }
0x148e   :  { %8583 = vmatprep.mubr.msk.f32.mxu1 %vm9724_vm0, %v9725_v1 }
0x148f   :  { %8529 = vmatmul.mubr.msk.f32.vlgmr.msra.gmra.mrb[50].mxu0 %vm89_vm1, %v4634_v40 }
0x1490   :  { %9175 = vmatpush3.bf16.msra.mxu0 %v10447_v56  ;;  %9196 = vmatpush3.bf16.msra.mxu1 %v10603_v5 }
0x1491   :  { %9176 = vmatprep.subr.bf16.mxu0 %v9723_v0  ;;  %8550 = vmatprep.mubr.msk.f32.mxu0 %vm9724_vm0, %v9725_v1 }
0x1492   :  { %9203 = vmatprep.subr.bf16.mxu1 %v9723_v0 }
0x1493   :  { %8584 = vmatmul.mubr.msk.f32.vlgmr.msra.gmra.mrb[54].mxu1 %vm89_vm1, %v4814_v62 }
0x1494   :  { %9178 = vmatpush3.bf16.msra.mxu0 %v10456_v6  ;;  %8605 = vmatprep.mubr.msk.f32.mxu1 %vm9724_vm0, %v9725_v1 }
0x1495   :  { %9185 = vmatprep.subr.bf16.mxu0 %v9723_v0 }
0x1497   :  { %8551 = vmatmul.mubr.msk.f32.vlgmr.msra.gmra.mrb[52].mxu0 %vm89_vm1, %v4814_v62 }
0x1498   :  { %9187 = vmatpush3.bf16.msra.mxu0 %v10618_v19  ;;  %8572 = vmatprep.mubr.msk.f32.mxu0 %vm9724_vm0, %v9725_v1 }
0x1499   :  { %9188 = vmatprep.subr.bf16.mxu0 %v9723_v0 }
0x149c   :  { %9190 = vmatpush3.bf16.msra.mxu0 %v10625_v33 }
0x149d   :  { %9197 = vmatprep.subr.bf16.mxu0 %v9723_v0 }
0x149f   :  { %8573 = vmatmul.mubr.msk.f32.vlgmr.msra.gmra.mrb[54].mxu0 %vm89_vm1, %v4258_v26 }
0x14a0   :  { %8594 = vmatprep.mubr.msk.f32.mxu0 %vm9724_vm0, %v9725_v1 }
0x14f8   :  { %v4408_v10 = vpop.f32.mrb[46].mxu1 }
0x14f9   :  { %v4413_v55 = vrot.slane %v4408_v10, 1  ;;  %v8497_v3 = vpop.f32.mrb[47].mxu1 }
0x14fb   :  { %v4415_v28 = vadd.f32 %v4413_v55, %v9850_v17 }
0x14fd   :  { %v7488_v36 = vmul.f32 -1.442695, %v4415_v28 }
0x14ff   :  { %9509 = vpow2.f32 %v7488_v36 }
0x1500   :  { %v4593_v34 = vpop.f32.mrb[48].mxu1 }
0x1501   :  { %v8519_v38 = vpop.f32.mrb[49].mxu1 }
0x1509   :  { %v9510_v45 = vpop.eup %9509 }
0x150a   :  { %v4419_v43 = vadd.f32 1.0, %v9510_v45 }
0x150c   :  { %9511 = vrcp.f32 %v4419_v43 }
0x1516   :  { %v10636_v52 = vpop.eup %9511 }
0x1517   :  { %v4422_v51 = vmul.f32 2.0, %v10636_v52 }
0x1519   :  { %v7489_v20 = vadd.f32 -1.0, %v4422_v51 }
0x151b   :  { %4429 = vrot.lane.b32.xlu1 %v7489_v20, %s9726_s8 }
0x1552   :  { %v4327_v59 = vpop.f32.mrb[46].mxu0 }
0x1553   :  { %v4328_v17 = vadd.f32 %v4327_v59, %v4255_v22  ;;  %v8486_v47 = vpop.f32.mrb[47].mxu0 }
0x1555   :  { %4331 = vst [vmem:[#allocation10 + $0x2] sm:$0x1] %v4328_v17 }
0x1556   :  { %v4773_v37 = vpop.f32.mrb[50].mxu1 }
0x1557   :  { %v8541_v60 = vpop.f32.mrb[51].mxu1 }
0x155a   :  { %v4523_v23 = vpop.f32.mrb[48].mxu0 }
0x155b   :  { %v4594_v63 = vadd.f32 %v4593_v34, %v4523_v23  ;;  %v8508_v14 = vpop.f32.mrb[49].mxu0 }
0x155d   :  { %v4598_v21 = vadd.f32 %v7492_v30, %v4594_v63 }
0x155e   :  { %v4953_v8 = vpop.f32.mrb[52].mxu1 }
0x155f   :  { %v8563_v12 = vpop.f32.mrb[53].mxu1  ;;  %v7493_v24 = vmul.f32 -1.442695, %v4598_v21 }
0x1562   :  { %v4703_v16 = vpop.f32.mrb[50].mxu0 }
0x1563   :  { %v4774_v58 = vadd.f32 %v4773_v37, %v4703_v16  ;;  %v8530_v61 = vpop.f32.mrb[51].mxu0 }
0x1564   :  { %v4425_v61 = vrot.slane %v10529_v53, 7 }
0x1565   :  { %v4778_v13 = vadd.f32 %v7497_v15, %v4774_v58 }
0x1566   :  { %v5128_v41 = vpop.f32.mrb[54].mxu1 }
0x1567   :  { %v7498_v4 = vmul.f32 -1.442695, %v4778_v13  ;;  %v8585_v44 = vpop.f32.mrb[55].mxu1 }
0x1569   :  { %9513 = vpow2.f32 %v7498_v4 }
0x156a   :  { %v4883_v46 = vpop.f32.mrb[52].mxu0  ;;  %9515 = vpow2.f32 %v7493_v24 }
0x156b   :  { %v4954_v9 = vadd.f32 %v4953_v8, %v4883_v46  ;;  %v8552_v18 = vpop.f32.mrb[53].mxu0 }
0x156d   :  { %v4958_v26 = vadd.f32 %v7502_v50, %v4954_v9 }
0x156f   :  { %v7503_v31 = vmul.f32 -1.442695, %v4958_v26 }
0x1572   :  { %v5058_v2 = vpop.f32.mrb[54].mxu0 }
0x1573   :  { %v9514_v35 = vpop.eup %9513  ;;  %v5129_v42 = vadd.f32 %v5128_v41, %v5058_v2  ;;  %v8574_v49 = vpop.f32.mrb[55].mxu0  ;;  %v4427_v41 = vmul.f32 %v10636_v52, %v4425_v61  ;;  %v5427_v61 = vld [vmem:[#allocation5 + $0x48] sm:$0xff] }
0x1574   :  { %v4782_v40 = vadd.f32 1.0, %v9514_v35  ;;  %v9516_v27 = vpop.eup %9515  ;;  %v5160_v49 = vld [vmem:[#allocation8 + $0x8] sm:$0xff] }
0x1575   :  { %v5133_v54 = vadd.f32 %v7507_v39, %v5129_v42  ;;  %v4602_v10 = vadd.f32 1.0, %v9516_v27 }
0x1576   :  { %9517 = vrcp.f32 %v4782_v40  ;;  %v5161_v40 = vld [vmem:[#allocation8 + $0x10] sm:$0xff] }
0x1577   :  { %v7508_v62 = vmul.f32 -1.442695, %v5133_v54  ;;  %9519 = vpow2.f32 %v7503_v31  ;;  %v5162_v54 = vld [vmem:[#allocation8 + $0x18] sm:$0xff] }
0x1579   :  { %9521 = vpow2.f32 %v7508_v62  ;;  %v5245_v62 = vld [vmem:[#allocation7 + $0x28] sm:$0xff] }
0x157a   :  { %9523 = vrcp.f32 %v4602_v10 }
0x1580   :  { %v10655_v32 = vpop.eup %9517 }
0x1581   :  { %v4785_v55 = vmul.f32 2.0, %v10655_v32  ;;  %v9520_v3 = vpop.eup %9519  ;;  %v4787_v46 = vmul.f32 %v10655_v32, %v10550_v48 }
0x1582   :  { %v4962_v38 = vadd.f32 1.0, %v9520_v3 }
0x1583   :  { %v9522_v28 = vpop.eup %9521  ;;  %v7499_v36 = vadd.f32 -1.0, %v4785_v55 }
0x1584   :  { %v5137_v34 = vadd.f32 1.0, %v9522_v28  ;;  %v10659_v45 = vpop.eup %9523  ;;  %v5246_v28 = vld [vmem:[#allocation7 + $0x30] sm:$0xff] }
0x1585   :  { %4789 = vrot.lane.b32.xlu1 %v7499_v36, %s9726_s8  ;;  %v4605_v22 = vmul.f32 2.0, %v10659_v45  ;;  %v4607_v26 = vmul.f32 %v10659_v45, %v10535_v29  ;;  %v5244_v29 = vld [vmem:[#allocation7 + $0x20] sm:$0xff]  ;;  %v5247_v36 = vld [vmem:[#allocation7 + $0x38] sm:$0xff] }
0x1586   :  { %9525 = vrcp.f32 %v5137_v34  ;;  %v9204_v10 = vpack.c.bf16 %v5245_v62, %v5244_v29  ;;  %v9207_v34 = vpack.c.bf16 %v5247_v36, %v5246_v28  ;;  %v7513_v62 = vld [vmem:[%s11026_s3 + $0x1] sm:$0x1] }
0x1587   :  { %9527 = vrcp.f32 %v4962_v38  ;;  %v7494_v17 = vadd.f32 -1.0, %v4605_v22 }
0x1588   :  { %9205 = vmatpush3.bf16.msra.mxu1 %v9204_v10 }
0x1589   :  { %9206 = vmatprep.subr.bf16.mxu1 %v9723_v0 }
0x158c   :  { %9208 = vmatpush3.bf16.msra.mxu1 %v9207_v34 }
0x158d   :  { %v4430_v60 = vpop.permute.xlu1 %4429  ;;  %9215 = vmatprep.subr.bf16.mxu1 %v9723_v0 }
0x158e   :  { %v4432_v23 = vmul.f32 %v10636_v52, %v4430_v60 }
0x1590   :  { %v10661_v43 = vpop.eup %9525 }
0x1591   :  { %v5140_v51 = vmul.f32 2.0, %v10661_v43  ;;  %v10665_v59 = vpop.eup %9527  ;;  %v5142_v21 = vmul.f32 %v10661_v43, %v10545_v11  ;;  %v5159_v11 = vld [vmem:[#allocation8] sm:$0xff] }
0x1592   :  { %v4965_v47 = vmul.f32 2.0, %v10665_v59  ;;  %v4967_v39 = vmul.f32 %v10665_v59, %v10541_v7  ;;  %v10705_v31 = vpack.c.bf16 %v5160_v49, %v5159_v11  ;;  %v10709_v7 = vpack.c.bf16 %v5162_v54, %v5161_v40 }
0x1593   :  { %v7509_v20 = vadd.f32 -1.0, %v5140_v51 }
0x1594   :  { %v7504_v37 = vadd.f32 -1.0, %v4965_v47  ;;  %9199 = vmatpush3.bf16.msra.mxu0 %v10705_v31 }
0x1595   :  { %5144 = vrot.lane.b32.xlu0 %v7509_v20, %s9726_s8  ;;  %9200 = vmatprep.subr.bf16.mxu0 %v9723_v0 }
0x1598   :  { %9202 = vmatpush3.bf16.msra.mxu0 %v10709_v7 }
0x1599   :  { %4609 = vrot.lane.b32.xlu0 %v7494_v17, %s9726_s8  ;;  %9209 = vmatprep.subr.bf16.mxu0 %v9723_v0 }
0x159d   :  { %4969 = vrot.lane.b32.xlu0 %v7504_v37, %s9726_s8 }
0x15a1   :  { %4434 = vrot.lane.b32.xlu0 %v4432_v23, %s9727_s1 }
0x15f7   :  { %v4790_v63 = vpop.permute.xlu1 %4789 }
0x15f8   :  { %v4792_v14 = vmul.f32 %v10655_v32, %v4790_v63 }
0x15fa   :  { %4794 = vrot.lane.b32.xlu0 %v4792_v14, %s9727_s1 }
0x1607   :  { %v5145_v8 = vpop.permute.xlu0 %5144 }
0x1608   :  { %v5147_v12 = vmul.f32 %v10661_v43, %v5145_v8 }
0x160a   :  { %5149 = vrot.lane.b32.xlu1 %v5147_v12, %s9727_s1  ;;  %v5242_v12 = vld [vmem:[#allocation5 + $0x30] sm:$0xff] }
0x160b   :  { %v4610_v16 = vpop.permute.xlu0 %4609 }
0x160c   :  { %v4612_v15 = vmul.f32 %v10659_v45, %v4610_v16  ;;  %v5243_v16 = vld [vmem:[#allocation5 + $0x38] sm:$0xff] }
0x160e   :  { %4614 = vrot.lane.b32.xlu1 %v4612_v15, %s9727_s1  ;;  %v9213_v15 = vpack.c.bf16 %v5243_v16, %v5242_v12 }
0x160f   :  { %v4970_v58 = vpop.permute.xlu0 %4969 }
0x1610   :  { %v4972_v13 = vmul.f32 %v10665_v59, %v4970_v58  ;;  %v5426_v58 = vld [vmem:[#allocation5 + $0x40] sm:$0xff] }
0x1612   :  { %4974 = vrot.lane.b32.xlu1 %v4972_v13, %s9727_s1 }
0x1613   :  { %v4435_v4 = vpop.permute.xlu0 %4434 }
0x1614   :  { %v4437_v44 = vadd.f32 %v4435_v4, %v4427_v41  ;;  %v10736_v4 = vpack.c.bf16 %v5427_v61, %v5426_v58 }
0x1616   :  { %9529 = vtanh.f32 %v4437_v44  ;;  %v5428_v44 = vld [vmem:[#allocation5 + $0x50] sm:$0xff] }
0x1620   :  { %v9530_v30 = vpop.eup %9529 }
0x1621   :  { %4440 = vrot.lane.b32.xlu1 %v9530_v30, %s9726_s8  ;;  %v5429_v30 = vld [vmem:[#allocation5 + $0x58] sm:$0xff] }
0x166c   :  { %v4795_v9 = vpop.permute.xlu0 %4794 }
0x166d   :  { %v10686_v18 = vadd.f32 %v4795_v9, %v4787_v46  ;;  %v5606_v9 = vld [vmem:[#allocation5 + $0x60] sm:$0xff] }
0x166f   :  { %9531 = vtanh.f32 %v10686_v18 }
0x1679   :  { %v9532_v53 = vpop.eup %9531 }
0x167a   :  { %4800 = vrot.lane.b32.xlu1 %v9532_v53, %s9726_s8  ;;  %v5607_v53 = vld [vmem:[#allocation5 + $0x68] sm:$0xff] }
0x167c   :  { %v5150_v50 = vpop.permute.xlu1 %5149 }
0x167d   :  { %v10692_v24 = vadd.f32 %v5150_v50, %v5142_v21  ;;  %v10754_v50 = vpack.c.bf16 %v5607_v53, %v5606_v9 }
0x167f   :  { %9533 = vtanh.f32 %v10692_v24 }
0x1680   :  { %v4615_v48 = vpop.permute.xlu1 %4614 }
0x1681   :  { %v10697_v2 = vadd.f32 %v4615_v48, %v4607_v26  ;;  %v5608_v26 = vld [vmem:[#allocation5 + $0x70] sm:$0xff]  ;;  %v5609_v48 = vld [vmem:[#allocation5 + $0x78] sm:$0xff] }
0x1683   :  { %9535 = vtanh.f32 %v10697_v2 }
0x1684   :  { %v4975_v35 = vpop.permute.xlu1 %4974 }
0x1685   :  { %v10702_v42 = vadd.f32 %v4975_v35, %v4967_v39  ;;  %v10763_v39 = vpack.c.bf16 %v5609_v48, %v5608_v26 }
0x1687   :  { %9537 = vtanh.f32 %v10702_v42 }
0x1689   :  { %v9534_v27 = vpop.eup %9533 }
0x168a   :  { %5155 = vrot.lane.b32.xlu0 %v9534_v27, %s9726_s8 }
0x168d   :  { %v9536_v55 = vpop.eup %9535 }
0x168e   :  { %4620 = vrot.lane.b32.xlu0 %v9536_v55, %s9726_s8 }
0x1691   :  { %v9538_v3 = vpop.eup %9537 }
0x1692   :  { %4980 = vrot.lane.b32.xlu0 %v9538_v3, %s9726_s8 }
0x1693   :  { %v4441_v38 = vpop.permute.xlu1 %4440 }
0x1694   :  { %v4443_v20 = vmul.f32 %v10636_v52, %v4441_v38  ;;  %v5240_v52 = vld [vmem:[#allocation5 + $0x20] sm:$0xff] }
0x1696   :  { %v5324_v47 = vrot.slane %v4443_v20, 7 }
0x16ec   :  { %v4801_v60 = vpop.permute.xlu1 %4800 }
0x16ed   :  { %v4803_v63 = vmul.f32 %v10655_v32, %v4801_v60  ;;  %v5432_v32 = vld [vmem:[#allocation7 + $0x50] sm:$0xff] }
0x16fc   :  { %v5156_v51 = vpop.permute.xlu0 %5155 }
0x16fd   :  { %v5158_v22 = vmul.f32 %v10661_v43, %v5156_v51  ;;  %v5241_v43 = vld [vmem:[#allocation5 + $0x28] sm:$0xff] }
0x16fe   :  { %v9210_v8 = vpack.c.bf16 %v5241_v43, %v5240_v52 }
0x16ff   :  { %5165 = vrot.lane.b32.xlu1 %v5158_v22, %s9727_s1 }
0x1700   :  { %v4621_v17 = vpop.permute.xlu0 %4620 }
0x1701   :  { %v4623_v37 = vmul.f32 %v10659_v45, %v4621_v17  ;;  %v7518_v17 = vld [vmem:[%s11026_s3 + $0x2] sm:$0x1] }
0x1703   :  { %5325 = vrot.lane.b32.xlu1 %v5324_v47, %s9727_s1  ;;  %5249 = vrot.lane.b32.xlu0 %v4623_v37, %s9727_s1  ;;  %v7523_v37 = vld [vmem:[%s11026_s3 + $0x3] sm:$0x1] }
0x1704   :  { %v4981_v23 = vpop.permute.xlu0 %4980 }
0x1705   :  { %v4983_v14 = vmul.f32 %v10665_v59, %v4981_v23  ;;  %v5433_v59 = vld [vmem:[#allocation7 + $0x58] sm:$0xff] }
0x1706   :  { %v10734_v41 = vpack.c.bf16 %v5433_v59, %v5432_v32  ;;  %v7528_v32 = vld [vmem:[%s11026_s3 + $0x4] sm:$0x1] }
0x1707   :  { %5435 = vrot.lane.b32.xlu0 %v4803_v63, %s9727_s1  ;;  %5615 = vrot.lane.b32.xlu1 %v4983_v14, %s9727_s1 }
0x1771   :  { %v5166_v45 = vpop.permute.xlu1 %5165 }
0x1772   :  { %8595 = vmatmul.mubr.msk.f32.vlgmr.msra.gmra.mrb[56].mxu0 %vm89_vm1, %v5166_v45 }
0x1773   :  { %9211 = vmatpush3.bf16.msra.mxu0 %v9210_v8  ;;  %8616 = vmatprep.mubr.msk.f32.mxu0 %vm9724_vm0, %v9725_v1 }
0x1774   :  { %9212 = vmatprep.subr.bf16.mxu0 %v9723_v0 }
0x1775   :  { %v5250_v13 = vpop.permute.xlu0 %5249  ;;  %v5326_v46 = vpop.permute.xlu1 %5325 }
0x1776   :  { %8606 = vmatmul.mubr.msk.f32.vlgmr.msra.gmra.mrb[56].mxu1 %vm89_vm1, %v5250_v13 }
0x1777   :  { %9214 = vmatpush3.bf16.msra.mxu0 %v9213_v15  ;;  %9217 = vmatpush3.bf16.msra.mxu1 %v10429_v25  ;;  %v10745_v25 = vpack.c.bf16 %v5429_v30, %v5428_v44 }
0x1778   :  { %9221 = vmatprep.subr.bf16.mxu0 %v9723_v0  ;;  %9218 = vmatprep.subr.bf16.mxu1 %v9723_v0 }
0x1779   :  { %8627 = vmatprep.mubr.msk.f32.mxu1 %vm9724_vm0, %v9725_v1  ;;  %v5436_v21 = vpop.permute.xlu0 %5435 }
0x177a   :  { %8617 = vmatmul.mubr.msk.f32.vlgmr.msra.gmra.mrb[58].mxu0 %vm89_vm1, %v5326_v46 }
0x177b   :  { %9220 = vmatpush3.bf16.msra.mxu1 %v10734_v41  ;;  %9223 = vmatpush3.bf16.msra.mxu0 %v10736_v4 }
0x177c   :  { %9224 = vmatprep.subr.bf16.mxu0 %v9723_v0  ;;  %9227 = vmatprep.subr.bf16.mxu1 %v9723_v0 }
0x177d   :  { %8638 = vmatprep.mubr.msk.f32.mxu0 %vm9724_vm0, %v9725_v1 }
0x177e   :  { %8628 = vmatmul.mubr.msk.f32.vlgmr.msra.gmra.mrb[58].mxu1 %vm89_vm1, %v5436_v21 }
0x177f   :  { %9226 = vmatpush3.bf16.msra.mxu0 %v10745_v25  ;;  %9229 = vmatpush3.bf16.msra.mxu1 %v10447_v56  ;;  %v5616_v56 = vpop.permute.xlu1 %5615 }
0x1780   :  { %9230 = vmatprep.subr.bf16.mxu1 %v9723_v0  ;;  %9233 = vmatprep.subr.bf16.mxu0 %v9723_v0 }
0x1781   :  { %8649 = vmatprep.mubr.msk.f32.mxu1 %vm9724_vm0, %v9725_v1 }
0x1782   :  { %8639 = vmatmul.mubr.msk.f32.vlgmr.msra.gmra.mrb[60].mxu0 %vm89_vm1, %v5250_v13 }
0x1783   :  { %9232 = vmatpush3.bf16.msra.mxu1 %v10456_v6  ;;  %9235 = vmatpush3.bf16.msra.mxu0 %v10754_v50  ;;  %v5163_v6 = vld [vmem:[%s11028_s5] sm:$0x1] }
0x1784   :  { %9236 = vmatprep.subr.bf16.mxu0 %v9723_v0  ;;  %9239 = vmatprep.subr.bf16.mxu1 %v9723_v0 }
0x1785   :  { %8660 = vmatprep.mubr.msk.f32.mxu0 %vm9724_vm0, %v9725_v1 }
0x1786   :  { %8650 = vmatmul.mubr.msk.f32.vlgmr.msra.gmra.mrb[60].mxu1 %vm89_vm1, %v5616_v56 }
0x1787   :  { %9238 = vmatpush3.bf16.msra.mxu0 %v10763_v39  ;;  %9241 = vmatpush3.bf16.msra.mxu1 %v10618_v19 }
0x1788   :  { %9242 = vmatprep.subr.bf16.mxu1 %v9723_v0  ;;  %9245 = vmatprep.subr.bf16.mxu0 %v9723_v0 }
0x1789   :  { %8671 = vmatprep.mubr.msk.f32.mxu1 %vm9724_vm0, %v9725_v1 }
0x178a   :  { %8661 = vmatmul.mubr.msk.f32.vlgmr.msra.gmra.mrb[62].mxu0 %vm89_vm1, %v5436_v21 }
0x178b   :  { %9244 = vmatpush3.bf16.msra.mxu1 %v10625_v33  ;;  %9247 = vmatpush3.bf16.msra.mxu0 %v10594_v57 }
0x178c   :  { %9248 = vmatprep.subr.bf16.mxu0 %v9723_v0  ;;  %8682 = vmatprep.mubr.msk.f32.mxu0 %vm9724_vm0, %v9725_v1 }
0x178d   :  { %9251 = vmatprep.subr.bf16.mxu1 %v9723_v0 }
0x178e   :  { %8672 = vmatmul.mubr.msk.f32.vlgmr.msra.gmra.mrb[62].mxu1 %vm89_vm1, %v5166_v45 }
0x178f   :  { %9250 = vmatpush3.bf16.msra.mxu0 %v10603_v5  ;;  %9253 = vmatpush3.bf16.msra.mxu1 %v10705_v31 }
0x1790   :  { %9254 = vmatprep.subr.bf16.mxu1 %v9723_v0  ;;  %9257 = vmatprep.subr.bf16.mxu0 %v9723_v0 }
0x1791   :  { %8693 = vmatprep.mubr.msk.f32.mxu1 %vm9724_vm0, %v9725_v1 }
0x1792   :  { %8683 = vmatmul.mubr.msk.f32.vlgmr.msra.gmra.mrb[64].mxu0 %vm89_vm1, %v5616_v56 }
0x1793   :  { %9256 = vmatpush3.bf16.msra.mxu1 %v10709_v7  ;;  %8704 = vmatprep.mubr.msk.f32.mxu0 %vm9724_vm0, %v9725_v1 }
0x1794   :  { %9263 = vmatprep.subr.bf16.mxu1 %v9723_v0 }
0x1845   :  { %v5235_v35 = vpop.f32.mrb[56].mxu0 }
0x1846   :  { %v5236_v11 = vadd.f32 %v5235_v35, %v5163_v6  ;;  %v8596_v49 = vpop.f32.mrb[57].mxu0 }
0x1848   :  { %5239 = vst [vmem:[#allocation10 + $0x3] sm:$0x1] %v5236_v11 }
0x1849   :  { %v5319_v40 = vpop.f32.mrb[56].mxu1 }
0x184a   :  { %v8607_v54 = vpop.f32.mrb[57].mxu1 }
0x184d   :  { %v5395_v29 = vpop.f32.mrb[58].mxu0 }
0x184e   :  { %v5396_v27 = vadd.f32 %v5395_v29, %v5319_v40  ;;  %v8618_v10 = vpop.f32.mrb[59].mxu0 }
0x1850   :  { %v5400_v55 = vadd.f32 %v7513_v62, %v5396_v27 }
0x1851   :  { %v5505_v3 = vpop.f32.mrb[58].mxu1 }
0x1852   :  { %v7514_v28 = vmul.f32 -1.442695, %v5400_v55  ;;  %v8629_v36 = vpop.f32.mrb[59].mxu1 }
0x1854   :  { %9539 = vpow2.f32 %v7514_v28 }
0x1855   :  { %v5575_v34 = vpop.f32.mrb[60].mxu0 }
0x1856   :  { %v5576_v38 = vadd.f32 %v5575_v34, %v5505_v3  ;;  %v8640_v51 = vpop.f32.mrb[61].mxu0 }
0x1858   :  { %v5580_v52 = vadd.f32 %v7518_v17, %v5576_v38 }
0x1859   :  { %v5685_v20 = vpop.f32.mrb[60].mxu1 }
0x185a   :  { %v8651_v22 = vpop.f32.mrb[61].mxu1  ;;  %v7519_v45 = vmul.f32 -1.442695, %v5580_v52 }
0x185d   :  { %v5755_v47 = vpop.f32.mrb[62].mxu0 }
0x185e   :  { %v9540_v60 = vpop.eup %9539  ;;  %v5756_v23 = vadd.f32 %v5755_v47, %v5685_v20  ;;  %v8662_v63 = vpop.f32.mrb[63].mxu0 }
0x185f   :  { %v5404_v14 = vadd.f32 1.0, %v9540_v60 }
0x1860   :  { %v5760_v43 = vadd.f32 %v7523_v37, %v5756_v23 }
0x1861   :  { %9541 = vrcp.f32 %v5404_v14  ;;  %v5860_v8 = vpop.f32.mrb[62].mxu1 }
0x1862   :  { %v7524_v12 = vmul.f32 -1.442695, %v5760_v43  ;;  %v8673_v16 = vpop.f32.mrb[63].mxu1 }
0x1863   :  { %v6047_v16 = vld [vmem:[#allocation7 + $0x48] sm:$0xff] }
0x1864   :  { %9543 = vpow2.f32 %v7524_v12 }
0x1865   :  { %v5930_v15 = vpop.f32.mrb[64].mxu0  ;;  %9545 = vpow2.f32 %v7519_v45 }
0x1866   :  { %v5931_v59 = vadd.f32 %v5930_v15, %v5860_v8  ;;  %v8684_v58 = vpop.f32.mrb[65].mxu0 }
0x1868   :  { %v5935_v61 = vadd.f32 %v7528_v32, %v5931_v59 }
0x186a   :  { %v7529_v13 = vmul.f32 -1.442695, %v5935_v61 }
0x186b   :  { %v10810_v44 = vpop.eup %9541 }
0x186c   :  { %9547 = vpow2.f32 %v7529_v13  ;;  %v5407_v30 = vmul.f32 2.0, %v10810_v44  ;;  %v5409_v20 = vmul.f32 %v10810_v44, %v10697_v2 }
0x186e   :  { %v9544_v46 = vpop.eup %9543  ;;  %v7515_v9 = vadd.f32 -1.0, %v5407_v30 }
0x186f   :  { %v5764_v53 = vadd.f32 1.0, %v9544_v46  ;;  %v9546_v21 = vpop.eup %9545 }
0x1870   :  { %5411 = vrot.lane.b32.xlu1 %v7515_v9, %s9726_s8  ;;  %v5584_v26 = vadd.f32 1.0, %v9546_v21  ;;  %v6232_v9 = vld [vmem:[#allocation7 + $0x68] sm:$0xff] }
0x1871   :  { %9549 = vrcp.f32 %v5764_v53 }
0x1872   :  { %9551 = vrcp.f32 %v5584_v26  ;;  %v6234_v26 = vld [vmem:[#allocation7 + $0x78] sm:$0xff] }
0x1876   :  { %v9548_v48 = vpop.eup %9547 }
0x1877   :  { %v5939_v56 = vadd.f32 1.0, %v9548_v48 }
0x1879   :  { %9553 = vrcp.f32 %v5939_v56 }
0x187b   :  { %v10814_v6 = vpop.eup %9549 }
0x187c   :  { %v5767_v35 = vmul.f32 2.0, %v10814_v6  ;;  %v9552_v49 = vpop.eup %9551  ;;  %v5769_v37 = vmul.f32 %v10814_v6, %v10702_v42  ;;  %v6046_v42 = vld [vmem:[#allocation7 + $0x40] sm:$0xff] }
0x187d   :  { %v5587_v62 = vmul.f32 2.0, %v9552_v49  ;;  %v5589_v2 = vmul.f32 %v9552_v49, %v10686_v18  ;;  %v9258_v45 = vpack.c.bf16 %v6047_v16, %v6046_v42 }
0x187e   :  { %v7525_v11 = vadd.f32 -1.0, %v5767_v35 }
0x187f   :  { %v7520_v27 = vadd.f32 -1.0, %v5587_v62  ;;  %9259 = vmatpush3.bf16.msra.mxu0 %v9258_v45 }
0x1880   :  { %5771 = vrot.lane.b32.xlu1 %v7525_v11, %s9726_s8  ;;  %9260 = vmatprep.subr.bf16.mxu0 %v9723_v0 }
0x1883   :  { %v9554_v40 = vpop.eup %9553  ;;  %9262 = vmatpush3.bf16.msra.mxu0 %v10734_v41  ;;  %v6231_v41 = vld [vmem:[#allocation7 + $0x60] sm:$0xff] }
0x1884   :  { %v5942_v54 = vmul.f32 2.0, %v9554_v40  ;;  %v5944_v63 = vmul.f32 %v9554_v40, %v10692_v24  ;;  %9269 = vmatprep.subr.bf16.mxu0 %v9723_v0  ;;  %v9270_v21 = vpack.c.bf16 %v6232_v9, %v6231_v41 }
0x1886   :  { %v7530_v29 = vadd.f32 -1.0, %v5942_v54 }
0x1888   :  { %5946 = vrot.lane.b32.xlu0 %v7530_v29, %s9726_s8 }
0x188c   :  { %5591 = vrot.lane.b32.xlu0 %v7520_v27, %s9726_s8 }
0x18e2   :  { %v5412_v10 = vpop.permute.xlu1 %5411 }
0x18e3   :  { %v5414_v55 = vmul.f32 %v10810_v44, %v5412_v10 }
0x18e5   :  { %5416 = vrot.lane.b32.xlu1 %v5414_v55, %s9727_s1 }
0x18f2   :  { %v5772_v3 = vpop.permute.xlu1 %5771 }
0x18f3   :  { %v5774_v28 = vmul.f32 %v10814_v6, %v5772_v3  ;;  %v7539_v3 = vld [vmem:[%s11026_s3 + $0x3] sm:$0x1] }
0x18f5   :  { %5776 = vrot.lane.b32.xlu1 %v5774_v28, %s9727_s1 }
0x18fa   :  { %v5947_v36 = vpop.permute.xlu0 %5946 }
0x18fb   :  { %v5949_v34 = vmul.f32 %v9554_v40, %v5947_v36 }
0x18fd   :  { %5951 = vrot.lane.b32.xlu0 %v5949_v34, %s9727_s1 }
0x18fe   :  { %v5592_v38 = vpop.permute.xlu0 %5591 }
0x18ff   :  { %v5594_v51 = vmul.f32 %v9552_v49, %v5592_v38 }
0x1901   :  { %5596 = vrot.lane.b32.xlu0 %v5594_v51, %s9727_s1 }
0x1957   :  { %v5417_v22 = vpop.permute.xlu1 %5416 }
0x1958   :  { %v5419_v17 = vadd.f32 %v5417_v22, %v5409_v20 }
0x195a   :  { %9555 = vtanh.f32 %v5419_v17  ;;  %v7544_v17 = vld [vmem:[%s11026_s3 + $0x4] sm:$0x1] }
0x1964   :  { %v9556_v47 = vpop.eup %9555 }
0x1965   :  { %5422 = vrot.lane.b32.xlu1 %v9556_v47, %s9726_s8 }
0x1967   :  { %v5777_v60 = vpop.permute.xlu1 %5776 }
0x1968   :  { %v10831_v23 = vadd.f32 %v5777_v60, %v5769_v37 }
0x196a   :  { %9557 = vtanh.f32 %v10831_v23 }
0x196f   :  { %v5952_v14 = vpop.permute.xlu0 %5951 }
0x1970   :  { %v10835_v52 = vadd.f32 %v5952_v14, %v5944_v63 }
0x1972   :  { %9559 = vtanh.f32 %v10835_v52 }
0x1973   :  { %v5597_v43 = vpop.permute.xlu0 %5596 }
0x1974   :  { %v9558_v8 = vpop.eup %9557  ;;  %v10839_v12 = vadd.f32 %v5597_v43, %v5589_v2 }
0x1975   :  { %5782 = vrot.lane.b32.xlu1 %v9558_v8, %s9726_s8 }
0x1976   :  { %9561 = vtanh.f32 %v10839_v12 }
0x197c   :  { %v9560_v15 = vpop.eup %9559 }
0x197d   :  { %5957 = vrot.lane.b32.xlu0 %v9560_v15, %s9726_s8 }
0x1980   :  { %v9562_v24 = vpop.eup %9561 }
0x1981   :  { %5602 = vrot.lane.b32.xlu0 %v9562_v24, %s9726_s8 }
0x19d7   :  { %v5423_v59 = vpop.permute.xlu1 %5422 }
0x19d8   :  { %v5425_v61 = vmul.f32 %v10810_v44, %v5423_v59  ;;  %v6233_v44 = vld [vmem:[#allocation7 + $0x70] sm:$0xff] }
0x19d9   :  { %v9273_v56 = vpack.c.bf16 %v6234_v26, %v6233_v44 }
0x19e7   :  { %v5783_v30 = vpop.permute.xlu1 %5782 }
0x19e8   :  { %v5785_v46 = vmul.f32 %v10814_v6, %v5783_v30 }
0x19ef   :  { %v5958_v18 = vpop.permute.xlu0 %5957 }
0x19f0   :  { %v5960_v32 = vmul.f32 %v9554_v40, %v5958_v18 }
0x19f2   :  { %5967 = vrot.lane.b32.xlu0 %v5960_v32, %s9727_s1 }
0x19f3   :  { %v5603_v58 = vpop.permute.xlu0 %5602 }
0x19f4   :  { %v5605_v13 = vmul.f32 %v9552_v49, %v5603_v58  ;;  %v7534_v49 = vld [vmem:[%s11026_s3 + $0x2] sm:$0x1] }
0x19f6   :  { %6126 = vrot.lane.b32.xlu0 %v5425_v61, %s9727_s1  ;;  %6051 = vrot.lane.b32.xlu1 %v5605_v13, %s9727_s1 }
0x19fa   :  { %6236 = vrot.lane.b32.xlu1 %v5785_v46, %s9727_s1 }
0x1a64   :  { %v5968_v53 = vpop.permute.xlu0 %5967 }
0x1a65   :  { %8694 = vmatmul.mubr.msk.f32.vlgmr.msra.gmra.mrb[64].mxu1 %vm89_vm1, %v5968_v53 }
0x1a66   :  { %9265 = vmatpush3.bf16.msra.mxu1 %v10736_v4  ;;  %8715 = vmatprep.mubr.msk.f32.mxu1 %vm9724_vm0, %v9725_v1 }
0x1a67   :  { %9266 = vmatprep.subr.bf16.mxu1 %v9723_v0 }
0x1a68   :  { %v6052_v48 = vpop.permute.xlu1 %6051  ;;  %v6127_v4 = vpop.permute.xlu0 %6126 }
0x1a69   :  { %8705 = vmatmul.mubr.msk.f32.vlgmr.msra.gmra.mrb[66].mxu0 %vm89_vm1, %v6052_v48 }
0x1a6a   :  { %9268 = vmatpush3.bf16.msra.mxu1 %v10745_v25  ;;  %9271 = vmatpush3.bf16.msra.mxu0 %v9270_v21 }
0x1a6b   :  { %9272 = vmatprep.subr.bf16.mxu0 %v9723_v0  ;;  %9275 = vmatprep.subr.bf16.mxu1 %v9723_v0 }
0x1a6c   :  { %8726 = vmatprep.mubr.msk.f32.mxu0 %vm9724_vm0, %v9725_v1  ;;  %v6237_v25 = vpop.permute.xlu1 %6236 }
0x1a6d   :  { %8716 = vmatmul.mubr.msk.f32.vlgmr.msra.gmra.mrb[66].mxu1 %vm89_vm1, %v6127_v4 }
0x1a6e   :  { %9274 = vmatpush3.bf16.msra.mxu0 %v9273_v56  ;;  %9277 = vmatpush3.bf16.msra.mxu1 %v10754_v50 }
0x1a6f   :  { %9278 = vmatprep.subr.bf16.mxu1 %v9723_v0  ;;  %9281 = vmatprep.subr.bf16.mxu0 %v9723_v0 }
0x1a70   :  { %8737 = vmatprep.mubr.msk.f32.mxu1 %vm9724_vm0, %v9725_v1 }
0x1a71   :  { %8727 = vmatmul.mubr.msk.f32.vlgmr.msra.gmra.mrb[68].mxu0 %vm89_vm1, %v6237_v25 }
0x1a72   :  { %9280 = vmatpush3.bf16.msra.mxu1 %v10763_v39  ;;  %9283 = vmatpush3.bf16.msra.mxu0 %v10618_v19 }
0x1a73   :  { %9284 = vmatprep.subr.bf16.mxu0 %v9723_v0  ;;  %9287 = vmatprep.subr.bf16.mxu1 %v9723_v0 }
0x1a74   :  { %8748 = vmatprep.mubr.msk.f32.mxu0 %vm9724_vm0, %v9725_v1 }
0x1a75   :  { %8738 = vmatmul.mubr.msk.f32.vlgmr.msra.gmra.mrb[68].mxu1 %vm89_vm1, %v6052_v48 }
0x1a76   :  { %9286 = vmatpush3.bf16.msra.mxu0 %v10625_v33  ;;  %9289 = vmatpush3.bf16.msra.mxu1 %v10594_v57  ;;  %v5965_v57 = vld [vmem:[%s11028_s5] sm:$0x1] }
0x1a77   :  { %9290 = vmatprep.subr.bf16.mxu1 %v9723_v0  ;;  %8759 = vmatprep.mubr.msk.f32.mxu1 %vm9724_vm0, %v9725_v1 }
0x1a78   :  { %9293 = vmatprep.subr.bf16.mxu0 %v9723_v0 }
0x1a79   :  { %8749 = vmatmul.mubr.msk.f32.vlgmr.msra.gmra.mrb[70].mxu0 %vm89_vm1, %v5968_v53 }
0x1a7a   :  { %9292 = vmatpush3.bf16.msra.mxu1 %v10603_v5  ;;  %9295 = vmatpush3.bf16.msra.mxu0 %v10705_v31 }
0x1a7b   :  { %9296 = vmatprep.subr.bf16.mxu0 %v9723_v0  ;;  %9299 = vmatprep.subr.bf16.mxu1 %v9723_v0 }
0x1a7c   :  { %8770 = vmatprep.mubr.msk.f32.mxu0 %vm9724_vm0, %v9725_v1 }
0x1a7d   :  { %8760 = vmatmul.mubr.msk.f32.vlgmr.msra.gmra.mrb[70].mxu1 %vm89_vm1, %v6237_v25 }
0x1a7e   :  { %9298 = vmatpush3.bf16.msra.mxu0 %v10709_v7  ;;  %9301 = vmatpush3.bf16.msra.mxu1 %v9270_v21 }
0x1a7f   :  { %9302 = vmatprep.subr.bf16.mxu1 %v9723_v0  ;;  %9305 = vmatprep.subr.bf16.mxu0 %v9723_v0 }
0x1a80   :  { %8781 = vmatprep.mubr.msk.f32.mxu1 %vm9724_vm0, %v9725_v1 }
0x1a82   :  { %9304 = vmatpush3.bf16.msra.mxu1 %v9273_v56 }
0x1a83   :  { %9311 = vmatprep.subr.bf16.mxu1 %v9723_v0 }
0x1b38   :  { %v6037_v5 = vpop.f32.mrb[64].mxu1 }
0x1b39   :  { %v6038_v19 = vadd.f32 %v6037_v5, %v5965_v57  ;;  %v8695_v33 = vpop.f32.mrb[65].mxu1 }
0x1b3b   :  { %6041 = vst [vmem:[#allocation10 + $0x4] sm:$0x1] %v6038_v19 }
0x1b3c   :  { %v6121_v6 = vpop.f32.mrb[66].mxu0 }
0x1b3d   :  { %v8706_v35 = vpop.f32.mrb[67].mxu0 }
0x1b40   :  { %v6196_v11 = vpop.f32.mrb[66].mxu1 }
0x1b41   :  { %v6197_v40 = vadd.f32 %v6196_v11, %v6121_v6  ;;  %v8717_v54 = vpop.f32.mrb[67].mxu1 }
0x1b43   :  { %v6201_v29 = vadd.f32 %v7534_v49, %v6197_v40 }
0x1b44   :  { %v6306_v62 = vpop.f32.mrb[68].mxu0 }
0x1b45   :  { %v7535_v27 = vmul.f32 -1.442695, %v6201_v29  ;;  %v8728_v10 = vpop.f32.mrb[69].mxu0  ;;  %v6853_v29 = vld [vmem:[#allocation7 + $0x88] sm:$0xff] }
0x1b46   :  { %v6854_v10 = vld [vmem:[#allocation7 + $0x90] sm:$0xff] }
0x1b47   :  { %9563 = vpow2.f32 %v7535_v27 }
0x1b48   :  { %v6376_v55 = vpop.f32.mrb[68].mxu1 }
0x1b49   :  { %v6377_v28 = vadd.f32 %v6376_v55, %v6306_v62  ;;  %v8739_v36 = vpop.f32.mrb[69].mxu1  ;;  %v6855_v55 = vld [vmem:[#allocation7 + $0x98] sm:$0xff] }
0x1b4b   :  { %v6381_v34 = vadd.f32 %v7539_v3, %v6377_v28  ;;  %v6848_v3 = vld [vmem:[#allocation5 + $0x80] sm:$0xff]  ;;  %v6849_v28 = vld [vmem:[#allocation5 + $0x88] sm:$0xff] }
0x1b4c   :  { %v6481_v38 = vpop.f32.mrb[70].mxu0 }
0x1b4d   :  { %v8750_v51 = vpop.f32.mrb[71].mxu0  ;;  %v7540_v20 = vmul.f32 -1.442695, %v6381_v34  ;;  %v9315_v34 = vpack.c.bf16 %v6855_v55, %v6854_v10 }
0x1b4e   :  { %v6851_v51 = vld [vmem:[#allocation5 + $0x98] sm:$0xff] }
0x1b4f   :  { %9565 = vpow2.f32 %v7540_v20 }
0x1b50   :  { %v6551_v22 = vpop.f32.mrb[70].mxu1 }
0x1b51   :  { %v9564_v47 = vpop.eup %9563  ;;  %v6552_v37 = vadd.f32 %v6551_v22, %v6481_v38  ;;  %v8761_v60 = vpop.f32.mrb[71].mxu1  ;;  %v10939_v38 = vpack.c.bf16 %v6849_v28, %v6848_v3 }
0x1b52   :  { %v6205_v63 = vadd.f32 1.0, %v9564_v47 }
0x1b53   :  { %v6556_v14 = vadd.f32 %v7544_v17, %v6552_v37 }
0x1b54   :  { %9567 = vrcp.f32 %v6205_v63  ;;  %v7550_v63 = vld [vmem:[%s11026_s3 + $0x3] sm:$0x1] }
0x1b55   :  { %v7545_v2 = vmul.f32 -1.442695, %v6556_v14 }
0x1b57   :  { %9569 = vpow2.f32 %v7545_v2 }
0x1b59   :  { %v9566_v43 = vpop.eup %9565 }
0x1b5a   :  { %v6385_v42 = vadd.f32 1.0, %v9566_v43 }
0x1b5c   :  { %9571 = vrcp.f32 %v6385_v42 }
0x1b5e   :  { %v9568_v8 = vpop.eup %9567 }
0x1b5f   :  { %v6208_v16 = vmul.f32 2.0, %v9568_v8  ;;  %v6210_v44 = vmul.f32 %v9568_v8, %v10839_v12 }
0x1b61   :  { %v9570_v45 = vpop.eup %9569  ;;  %v7536_v15 = vadd.f32 -1.0, %v6208_v16 }
0x1b62   :  { %v6560_v24 = vadd.f32 1.0, %v9570_v45 }
0x1b63   :  { %6212 = vrot.lane.b32.xlu1 %v7536_v15, %s9726_s8  ;;  %v7555_v15 = vld [vmem:[%s11026_s3 + $0x4] sm:$0x1] }
0x1b64   :  { %9573 = vrcp.f32 %v6560_v24 }
0x1b66   :  { %v9572_v18 = vpop.eup %9571 }
0x1b67   :  { %v6388_v61 = vmul.f32 2.0, %v9572_v18  ;;  %v6390_v5 = vmul.f32 %v9572_v18, %v10831_v23  ;;  %v6852_v23 = vld [vmem:[#allocation7 + $0x80] sm:$0xff] }
0x1b68   :  { %v9312_v27 = vpack.c.bf16 %v6853_v29, %v6852_v23  ;;  %v7027_v29 = vld [vmem:[%s11028_s5] sm:$0x1] }
0x1b69   :  { %v7541_v13 = vadd.f32 -1.0, %v6388_v61 }
0x1b6e   :  { %v9574_v32 = vpop.eup %9573 }
0x1b6f   :  { %v6563_v59 = vmul.f32 2.0, %v9574_v32  ;;  %v6565_v4 = vmul.f32 %v9574_v32, %v10835_v52 }
0x1b71   :  { %v7546_v58 = vadd.f32 -1.0, %v6563_v59 }
0x1b73   :  { %6567 = vrot.lane.b32.xlu0 %v7546_v58, %s9726_s8 }
0x1b77   :  { %6392 = vrot.lane.b32.xlu0 %v7541_v13, %s9726_s8 }
0x1bd5   :  { %v6213_v30 = vpop.permute.xlu1 %6212 }
0x1bd6   :  { %v6215_v46 = vmul.f32 %v9568_v8, %v6213_v30 }
0x1bd8   :  { %6217 = vrot.lane.b32.xlu0 %v6215_v46, %s9727_s1 }
0x1be5   :  { %v6568_v41 = vpop.permute.xlu0 %6567 }
0x1be6   :  { %v6570_v9 = vmul.f32 %v9574_v32, %v6568_v41 }
0x1be8   :  { %6572 = vrot.lane.b32.xlu1 %v6570_v9, %s9727_s1 }
0x1be9   :  { %v6393_v53 = vpop.permute.xlu0 %6392 }
0x1bea   :  { %v6395_v21 = vmul.f32 %v9572_v18, %v6393_v53 }
0x1bec   :  { %6397 = vrot.lane.b32.xlu1 %v6395_v21, %s9727_s1 }
0x1c4a   :  { %v6218_v26 = vpop.permute.xlu0 %6217 }
0x1c4b   :  { %v6220_v48 = vadd.f32 %v6218_v26, %v6210_v44 }
0x1c4d   :  { %9575 = vtanh.f32 %v6220_v48 }
0x1c57   :  { %v9576_v56 = vpop.eup %9575 }
0x1c58   :  { %6223 = vrot.lane.b32.xlu1 %v9576_v56, %s9726_s8 }
0x1c5a   :  { %v6573_v25 = vpop.permute.xlu1 %6572 }
0x1c5b   :  { %v10920_v57 = vadd.f32 %v6573_v25, %v6565_v4 }
0x1c5d   :  { %9577 = vtanh.f32 %v10920_v57 }
0x1c5e   :  { %v6398_v19 = vpop.permute.xlu1 %6397 }
0x1c5f   :  { %v10924_v33 = vadd.f32 %v6398_v19, %v6390_v5 }
0x1c61   :  { %9579 = vtanh.f32 %v10924_v33 }
0x1c67   :  { %v9578_v12 = vpop.eup %9577 }
0x1c68   :  { %6578 = vrot.lane.b32.xlu0 %v9578_v12, %s9726_s8 }
0x1c6b   :  { %v9580_v6 = vpop.eup %9579 }
0x1c6c   :  { %6403 = vrot.lane.b32.xlu0 %v9580_v6, %s9726_s8 }
0x1cca   :  { %v6224_v11 = vpop.permute.xlu1 %6223 }
0x1ccb   :  { %v6226_v40 = vmul.f32 %v9568_v8, %v6224_v11 }
0x1cda   :  { %v6579_v35 = vpop.permute.xlu0 %6578 }
0x1cdb   :  { %v6581_v52 = vmul.f32 %v9574_v32, %v6579_v35 }
0x1cdd   :  { %6588 = vrot.lane.b32.xlu1 %v6581_v52, %s9727_s1 }
0x1cde   :  { %v6404_v49 = vpop.permute.xlu0 %6403 }
0x1cdf   :  { %v6406_v54 = vmul.f32 %v9572_v18, %v6404_v49 }
0x1ce1   :  { %6747 = vrot.lane.b32.xlu1 %v6226_v40, %s9727_s1  ;;  %6672 = vrot.lane.b32.xlu0 %v6406_v54, %s9727_s1 }
0x1d4f   :  { %v6589_v62 = vpop.permute.xlu1 %6588 }
0x1d50   :  { %8771 = vmatmul.mubr.msk.f32.vlgmr.msra.gmra.mrb[72].mxu0 %vm89_vm1, %v6589_v62 }
0x1d51   :  { %9307 = vmatpush3.bf16.msra.mxu0 %v10754_v50  ;;  %8792 = vmatprep.mubr.msk.f32.mxu0 %vm9724_vm0, %v9725_v1  ;;  %v6850_v50 = vld [vmem:[#allocation5 + $0x90] sm:$0xff] }
0x1d52   :  { %9308 = vmatprep.subr.bf16.mxu0 %v9723_v0 }
0x1d53   :  { %v6673_v36 = vpop.permute.xlu0 %6672  ;;  %v6748_v20 = vpop.permute.xlu1 %6747 }
0x1d54   :  { %8782 = vmatmul.mubr.msk.f32.vlgmr.msra.gmra.mrb[72].mxu1 %vm89_vm1, %v6673_v36 }
0x1d55   :  { %9310 = vmatpush3.bf16.msra.mxu0 %v10763_v39  ;;  %9313 = vmatpush3.bf16.msra.mxu1 %v9312_v27  ;;  %v10947_v39 = vpack.c.bf16 %v6851_v51, %v6850_v50 }
0x1d56   :  { %9314 = vmatprep.subr.bf16.mxu1 %v9723_v0  ;;  %9317 = vmatprep.subr.bf16.mxu0 %v9723_v0 }
0x1d57   :  { %8803 = vmatprep.mubr.msk.f32.mxu1 %vm9724_vm0, %v9725_v1 }
0x1d58   :  { %8793 = vmatmul.mubr.msk.f32.vlgmr.msra.gmra.mrb[74].mxu0 %vm89_vm1, %v6748_v20 }
0x1d59   :  { %9316 = vmatpush3.bf16.msra.mxu1 %v9315_v34  ;;  %9319 = vmatpush3.bf16.msra.mxu0 %v10939_v38 }
0x1d5a   :  { %9320 = vmatprep.subr.bf16.mxu0 %v9723_v0  ;;  %8814 = vmatprep.mubr.msk.f32.mxu0 %vm9724_vm0, %v9725_v1 }
0x1d5b   :  { %9323 = vmatprep.subr.bf16.mxu1 %v9723_v0 }
0x1d5c   :  { %8804 = vmatmul.mubr.msk.f32.vlgmr.msra.gmra.mrb[74].mxu1 %vm89_vm1, %v6589_v62 }
0x1d5d   :  { %9322 = vmatpush3.bf16.msra.mxu0 %v10947_v39  ;;  %9325 = vmatpush3.bf16.msra.mxu1 %v10705_v31  ;;  %v6586_v31 = vld [vmem:[%s11028_s5] sm:$0x1] }
0x1d5e   :  { %9329 = vmatprep.subr.bf16.mxu0 %v9723_v0  ;;  %9326 = vmatprep.subr.bf16.mxu1 %v9723_v0 }
0x1d5f   :  { %8825 = vmatprep.mubr.msk.f32.mxu1 %vm9724_vm0, %v9725_v1 }
0x1d60   :  { %8815 = vmatmul.mubr.msk.f32.vlgmr.msra.gmra.mrb[76].mxu0 %vm89_vm1, %v6673_v36 }
0x1d61   :  { %9331 = vmatpush3.bf16.msra.mxu0 %v9312_v27  ;;  %9328 = vmatpush3.bf16.msra.mxu1 %v10709_v7 }
0x1d62   :  { %9332 = vmatprep.subr.bf16.mxu0 %v9723_v0  ;;  %8836 = vmatprep.mubr.msk.f32.mxu0 %vm9724_vm0, %v9725_v1 }
0x1d63   :  { %9335 = vmatprep.subr.bf16.mxu1 %v9723_v0 }
0x1d65   :  { %9334 = vmatpush3.bf16.msra.mxu0 %v9315_v34 }
0x1d66   :  { %9341 = vmatprep.subr.bf16.mxu0 %v9723_v0 }
0x1e23   :  { %v6658_v22 = vpop.f32.mrb[72].mxu0 }
0x1e24   :  { %v6659_v17 = vadd.f32 %v6658_v22, %v6586_v31  ;;  %v8772_v47 = vpop.f32.mrb[73].mxu0 }
0x1e26   :  { %6662 = vst [vmem:[#allocation10 + $0x5] sm:$0x1] %v6659_v17 }
0x1e27   :  { %v6742_v37 = vpop.f32.mrb[72].mxu1 }
0x1e28   :  { %v8783_v7 = vpop.f32.mrb[73].mxu1 }
0x1e2b   :  { %v6817_v60 = vpop.f32.mrb[74].mxu0 }
0x1e2c   :  { %v6818_v14 = vadd.f32 %v6817_v60, %v6742_v37  ;;  %v8794_v2 = vpop.f32.mrb[75].mxu0 }
0x1e2d   :  { %v7286_v2 = vld [vmem:[#allocation8 + $0x10] sm:$0xff] }
0x1e2e   :  { %v6822_v43 = vadd.f32 %v7550_v63, %v6818_v14  ;;  %v7284_v63 = vld [vmem:[#allocation8] sm:$0xff]  ;;  %v7285_v14 = vld [vmem:[#allocation8 + $0x8] sm:$0xff] }
0x1e2f   :  { %v6922_v8 = vpop.f32.mrb[74].mxu1 }
0x1e30   :  { %v7551_v42 = vmul.f32 -1.442695, %v6822_v43  ;;  %v8805_v16 = vpop.f32.mrb[75].mxu1  ;;  %v9342_v43 = vpack.c.bf16 %v7285_v14, %v7284_v63 }
0x1e32   :  { %9581 = vpow2.f32 %v7551_v42 }
0x1e33   :  { %v6992_v45 = vpop.f32.mrb[76].mxu0 }
0x1e34   :  { %v6993_v24 = vadd.f32 %v6992_v45, %v6922_v8  ;;  %v8816_v18 = vpop.f32.mrb[77].mxu0  ;;  %v7287_v8 = vld [vmem:[#allocation8 + $0x18] sm:$0xff] }
0x1e35   :  { %v9345_v42 = vpack.c.bf16 %v7287_v8, %v7286_v2  ;;  %v7288_v18 = vld [vmem:[%s11028_s5] sm:$0x1] }
0x1e36   :  { %v6997_v32 = vadd.f32 %v7555_v15, %v6993_v24 }
0x1e38   :  { %v7556_v59 = vmul.f32 -1.442695, %v6997_v32 }
0x1e3a   :  { %9583 = vpow2.f32 %v7556_v59 }
0x1e3c   :  { %v9582_v58 = vpop.eup %9581 }
0x1e3d   :  { %v6826_v61 = vadd.f32 1.0, %v9582_v58 }
0x1e3f   :  { %9585 = vrcp.f32 %v6826_v61 }
0x1e44   :  { %v9584_v13 = vpop.eup %9583 }
0x1e45   :  { %v7001_v30 = vadd.f32 1.0, %v9584_v13 }
0x1e47   :  { %9587 = vrcp.f32 %v7001_v30 }
0x1e49   :  { %v9586_v46 = vpop.eup %9585 }
0x1e4a   :  { %v6829_v41 = vmul.f32 2.0, %v9586_v46  ;;  %v6831_v25 = vmul.f32 %v9586_v46, %v10924_v33 }
0x1e4c   :  { %v7552_v9 = vadd.f32 -1.0, %v6829_v41 }
0x1e4e   :  { %6833 = vrot.lane.b32.xlu1 %v7552_v9, %s9726_s8 }
0x1e51   :  { %v9588_v53 = vpop.eup %9587 }
0x1e52   :  { %v7004_v21 = vmul.f32 2.0, %v9588_v53  ;;  %v7006_v12 = vmul.f32 %v9588_v53, %v10920_v57 }
0x1e54   :  { %v7557_v44 = vadd.f32 -1.0, %v7004_v21 }
0x1e56   :  { %7008 = vrot.lane.b32.xlu0 %v7557_v44, %s9726_s8 }
0x1ec0   :  { %v6834_v26 = vpop.permute.xlu1 %6833 }
0x1ec1   :  { %v6836_v48 = vmul.f32 %v9586_v46, %v6834_v26 }
0x1ec3   :  { %6838 = vrot.lane.b32.xlu1 %v6836_v48, %s9727_s1 }
0x1ec8   :  { %v7009_v56 = vpop.permute.xlu0 %7008 }
0x1ec9   :  { %v7011_v4 = vmul.f32 %v9588_v53, %v7009_v56 }
0x1ecb   :  { %7013 = vrot.lane.b32.xlu0 %v7011_v4, %s9727_s1 }
0x1f35   :  { %v6839_v5 = vpop.permute.xlu1 %6838 }
0x1f36   :  { %v6841_v19 = vadd.f32 %v6839_v5, %v6831_v25 }
0x1f38   :  { %9589 = vtanh.f32 %v6841_v19 }
0x1f3d   :  { %v7014_v6 = vpop.permute.xlu0 %7013 }
0x1f3e   :  { %v7016_v35 = vadd.f32 %v7014_v6, %v7006_v12 }
0x1f40   :  { %9591 = vtanh.f32 %v7016_v35 }
0x1f42   :  { %v9590_v52 = vpop.eup %9589 }
0x1f43   :  { %6844 = vrot.lane.b32.xlu1 %v9590_v52, %s9726_s8 }
0x1f4a   :  { %v9592_v11 = vpop.eup %9591 }
0x1f4b   :  { %7019 = vrot.lane.b32.xlu0 %v9592_v11, %s9726_s8 }
0x1fb5   :  { %v6845_v49 = vpop.permute.xlu1 %6844 }
0x1fb6   :  { %v6847_v40 = vmul.f32 %v9586_v46, %v6845_v49 }
0x1fb8   :  { %7183 = vrot.lane.b32.xlu1 %v6847_v40, %s9727_s1 }
0x1fbd   :  { %v7020_v54 = vpop.permute.xlu0 %7019 }
0x1fbe   :  { %v7022_v33 = vmul.f32 %v9588_v53, %v7020_v54 }
0x1fc0   :  { %7029 = vrot.lane.b32.xlu0 %v7022_v33, %s9727_s1 }
0x202a   :  { %v7184_v57 = vpop.permute.xlu1 %7183 }
0x2032   :  { %v7030_v23 = vpop.permute.xlu0 %7029 }
0x2033   :  { %8826 = vmatmul.mubr.msk.f32.vlgmr.msra.gmra.mrb[76].mxu1 %vm89_vm1, %v7030_v23  ;;  %8837 = vmatmul.mubr.msk.f32.vlgmr.msra.gmra.mrb[78].mxu0 %vm89_vm1, %v7030_v23 }
0x2034   :  { %9337 = vmatpush3.bf16.msra.mxu1 %v10939_v38  ;;  %8847 = vmatprep.mubr.msk.f32.mxu1 %vm9724_vm0, %v9725_v1 }
0x2035   :  { %9338 = vmatprep.subr.bf16.mxu1 %v9723_v0  ;;  %8858 = vmatprep.mubr.msk.f32.mxu0 %vm9724_vm0, %v9725_v1  ;;  %v7561_v1 = vld [vmem:[%s11026_s3 + $0x4] sm:$0x1] }
0x2036   :  { %9343 = vmatpush3.bf16.msra.mxu0 %v9342_v43 }
0x2037   :  { %9344 = vmatprep.subr.bf16.mxu0 %v9723_v0 }
0x2038   :  { %9340 = vmatpush3.bf16.msra.mxu1 %v10947_v39 }
0x203a   :  { %9346 = vmatpush3.bf16.msra.mxu0 %v9345_v42 }
0x203b   :  { %8848 = vmatmul.mubr.msk.f32.vlgmr.msra.gmra.mrb[78].mxu1 %vm89_vm1, %v7184_v57 }
0x2106   :  { %v7099_v62 = vpop.f32.mrb[76].mxu1  ;;  %v7178_v27 = vpop.f32.mrb[78].mxu0 }
0x2107   :  { %v7100_v10 = vadd.f32 %v7099_v62, %v7027_v29  ;;  %v8827_v55 = vpop.f32.mrb[77].mxu1  ;;  %v8838_v3 = vpop.f32.mrb[79].mxu0 }
0x2109   :  { %7103 = vst [vmem:[#allocation10 + $0x6] sm:$0x1] %v7100_v10 }
0x210e   :  { %v7253_v28 = vpop.f32.mrb[78].mxu1 }
0x210f   :  { %v7254_v36 = vadd.f32 %v7253_v28, %v7178_v27  ;;  %v8849_v34 = vpop.f32.mrb[79].mxu1 }
0x2111   :  { %v7258_v38 = vadd.f32 %v7561_v1, %v7254_v36 }
0x2113   :  { %v7562_v50 = vmul.f32 -1.442695, %v7258_v38 }
0x2115   :  { %9593 = vpow2.f32 %v7562_v50 }
0x211f   :  { %v9594_v51 = vpop.eup %9593 }
0x2120   :  { %v7262_v20 = vadd.f32 1.0, %v9594_v51 }
0x2122   :  { %9595 = vrcp.f32 %v7262_v20 }
0x212c   :  { %v9596_v39 = vpop.eup %9595 }
0x212d   :  { %v7265_v31 = vmul.f32 2.0, %v9596_v39  ;;  %v7267_v37 = vmul.f32 %v9596_v39, %v7016_v35 }
0x212f   :  { %v7563_v22 = vadd.f32 -1.0, %v7265_v31 }
0x2131   :  { %7269 = vrot.lane.b32.xlu0 %v7563_v22, %s9726_s8 }
0x21a3   :  { %v7270_v17 = vpop.permute.xlu0 %7269 }
0x21a4   :  { %v7272_v47 = vmul.f32 %v9596_v39, %v7270_v17 }
0x21a6   :  { %7274 = vrot.lane.b32.xlu1 %v7272_v47, %s9727_s1 }
0x2218   :  { %v7275_v7 = vpop.permute.xlu1 %7274 }
0x2219   :  { %v7277_v60 = vadd.f32 %v7275_v7, %v7267_v37 }
0x221b   :  { %9597 = vtanh.f32 %v7277_v60 }
0x2225   :  { %v9598_v16 = vpop.eup %9597 }
0x2226   :  { %7280 = vrot.lane.b32.xlu0 %v9598_v16, %s9726_s8 }
0x2298   :  { %v7281_v45 = vpop.permute.xlu0 %7280 }
0x2299   :  { %v7283_v15 = vmul.f32 %v9596_v39, %v7281_v45 }
0x229b   :  { %7290 = vrot.lane.b32.xlu1 %v7283_v15, %s9727_s1 }
0x230d   :  { %v7291_v24 = vpop.permute.xlu1 %7290 }
0x230e   :  { %8859 = vmatmul.mubr.msk.f32.vlgmr.msra.gmra.mrb[80].mxu0 %vm89_vm1, %v7291_v24 }
0x23e1   :  { %v7360_v32 = vpop.f32.mrb[80].mxu0 }
0x23e2   :  { %v7361_v59 = vadd.f32 %v7360_v32, %v7288_v18  ;;  %v8860_v0 = vpop.f32.mrb[81].mxu0 }
0x23e4   :  { %7364 = vst [vmem:[#allocation10 + $0x7] sm:$0x1] %v7361_v59 }
0x23e5   :  { %9698 = shalt.err (!%p9695_p8)
}
0x23e6   :  { %s9699_s18 = scalar_lea.hbm %s11029_s6, 128 }
0x23e7   :  { %p9700_p9 = scmp.ne.s32.totalorder %s11029_s6, %s9699_s18  ;;  %p9703_p10 = scmp.lt.u32.totalorder %s9699_s18, %s11029_s6 }
0x23e9   :  { %p9705_p11 = pnand %p9703_p10, %p9700_p9 }
0x23eb   :  { %9708 = shalt.err (!%p9705_p11)
}
0x23ec   :  { %7374 = dma.vmem_to_hbm [thread:$0]  %s7372_s16, 128, %s11029_s6, [#allocation4]  }
0x23ed   :  { %9715 = dma.done.wait [#allocation4], 128  }
0x23ee   :  { %9716 = vsyncadd [#allocation4], 4294967168 }
0x23ef   :  { %7378 = vsyncpa [#allocation3], 1 }
0x23f0   :  { %7379 = vsyncpa [#allocation6], 1 }
0x23f1   :  { %7380 = vsyncpa [#allocation9], 1 }
0x23f2   :  { %7381 = vsyncpa [#allocation4], 1 }

</bundles_post_ra>
